<compile_context>
chip_gen: v5e
topology: v5e:2x2
jax: 0.10.0
libtpu: 0.0.40
codegen_flags: <defaults>
</compile_context>

<pallas_src>
import jax
import jax.numpy as jnp
from jax.experimental import pallas as pl
from jax.experimental.pallas import tpu as pltpu

C_OUT = 6   # conv1 out_channels
C_IN = 1    # conv1 in_channels (kernel hard-codes this; asserted below)
K = 3       # conv1 kernel size (valid padding, stride 1)


def simple_cnn_forward(x, w, b):
    """x: (N, 1, H, W) f32, w: (6, 1, 3, 3) f32, b: (6,) f32 -> (N, 6, H-2, W-2)."""
    N, cin, H, W = x.shape
    assert cin == C_IN  # Conv2d(1, 6, 3): single input channel by design
    OH, OW = H - K + 1, W - K + 1

    # Flatten weights so tap (c, di, dj) sits at SMEM index c*K*K + di*K + dj
    # (matches OIHW layout with C_IN == 1).
    w_flat = w.reshape(C_OUT * K * K)        # (54,)
    b_flat = b.reshape(C_OUT)                # (6,)

    def conv_kernel(x_ref, w_ref, b_ref, o_ref):
        # x_ref: (N, 1, H, W) VMEM; w_ref: (54,) SMEM; b_ref: (6,) SMEM
        # o_ref: (N, C_OUT, OH*OW) VMEM  (lane-dense; NCHW reshape done in wrapper)
        x_all = x_ref[:, 0]                  # (N, H, W) — in-kernel channel squeeze

        # Hoist the 9 shifted windows out of the channel loop: computed once,
        # shared by all C_OUT channels (cuts XLU shift work 6x).
        windows = [
            [x_all[:, di:di + OH, dj:dj + OW] for dj in range(K)]
            for di in range(K)
        ]

        for c in range(C_OUT):
            # Bias-initialized f32 accumulator for this channel, all images.
            acc = jnp.full((N, OH, OW), b_ref[c], jnp.float32)
            # 9-tap shift-and-MAC: SMEM scalar weight x dense spatial tile (VPU).
            for di in range(K):
                for dj in range(K):
                    acc = acc + w_ref[c * K * K + di * K + dj] * windows[di][dj]
            # Single consolidated, lane-dense store per channel (all N images).
            o_ref[:, c, :] = acc.reshape(N, OH * OW).astype(o_ref.dtype)

    out_flat = pl.pallas_call(
        conv_kernel,
        out_shape=jax.ShapeDtypeStruct((N, C_OUT, OH * OW), x.dtype),
        in_specs=[
            pl.BlockSpec(memory_space=pltpu.MemorySpace.VMEM),   # image batch (N,1,H,W)
            pl.BlockSpec(memory_space=pltpu.MemorySpace.SMEM),   # weight taps (54,)
            pl.BlockSpec(memory_space=pltpu.MemorySpace.SMEM),   # bias (6,)
        ],
        out_specs=pl.BlockSpec(memory_space=pltpu.MemorySpace.VMEM),
    )(x, w_flat, b_flat)

    # Free metadata reshape (output is NCHW-contiguous): no extra HBM pass.
    return out_flat.reshape(N, C_OUT, OH, OW)


def _reference_conv(x, w, b):
    out = jax.lax.conv_general_dilated(
        x, w, window_strides=(1, 1), padding="VALID",
        dimension_numbers=("NCHW", "OIHW", "NCHW"))
    return out + b.reshape(1, C_OUT, 1, 1)


if __name__ == "__main__":
    key = jax.random.PRNGKey(0)
    kx, kw, kb = jax.random.split(key, 3)

    # Small shapes consistent with Conv2d(1, 6, 3): batch=2, 1 channel, 16x16 spatial.
    x = jax.random.normal(kx, (2, C_IN, 16, 16), dtype=jnp.float32)
    w = jax.random.normal(kw, (C_OUT, C_IN, K, K), dtype=jnp.float32) * 0.1
    b = jax.random.normal(kb, (C_OUT,), dtype=jnp.float32) * 0.1

    out = jax.block_until_ready(simple_cnn_forward(x, w, b))
    ref = jax.block_until_ready(_reference_conv(x, w, b))

    assert out.shape == (2, C_OUT, 14, 14), out.shape
    assert jnp.allclose(out, ref, atol=1e-4, rtol=1e-4), float(jnp.max(jnp.abs(out - ref)))
    print("KERNEL_OK")
</pallas_src>

<mosaic_0001>
module attributes {stable_mosaic.version = 11 : i64} {
  func.func @conv_kernel(%arg0: memref<2x1x16x16xf32, #tpu.memory_space<vmem>>, %arg1: memref<54xf32, #tpu.memory_space<smem>>, %arg2: memref<6xf32, #tpu.memory_space<smem>>, %arg3: memref<2x6x196xf32, #tpu.memory_space<vmem>>) attributes {dimension_semantics = [], scalar_prefetch = 0 : i64, scratch_operands = 0 : i64, tpu.core_type = #tpu.core_type<tc>} {
    %c0 = arith.constant 0 : index
    %c0_0 = arith.constant 0 : index
    %c0_1 = arith.constant 0 : index
    %c0_2 = arith.constant 0 : index
    %0 = vector.load %arg0[%c0, %c0_0, %c0_1, %c0_2] : memref<2x1x16x16xf32, #tpu.memory_space<vmem>>, vector<2x1x16x16xf32>
    %1 = vector.shape_cast %0 : vector<2x1x16x16xf32> to vector<2x16x16xf32>
    %2 = vector.extract_strided_slice %1 {offsets = [0, 0, 0], sizes = [2, 14, 14], strides = [1, 1, 1]} : vector<2x16x16xf32> to vector<2x14x14xf32>
    %3 = vector.extract_strided_slice %1 {offsets = [0, 0, 1], sizes = [2, 14, 14], strides = [1, 1, 1]} : vector<2x16x16xf32> to vector<2x14x14xf32>
    %4 = vector.extract_strided_slice %1 {offsets = [0, 0, 2], sizes = [2, 14, 14], strides = [1, 1, 1]} : vector<2x16x16xf32> to vector<2x14x14xf32>
    %5 = vector.extract_strided_slice %1 {offsets = [0, 1, 0], sizes = [2, 14, 14], strides = [1, 1, 1]} : vector<2x16x16xf32> to vector<2x14x14xf32>
    %6 = vector.extract_strided_slice %1 {offsets = [0, 1, 1], sizes = [2, 14, 14], strides = [1, 1, 1]} : vector<2x16x16xf32> to vector<2x14x14xf32>
    %7 = vector.extract_strided_slice %1 {offsets = [0, 1, 2], sizes = [2, 14, 14], strides = [1, 1, 1]} : vector<2x16x16xf32> to vector<2x14x14xf32>
    %8 = vector.extract_strided_slice %1 {offsets = [0, 2, 0], sizes = [2, 14, 14], strides = [1, 1, 1]} : vector<2x16x16xf32> to vector<2x14x14xf32>
    %9 = vector.extract_strided_slice %1 {offsets = [0, 2, 1], sizes = [2, 14, 14], strides = [1, 1, 1]} : vector<2x16x16xf32> to vector<2x14x14xf32>
    %10 = vector.extract_strided_slice %1 {offsets = [0, 2, 2], sizes = [2, 14, 14], strides = [1, 1, 1]} : vector<2x16x16xf32> to vector<2x14x14xf32>
    %c0_3 = arith.constant 0 : index
    %11 = memref.load %arg2[%c0_3] : memref<6xf32, #tpu.memory_space<smem>>
    %12 = vector.broadcast %11 : f32 to vector<2x14x14xf32>
    %c0_4 = arith.constant 0 : index
    %13 = memref.load %arg1[%c0_4] : memref<54xf32, #tpu.memory_space<smem>>
    %14 = vector.broadcast %13 : f32 to vector<2x14x14xf32>
    %15 = arith.mulf %14, %2 : vector<2x14x14xf32>
    %16 = arith.addf %12, %15 : vector<2x14x14xf32>
    %c1 = arith.constant 1 : index
    %17 = memref.load %arg1[%c1] : memref<54xf32, #tpu.memory_space<smem>>
    %18 = vector.broadcast %17 : f32 to vector<2x14x14xf32>
    %19 = arith.mulf %18, %3 : vector<2x14x14xf32>
    %20 = arith.addf %16, %19 : vector<2x14x14xf32>
    %c2 = arith.constant 2 : index
    %21 = memref.load %arg1[%c2] : memref<54xf32, #tpu.memory_space<smem>>
    %22 = vector.broadcast %21 : f32 to vector<2x14x14xf32>
    %23 = arith.mulf %22, %4 : vector<2x14x14xf32>
    %24 = arith.addf %20, %23 : vector<2x14x14xf32>
    %c3 = arith.constant 3 : index
    %25 = memref.load %arg1[%c3] : memref<54xf32, #tpu.memory_space<smem>>
    %26 = vector.broadcast %25 : f32 to vector<2x14x14xf32>
    %27 = arith.mulf %26, %5 : vector<2x14x14xf32>
    %28 = arith.addf %24, %27 : vector<2x14x14xf32>
    %c4 = arith.constant 4 : index
    %29 = memref.load %arg1[%c4] : memref<54xf32, #tpu.memory_space<smem>>
    %30 = vector.broadcast %29 : f32 to vector<2x14x14xf32>
    %31 = arith.mulf %30, %6 : vector<2x14x14xf32>
    %32 = arith.addf %28, %31 : vector<2x14x14xf32>
    %c5 = arith.constant 5 : index
    %33 = memref.load %arg1[%c5] : memref<54xf32, #tpu.memory_space<smem>>
    %34 = vector.broadcast %33 : f32 to vector<2x14x14xf32>
    %35 = arith.mulf %34, %7 : vector<2x14x14xf32>
    %36 = arith.addf %32, %35 : vector<2x14x14xf32>
    %c6 = arith.constant 6 : index
    %37 = memref.load %arg1[%c6] : memref<54xf32, #tpu.memory_space<smem>>
    %38 = vector.broadcast %37 : f32 to vector<2x14x14xf32>
    %39 = arith.mulf %38, %8 : vector<2x14x14xf32>
    %40 = arith.addf %36, %39 : vector<2x14x14xf32>
    %c7 = arith.constant 7 : index
    %41 = memref.load %arg1[%c7] : memref<54xf32, #tpu.memory_space<smem>>
    %42 = vector.broadcast %41 : f32 to vector<2x14x14xf32>
    %43 = arith.mulf %42, %9 : vector<2x14x14xf32>
    %44 = arith.addf %40, %43 : vector<2x14x14xf32>
    %c8 = arith.constant 8 : index
    %45 = memref.load %arg1[%c8] : memref<54xf32, #tpu.memory_space<smem>>
    %46 = vector.broadcast %45 : f32 to vector<2x14x14xf32>
    %47 = arith.mulf %46, %10 : vector<2x14x14xf32>
    %48 = arith.addf %44, %47 : vector<2x14x14xf32>
    %49 = vector.shape_cast %48 : vector<2x14x14xf32> to vector<2x196xf32>
    %c0_5 = arith.constant 0 : index
    %c0_6 = arith.constant 0 : index
    %c0_7 = arith.constant 0 : index
    %50 = vector.load %arg3[%c0_5, %c0_6, %c0_7] : memref<2x6x196xf32, #tpu.memory_space<vmem>>, vector<2x1x196xf32>
    %51 = vector.shape_cast %50 : vector<2x1x196xf32> to vector<2x196xf32>
    %52 = vector.shape_cast %49 : vector<2x196xf32> to vector<2x1x196xf32>
    tpu.vector_store %arg3[%c0_5, %c0_6, %c0_7], %52 {strides = array<i32>} : memref<2x6x196xf32, #tpu.memory_space<vmem>>, vector<2x1x196xf32>,
    %c1_8 = arith.constant 1 : index
    %53 = memref.load %arg2[%c1_8] : memref<6xf32, #tpu.memory_space<smem>>
    %54 = vector.broadcast %53 : f32 to vector<2x14x14xf32>
    %c9 = arith.constant 9 : index
    %55 = memref.load %arg1[%c9] : memref<54xf32, #tpu.memory_space<smem>>
    %56 = vector.broadcast %55 : f32 to vector<2x14x14xf32>
    %57 = arith.mulf %56, %2 : vector<2x14x14xf32>
    %58 = arith.addf %54, %57 : vector<2x14x14xf32>
    %c10 = arith.constant 10 : index
    %59 = memref.load %arg1[%c10] : memref<54xf32, #tpu.memory_space<smem>>
    %60 = vector.broadcast %59 : f32 to vector<2x14x14xf32>
    %61 = arith.mulf %60, %3 : vector<2x14x14xf32>
    %62 = arith.addf %58, %61 : vector<2x14x14xf32>
    %c11 = arith.constant 11 : index
    %63 = memref.load %arg1[%c11] : memref<54xf32, #tpu.memory_space<smem>>
    %64 = vector.broadcast %63 : f32 to vector<2x14x14xf32>
    %65 = arith.mulf %64, %4 : vector<2x14x14xf32>
    %66 = arith.addf %62, %65 : vector<2x14x14xf32>
    %c12 = arith.constant 12 : index
    %67 = memref.load %arg1[%c12] : memref<54xf32, #tpu.memory_space<smem>>
    %68 = vector.broadcast %67 : f32 to vector<2x14x14xf32>
    %69 = arith.mulf %68, %5 : vector<2x14x14xf32>
    %70 = arith.addf %66, %69 : vector<2x14x14xf32>
    %c13 = arith.constant 13 : index
    %71 = memref.load %arg1[%c13] : memref<54xf32, #tpu.memory_space<smem>>
    %72 = vector.broadcast %71 : f32 to vector<2x14x14xf32>
    %73 = arith.mulf %72, %6 : vector<2x14x14xf32>
    %74 = arith.addf %70, %73 : vector<2x14x14xf32>
    %c14 = arith.constant 14 : index
    %75 = memref.load %arg1[%c14] : memref<54xf32, #tpu.memory_space<smem>>
    %76 = vector.broadcast %75 : f32 to vector<2x14x14xf32>
    %77 = arith.mulf %76, %7 : vector<2x14x14xf32>
    %78 = arith.addf %74, %77 : vector<2x14x14xf32>
    %c15 = arith.constant 15 : index
    %79 = memref.load %arg1[%c15] : memref<54xf32, #tpu.memory_space<smem>>
    %80 = vector.broadcast %79 : f32 to vector<2x14x14xf32>
    %81 = arith.mulf %80, %8 : vector<2x14x14xf32>
    %82 = arith.addf %78, %81 : vector<2x14x14xf32>
    %c16 = arith.constant 16 : index
    %83 = memref.load %arg1[%c16] : memref<54xf32, #tpu.memory_space<smem>>
    %84 = vector.broadcast %83 : f32 to vector<2x14x14xf32>
    %85 = arith.mulf %84, %9 : vector<2x14x14xf32>
    %86 = arith.addf %82, %85 : vector<2x14x14xf32>
    %c17 = arith.constant 17 : index
    %87 = memref.load %arg1[%c17] : memref<54xf32, #tpu.memory_space<smem>>
    %88 = vector.broadcast %87 : f32 to vector<2x14x14xf32>
    %89 = arith.mulf %88, %10 : vector<2x14x14xf32>
    %90 = arith.addf %86, %89 : vector<2x14x14xf32>
    %91 = vector.shape_cast %90 : vector<2x14x14xf32> to vector<2x196xf32>
    %c0_9 = arith.constant 0 : index
    %c1_10 = arith.constant 1 : index
    %c0_11 = arith.constant 0 : index
    %92 = vector.load %arg3[%c0_9, %c1_10, %c0_11] : memref<2x6x196xf32, #tpu.memory_space<vmem>>, vector<2x1x196xf32>
    %93 = vector.shape_cast %92 : vector<2x1x196xf32> to vector<2x196xf32>
    %94 = vector.shape_cast %91 : vector<2x196xf32> to vector<2x1x196xf32>
    tpu.vector_store %arg3[%c0_9, %c1_10, %c0_11], %94 {strides = array<i32>} : memref<2x6x196xf32, #tpu.memory_space<vmem>>, vector<2x1x196xf32>,
    %c2_12 = arith.constant 2 : index
    %95 = memref.load %arg2[%c2_12] : memref<6xf32, #tpu.memory_space<smem>>
    %96 = vector.broadcast %95 : f32 to vector<2x14x14xf32>
    %c18 = arith.constant 18 : index
    %97 = memref.load %arg1[%c18] : memref<54xf32, #tpu.memory_space<smem>>
    %98 = vector.broadcast %97 : f32 to vector<2x14x14xf32>
    %99 = arith.mulf %98, %2 : vector<2x14x14xf32>
    %100 = arith.addf %96, %99 : vector<2x14x14xf32>
    %c19 = arith.constant 19 : index
    %101 = memref.load %arg1[%c19] : memref<54xf32, #tpu.memory_space<smem>>
    %102 = vector.broadcast %101 : f32 to vector<2x14x14xf32>
    %103 = arith.mulf %102, %3 : vector<2x14x14xf32>
    %104 = arith.addf %100, %103 : vector<2x14x14xf32>
    %c20 = arith.constant 20 : index
    %105 = memref.load %arg1[%c20] : memref<54xf32, #tpu.memory_space<smem>>
    %106 = vector.broadcast %105 : f32 to vector<2x14x14xf32>
    %107 = arith.mulf %106, %4 : vector<2x14x14xf32>
    %108 = arith.addf %104, %107 : vector<2x14x14xf32>
    %c21 = arith.constant 21 : index
    %109 = memref.load %arg1[%c21] : memref<54xf32, #tpu.memory_space<smem>>
    %110 = vector.broadcast %109 : f32 to vector<2x14x14xf32>
    %111 = arith.mulf %110, %5 : vector<2x14x14xf32>
    %112 = arith.addf %108, %111 : vector<2x14x14xf32>
    %c22 = arith.constant 22 : index
    %113 = memref.load %arg1[%c22] : memref<54xf32, #tpu.memory_space<smem>>
    %114 = vector.broadcast %113 : f32 to vector<2x14x14xf32>
    %115 = arith.mulf %114, %6 : vector<2x14x14xf32>
    %116 = arith.addf %112, %115 : vector<2x14x14xf32>
    %c23 = arith.constant 23 : index
    %117 = memref.load %arg1[%c23] : memref<54xf32, #tpu.memory_space<smem>>
    %118 = vector.broadcast %117 : f32 to vector<2x14x14xf32>
    %119 = arith.mulf %118, %7 : vector<2x14x14xf32>
    %120 = arith.addf %116, %119 : vector<2x14x14xf32>
    %c24 = arith.constant 24 : index
    %121 = memref.load %arg1[%c24] : memref<54xf32, #tpu.memory_space<smem>>
    %122 = vector.broadcast %121 : f32 to vector<2x14x14xf32>
    %123 = arith.mulf %122, %8 : vector<2x14x14xf32>
    %124 = arith.addf %120, %123 : vector<2x14x14xf32>
    %c25 = arith.constant 25 : index
    %125 = memref.load %arg1[%c25] : memref<54xf32, #tpu.memory_space<smem>>
    %126 = vector.broadcast %125 : f32 to vector<2x14x14xf32>
    %127 = arith.mulf %126, %9 : vector<2x14x14xf32>
    %128 = arith.addf %124, %127 : vector<2x14x14xf32>
    %c26 = arith.constant 26 : index
    %129 = memref.load %arg1[%c26] : memref<54xf32, #tpu.memory_space<smem>>
    %130 = vector.broadcast %129 : f32 to vector<2x14x14xf32>
    %131 = arith.mulf %130, %10 : vector<2x14x14xf32>
    %132 = arith.addf %128, %131 : vector<2x14x14xf32>
    %133 = vector.shape_cast %132 : vector<2x14x14xf32> to vector<2x196xf32>
    %c0_13 = arith.constant 0 : index
    %c2_14 = arith.constant 2 : index
    %c0_15 = arith.constant 0 : index
    %134 = vector.load %arg3[%c0_13, %c2_14, %c0_15] : memref<2x6x196xf32, #tpu.memory_space<vmem>>, vector<2x1x196xf32>
    %135 = vector.shape_cast %134 : vector<2x1x196xf32> to vector<2x196xf32>
    %136 = vector.shape_cast %133 : vector<2x196xf32> to vector<2x1x196xf32>
    tpu.vector_store %arg3[%c0_13, %c2_14, %c0_15], %136 {strides = array<i32>} : memref<2x6x196xf32, #tpu.memory_space<vmem>>, vector<2x1x196xf32>,
    %c3_16 = arith.constant 3 : index
    %137 = memref.load %arg2[%c3_16] : memref<6xf32, #tpu.memory_space<smem>>
    %138 = vector.broadcast %137 : f32 to vector<2x14x14xf32>
    %c27 = arith.constant 27 : index
    %139 = memref.load %arg1[%c27] : memref<54xf32, #tpu.memory_space<smem>>
    %140 = vector.broadcast %139 : f32 to vector<2x14x14xf32>
    %141 = arith.mulf %140, %2 : vector<2x14x14xf32>
    %142 = arith.addf %138, %141 : vector<2x14x14xf32>
    %c28 = arith.constant 28 : index
    %143 = memref.load %arg1[%c28] : memref<54xf32, #tpu.memory_space<smem>>
    %144 = vector.broadcast %143 : f32 to vector<2x14x14xf32>
    %145 = arith.mulf %144, %3 : vector<2x14x14xf32>
    %146 = arith.addf %142, %145 : vector<2x14x14xf32>
    %c29 = arith.constant 29 : index
    %147 = memref.load %arg1[%c29] : memref<54xf32, #tpu.memory_space<smem>>
    %148 = vector.broadcast %147 : f32 to vector<2x14x14xf32>
    %149 = arith.mulf %148, %4 : vector<2x14x14xf32>
    %150 = arith.addf %146, %149 : vector<2x14x14xf32>
    %c30 = arith.constant 30 : index
    %151 = memref.load %arg1[%c30] : memref<54xf32, #tpu.memory_space<smem>>
    %152 = vector.broadcast %151 : f32 to vector<2x14x14xf32>
    %153 = arith.mulf %152, %5 : vector<2x14x14xf32>
    %154 = arith.addf %150, %153 : vector<2x14x14xf32>
    %c31 = arith.constant 31 : index
    %155 = memref.load %arg1[%c31] : memref<54xf32, #tpu.memory_space<smem>>
    %156 = vector.broadcast %155 : f32 to vector<2x14x14xf32>
    %157 = arith.mulf %156, %6 : vector<2x14x14xf32>
    %158 = arith.addf %154, %157 : vector<2x14x14xf32>
    %c32 = arith.constant 32 : index
    %159 = memref.load %arg1[%c32] : memref<54xf32, #tpu.memory_space<smem>>
    %160 = vector.broadcast %159 : f32 to vector<2x14x14xf32>
    %161 = arith.mulf %160, %7 : vector<2x14x14xf32>
    %162 = arith.addf %158, %161 : vector<2x14x14xf32>
    %c33 = arith.constant 33 : index
    %163 = memref.load %arg1[%c33] : memref<54xf32, #tpu.memory_space<smem>>
    %164 = vector.broadcast %163 : f32 to vector<2x14x14xf32>
    %165 = arith.mulf %164, %8 : vector<2x14x14xf32>
    %166 = arith.addf %162, %165 : vector<2x14x14xf32>
    %c34 = arith.constant 34 : index
    %167 = memref.load %arg1[%c34] : memref<54xf32, #tpu.memory_space<smem>>
    %168 = vector.broadcast %167 : f32 to vector<2x14x14xf32>
    %169 = arith.mulf %168, %9 : vector<2x14x14xf32>
    %170 = arith.addf %166, %169 : vector<2x14x14xf32>
    %c35 = arith.constant 35 : index
    %171 = memref.load %arg1[%c35] : memref<54xf32, #tpu.memory_space<smem>>
    %172 = vector.broadcast %171 : f32 to vector<2x14x14xf32>
    %173 = arith.mulf %172, %10 : vector<2x14x14xf32>
    %174 = arith.addf %170, %173 : vector<2x14x14xf32>
    %175 = vector.shape_cast %174 : vector<2x14x14xf32> to vector<2x196xf32>
    %c0_17 = arith.constant 0 : index
    %c3_18 = arith.constant 3 : index
    %c0_19 = arith.constant 0 : index
    %176 = vector.load %arg3[%c0_17, %c3_18, %c0_19] : memref<2x6x196xf32, #tpu.memory_space<vmem>>, vector<2x1x196xf32>
    %177 = vector.shape_cast %176 : vector<2x1x196xf32> to vector<2x196xf32>
    %178 = vector.shape_cast %175 : vector<2x196xf32> to vector<2x1x196xf32>
    tpu.vector_store %arg3[%c0_17, %c3_18, %c0_19], %178 {strides = array<i32>} : memref<2x6x196xf32, #tpu.memory_space<vmem>>, vector<2x1x196xf32>,
    %c4_20 = arith.constant 4 : index
    %179 = memref.load %arg2[%c4_20] : memref<6xf32, #tpu.memory_space<smem>>
    %180 = vector.broadcast %179 : f32 to vector<2x14x14xf32>
    %c36 = arith.constant 36 : index
    %181 = memref.load %arg1[%c36] : memref<54xf32, #tpu.memory_space<smem>>
    %182 = vector.broadcast %181 : f32 to vector<2x14x14xf32>
    %183 = arith.mulf %182, %2 : vector<2x14x14xf32>
    %184 = arith.addf %180, %183 : vector<2x14x14xf32>
    %c37 = arith.constant 37 : index
    %185 = memref.load %arg1[%c37] : memref<54xf32, #tpu.memory_space<smem>>
    %186 = vector.broadcast %185 : f32 to vector<2x14x14xf32>
    %187 = arith.mulf %186, %3 : vector<2x14x14xf32>
    %188 = arith.addf %184, %187 : vector<2x14x14xf32>
    %c38 = arith.constant 38 : index
    %189 = memref.load %arg1[%c38] : memref<54xf32, #tpu.memory_space<smem>>
    %190 = vector.broadcast %189 : f32 to vector<2x14x14xf32>
    %191 = arith.mulf %190, %4 : vector<2x14x14xf32>
    %192 = arith.addf %188, %191 : vector<2x14x14xf32>
    %c39 = arith.constant 39 : index
    %193 = memref.load %arg1[%c39] : memref<54xf32, #tpu.memory_space<smem>>
    %194 = vector.broadcast %193 : f32 to vector<2x14x14xf32>
    %195 = arith.mulf %194, %5 : vector<2x14x14xf32>
    %196 = arith.addf %192, %195 : vector<2x14x14xf32>
    %c40 = arith.constant 40 : index
    %197 = memref.load %arg1[%c40] : memref<54xf32, #tpu.memory_space<smem>>
    %198 = vector.broadcast %197 : f32 to vector<2x14x14xf32>
    %199 = arith.mulf %198, %6 : vector<2x14x14xf32>
    %200 = arith.addf %196, %199 : vector<2x14x14xf32>
    %c41 = arith.constant 41 : index
    %201 = memref.load %arg1[%c41] : memref<54xf32, #tpu.memory_space<smem>>
    %202 = vector.broadcast %201 : f32 to vector<2x14x14xf32>
    %203 = arith.mulf %202, %7 : vector<2x14x14xf32>
    %204 = arith.addf %200, %203 : vector<2x14x14xf32>
    %c42 = arith.constant 42 : index
    %205 = memref.load %arg1[%c42] : memref<54xf32, #tpu.memory_space<smem>>
    %206 = vector.broadcast %205 : f32 to vector<2x14x14xf32>
    %207 = arith.mulf %206, %8 : vector<2x14x14xf32>
    %208 = arith.addf %204, %207 : vector<2x14x14xf32>
    %c43 = arith.constant 43 : index
    %209 = memref.load %arg1[%c43] : memref<54xf32, #tpu.memory_space<smem>>
    %210 = vector.broadcast %209 : f32 to vector<2x14x14xf32>
    %211 = arith.mulf %210, %9 : vector<2x14x14xf32>
    %212 = arith.addf %208, %211 : vector<2x14x14xf32>
    %c44 = arith.constant 44 : index
    %213 = memref.load %arg1[%c44] : memref<54xf32, #tpu.memory_space<smem>>
    %214 = vector.broadcast %213 : f32 to vector<2x14x14xf32>
    %215 = arith.mulf %214, %10 : vector<2x14x14xf32>
    %216 = arith.addf %212, %215 : vector<2x14x14xf32>
    %217 = vector.shape_cast %216 : vector<2x14x14xf32> to vector<2x196xf32>
    %c0_21 = arith.constant 0 : index
    %c4_22 = arith.constant 4 : index
    %c0_23 = arith.constant 0 : index
    %218 = vector.load %arg3[%c0_21, %c4_22, %c0_23] : memref<2x6x196xf32, #tpu.memory_space<vmem>>, vector<2x1x196xf32>
    %219 = vector.shape_cast %218 : vector<2x1x196xf32> to vector<2x196xf32>
    %220 = vector.shape_cast %217 : vector<2x196xf32> to vector<2x1x196xf32>
    tpu.vector_store %arg3[%c0_21, %c4_22, %c0_23], %220 {strides = array<i32>} : memref<2x6x196xf32, #tpu.memory_space<vmem>>, vector<2x1x196xf32>,
    %c5_24 = arith.constant 5 : index
    %221 = memref.load %arg2[%c5_24] : memref<6xf32, #tpu.memory_space<smem>>
    %222 = vector.broadcast %221 : f32 to vector<2x14x14xf32>
    %c45 = arith.constant 45 : index
    %223 = memref.load %arg1[%c45] : memref<54xf32, #tpu.memory_space<smem>>
    %224 = vector.broadcast %223 : f32 to vector<2x14x14xf32>
    %225 = arith.mulf %224, %2 : vector<2x14x14xf32>
    %226 = arith.addf %222, %225 : vector<2x14x14xf32>
    %c46 = arith.constant 46 : index
    %227 = memref.load %arg1[%c46] : memref<54xf32, #tpu.memory_space<smem>>
    %228 = vector.broadcast %227 : f32 to vector<2x14x14xf32>
    %229 = arith.mulf %228, %3 : vector<2x14x14xf32>
    %230 = arith.addf %226, %229 : vector<2x14x14xf32>
    %c47 = arith.constant 47 : index
    %231 = memref.load %arg1[%c47] : memref<54xf32, #tpu.memory_space<smem>>
    %232 = vector.broadcast %231 : f32 to vector<2x14x14xf32>
    %233 = arith.mulf %232, %4 : vector<2x14x14xf32>
    %234 = arith.addf %230, %233 : vector<2x14x14xf32>
    %c48 = arith.constant 48 : index
    %235 = memref.load %arg1[%c48] : memref<54xf32, #tpu.memory_space<smem>>
    %236 = vector.broadcast %235 : f32 to vector<2x14x14xf32>
    %237 = arith.mulf %236, %5 : vector<2x14x14xf32>
    %238 = arith.addf %234, %237 : vector<2x14x14xf32>
    %c49 = arith.constant 49 : index
    %239 = memref.load %arg1[%c49] : memref<54xf32, #tpu.memory_space<smem>>
    %240 = vector.broadcast %239 : f32 to vector<2x14x14xf32>
    %241 = arith.mulf %240, %6 : vector<2x14x14xf32>
    %242 = arith.addf %238, %241 : vector<2x14x14xf32>
    %c50 = arith.constant 50 : index
    %243 = memref.load %arg1[%c50] : memref<54xf32, #tpu.memory_space<smem>>
    %244 = vector.broadcast %243 : f32 to vector<2x14x14xf32>
    %245 = arith.mulf %244, %7 : vector<2x14x14xf32>
    %246 = arith.addf %242, %245 : vector<2x14x14xf32>
    %c51 = arith.constant 51 : index
    %247 = memref.load %arg1[%c51] : memref<54xf32, #tpu.memory_space<smem>>
    %248 = vector.broadcast %247 : f32 to vector<2x14x14xf32>
    %249 = arith.mulf %248, %8 : vector<2x14x14xf32>
    %250 = arith.addf %246, %249 : vector<2x14x14xf32>
    %c52 = arith.constant 52 : index
    %251 = memref.load %arg1[%c52] : memref<54xf32, #tpu.memory_space<smem>>
    %252 = vector.broadcast %251 : f32 to vector<2x14x14xf32>
    %253 = arith.mulf %252, %9 : vector<2x14x14xf32>
    %254 = arith.addf %250, %253 : vector<2x14x14xf32>
    %c53 = arith.constant 53 : index
    %255 = memref.load %arg1[%c53] : memref<54xf32, #tpu.memory_space<smem>>
    %256 = vector.broadcast %255 : f32 to vector<2x14x14xf32>
    %257 = arith.mulf %256, %10 : vector<2x14x14xf32>
    %258 = arith.addf %254, %257 : vector<2x14x14xf32>
    %259 = vector.shape_cast %258 : vector<2x14x14xf32> to vector<2x196xf32>
    %c0_25 = arith.constant 0 : index
    %c5_26 = arith.constant 5 : index
    %c0_27 = arith.constant 0 : index
    %260 = vector.load %arg3[%c0_25, %c5_26, %c0_27] : memref<2x6x196xf32, #tpu.memory_space<vmem>>, vector<2x1x196xf32>
    %261 = vector.shape_cast %260 : vector<2x1x196xf32> to vector<2x196xf32>
    %262 = vector.shape_cast %259 : vector<2x196xf32> to vector<2x1x196xf32>
    tpu.vector_store %arg3[%c0_25, %c5_26, %c0_27], %262 {strides = array<i32>} : memref<2x6x196xf32, #tpu.memory_space<vmem>>, vector<2x1x196xf32>,
    return
  }
}

</mosaic_0001>

<bundles_post_ra>
// kernel: tpu_custom_call.1
= control target key start
LH: loop header
LB: loop body
LE: loop exit
PB: predicated region body
PF: predicated region fallthrough
CT: control target
= control target key end

     0   :  { %8 = vsyncpa [#allocation3], 0  ;;  %s4905_s0 = inlined_call_operand.hbm [shape: f32[2,1,16,16], index: 0, kind: input, shape index: {}]   ;;  %s4906_s1 = inlined_call_operand.hbm [shape: f32[54], index: 1, kind: input, shape index: {}]   ;;  %s4907_s2 = inlined_call_operand.vmem [shape: f32[6], index: 2, kind: input, shape index: {}]   ;;  %s4908_s3 = inlined_call_operand.vmem [shape: f32[2,6,196], index: 3, kind: output, shape index: {}]  }
   0x1   :  { %9 = vsyncpa [#allocation4], 0  ;;  %s15_s14 = sshll.u32 %s4905_s0, 4  ;;  %s16_s14 = int_to_ptr.hbm [resolvable:$true] %s15_s14 }
   0x2   :  { %10 = vsyncpa [#allocation5], 0  ;;  %s3326_s15 = smov [#allocation2]   ;;  %s29_s19 = sshll.u32 %s4906_s1, 4  ;;  %s30_s19 = int_to_ptr.hbm [resolvable:$true] %s29_s19 }
   0x3   :  { %s17_s16 = sshll.u32 %s3326_s15, 4  ;;  %s3327_s20 = smov 128   ;;  %s18_s16 = int_to_ptr.vmem [resolvable:$true] %s17_s16 }
   0x4   :  { %s3328_s21 = smov 8   ;;  %s3329_s22 = smov [#allocation6]  }
   0x5   :  { %23 = dma.hbm_to_vmem [thread:$0]  %s16_s14, 512, %s18_s16, [#allocation3], %s3327_s20, %s3327_s20, %s3328_s21  }
   0x6   :  { %32 = dma.hbm_to_smem %s30_s19, 16, %s3329_s22, [#allocation4]  }
   0x7   :  { %s38_s25 = sshll.u32 %s4907_s2, 4  ;;  %s3330_s0 = smov [#allocation7]   ;;  %s39_s25 = int_to_ptr.vmem [resolvable:$true] %s38_s25 }
   0x8   :  { %41 = dma.vmem_to_smem %s39_s25, 16, %s3330_s0, [#allocation5]  }
   0x9   :  { %3320 = dma.done.wait [#allocation3], 512  }
   0xa   :  { %3321 = vsyncadd [#allocation3], 4294966784 }
   0xb   :  { %3322 = dma.done.wait [#allocation4], 16  }
   0xc   :  { %3323 = vsyncadd [#allocation4], 4294967280 }
   0xd   :  { %3324 = dma.done.wait [#allocation5], 16  }
   0xe   :  { %3325 = vsyncadd [#allocation5], 4294967280 }
   0xf   :  { %54 = sfence }
  0x10   :  { %s3170_s1 = sld [smem:[#allocation6 + $0x1]]  ;;  %v3376_v0 = vld [vmem:[#allocation2 + $0x10] sm:$0xff]  ;;  %v3378_v1 = vld [vmem:[#allocation2] sm:$0xff]  ;;  %s3331_s27 = smov 127   ;;  %v3385_v7 = vld [vmem:[#allocation2 + $0x18] sm:$0xff]  ;;  %vm4913_vm0 = vcmask 1046528  }
  0x11   :  { %s3171_s26 = sld [smem:[#allocation6 + $0x2]]  ;;  %v3387_v8 = vld [vmem:[#allocation2 + $0x8] sm:$0xff]  ;;  %s3332_s28 = smov 126   ;;  %vm4912_vm1 = vcmask 1045504   ;;  %vm4911_vm2 = vcmask 1047556   ;;  %vm534_vm3 = vcmask 113664  }
  0x12   :  { %s3173_s2 = sld [smem:[#allocation6 + $0x4]]  ;;  %s3335_s12 = smov 112   ;;  %vm4909_vm4 = vcmask 228352   ;;  %vm4910_vm5 = vcmask 97280   ;;  %vm564_vm6 = vcmask 211968   ;;  %vm540_vm7 = vcmask 343040  }
  0x13   :  { %s3174_s29 = sld [smem:[#allocation6 + $0x5]]  ;;  %s3336_s13 = smov 40   ;;  %vm567_vm8 = vcmask 326656   ;;  %vm543_vm9 = vcmask 457728   ;;  %vm570_vm10 = vcmask 441344   ;;  %vm546_vm11 = vcmask 572416  }
  0x14   :  { %s3176_s30 = sld [smem:[#allocation6 + $0x7]]  ;;  %s3337_s14 = smov 14   ;;  %vm549_vm12 = vcmask 687104   ;;  %vm552_vm13 = vcmask 801792   ;;  %vm555_vm14 = vcmask 916480   ;;  %vm4915_vm15 = vcmask 1031168  }
  0x15   :  { %s3177_s4 = sld [smem:[#allocation6 + $0x8]]  ;;  %s3338_s15 = smov 28  }
  0x16   :  { %v72_v2 = vstv %s3170_s1  ;;  %s3181_s5 = sld [smem:[#allocation6 + $0xa]]  ;;  %s3339_s16 = smov 56  }
  0x17   :  { %v75_v3 = vmul.f32 %v72_v2, %v3376_v0  ;;  %v73_v4 = vmul.f32 %v72_v2, %v3378_v1  ;;  %v98_v5 = vstv %s3171_s26  ;;  %v76_v9 = vmul.f32 %v72_v2, %v3385_v7  ;;  %s3182_s6 = sld [smem:[#allocation6 + $0xb]]  ;;  %s3340_s17 = smov 12  }
  0x18   :  { %v99_v6 = vmul.f32 %v98_v5, %v3378_v1  ;;  %v74_v10 = vmul.f32 %v72_v2, %v3387_v8  ;;  %v100_v11 = vmul.f32 %v98_v5, %v3387_v8  ;;  %v149_v12 = vstv %s3173_s2  ;;  %s3184_s7 = sld [smem:[#allocation6 + $0xd]]  ;;  %s3341_s18 = smov 42  }
  0x19   :  { %85 = vrot.lane.b32.xlu1 %v75_v3, %s3331_s27  ;;  %81 = vrot.lane.b32.xlu0 %v73_v4, %s3331_s27  ;;  %v150_v13 = vmul.f32 %v149_v12, %v3378_v1  ;;  %v151_v14 = vmul.f32 %v149_v12, %v3387_v8  ;;  %v102_v16 = vmul.f32 %v98_v5, %v3385_v7  ;;  %v181_v24 = vstv %s3174_s29  ;;  %s61_s8 = sld [smem:[#allocation6]]  ;;  %s3342_s19 = smov 54  }
  0x1a   :  { %107 = vrot.lane.b32.xlu2 %v99_v6, %s3332_s28  ;;  %v101_v17 = vmul.f32 %v98_v5, %v3376_v0  ;;  %v152_v18 = vmul.f32 %v149_v12, %v3376_v0  ;;  %v153_v19 = vmul.f32 %v149_v12, %v3385_v7  ;;  %v183_v26 = vmul.f32 %v181_v24, %v3387_v8  ;;  %s59_s9 = sld [smem:[#allocation7]]  ;;  %s3343_s20 = smov 70  }
  0x1b   :  { %v158_v15 = vrot.slane %v150_v13, 1  ;;  %v159_v20 = vrot.slane %v151_v14, 1  ;;  %v182_v27 = vmul.f32 %v181_v24, %v3378_v1  ;;  %v184_v28 = vmul.f32 %v181_v24, %v3376_v0  ;;  %s3172_s10 = sld [smem:[#allocation6 + $0x3]]  ;;  %s3344_s21 = smov 84  }
  0x1c   :  { %v161_v22 = vrot.slane %v152_v18, 1  ;;  %v162_v23 = vrot.slane %v153_v19, 1  ;;  %v191_v29 = vrot.slane %v183_v26, 1  ;;  %v185_v31 = vmul.f32 %v181_v24, %v3385_v7  ;;  %s3175_s11 = sld [smem:[#allocation6 + $0x6]]  ;;  %s3345_s22 = smov 26  }
  0x1d   :  { %v160_v21 = vsel %vm4913_vm0, %v158_v15, %v159_v20  ;;  %v190_v30 = vrot.slane %v182_v27, 1  ;;  %v238_v32 = vstv %s3176_s30  ;;  %v193_v33 = vrot.slane %v184_v28, 1  ;;  %s3185_s23 = sld [smem:[#allocation6 + $0xe]]  ;;  %s3346_s24 = smov 98  }
  0x1e   :  { %v163_v25 = vsel %vm4913_vm0, %v161_v22, %v162_v23  ;;  %v239_v35 = vmul.f32 %v238_v32, %v3378_v1  ;;  %v240_v36 = vmul.f32 %v238_v32, %v3387_v8  ;;  %v194_v37 = vrot.slane %v185_v31, 1  ;;  %s3187_s25 = sld [smem:[#allocation6 + $0x10]] }
  0x1f   :  { %v192_v34 = vsel %vm4913_vm0, %v190_v30, %v191_v29  ;;  %v242_v42 = vmul.f32 %v238_v32, %v3385_v7  ;;  %v241_v43 = vmul.f32 %v238_v32, %v3376_v0  ;;  %v270_v44 = vstv %s3177_s4  ;;  %s3188_s0 = sld [smem:[#allocation6 + $0x11]] }
  0x20   :  { %v195_v38 = vsel %vm4913_vm0, %v193_v33, %v194_v37  ;;  %v247_v39 = vrot.slane %v239_v35, 2  ;;  %v248_v40 = vrot.slane %v240_v36, 2  ;;  %v271_v45 = vmul.f32 %v270_v44, %v3378_v1  ;;  %s3180_s1 = sld [smem:[#allocation6 + $0x9]] }
  0x21   :  { %87 = vrot.lane.b32.xlu1 %v76_v9, %s3331_s27  ;;  %83 = vrot.lane.b32.xlu0 %v74_v10, %s3331_s27  ;;  %v251_v46 = vrot.slane %v242_v42, 2  ;;  %v250_v47 = vrot.slane %v241_v43, 2  ;;  %v272_v48 = vmul.f32 %v270_v44, %v3387_v8  ;;  %v273_v51 = vmul.f32 %v270_v44, %v3376_v0  ;;  %s3179_s26 = sld [smem:[#allocation7 + $0x1]] }
  0x22   :  { %109 = vrot.lane.b32.xlu2 %v100_v11, %s3332_s28  ;;  %v249_v41 = vsel %vm4912_vm1, %v247_v39, %v248_v40  ;;  %v279_v49 = vrot.slane %v271_v45, 2  ;;  %v274_v52 = vmul.f32 %v270_v44, %v3385_v7  ;;  %v606_v60 = vstv %s3181_s5  ;;  %s3183_s30 = sld [smem:[#allocation6 + $0xc]] }
  0x23   :  { %v252_v50 = vsel %vm4912_vm1, %v250_v47, %v251_v46  ;;  %v280_v53 = vrot.slane %v272_v48, 2  ;;  %v282_v55 = vrot.slane %v273_v51, 2  ;;  %v609_v61 = vmul.f32 %v606_v60, %v3376_v0  ;;  %s3192_s2 = sld [smem:[#allocation6 + $0x12]] }
  0x24   :  { %v283_v56 = vrot.slane %v274_v52, 2  ;;  %v608_v63 = vmul.f32 %v606_v60, %v3387_v8  ;;  %v632_v4 = vstv %s3182_s6  ;;  %v607_v6 = vmul.f32 %v606_v60, %v3378_v1  ;;  %s3186_s6 = sld [smem:[#allocation6 + $0xf]] }
  0x25   :  { %v281_v54 = vsel %vm4912_vm1, %v279_v49, %v280_v53  ;;  %v634_v5 = vmul.f32 %v632_v4, %v3387_v8  ;;  %v633_v10 = vmul.f32 %v632_v4, %v3378_v1  ;;  %v3457_v11 = vstv %s3184_s7  ;;  %s3193_s7 = sld [smem:[#allocation6 + $0x13]] }
  0x26   :  { %v284_v57 = vsel %vm4912_vm1, %v282_v55, %v283_v56  ;;  %v683_v14 = vmul.f32 %v3457_v11, %v3378_v1  ;;  %v3463_v15 = vmul.f32 %v3457_v11, %v3387_v8  ;;  %v62_v19 = vstv %s61_s8  ;;  %s3194_s8 = sld [smem:[#allocation6 + $0x14]] }
  0x27   :  { %v63_v22 = vmul.f32 %v62_v19, %v3378_v1  ;;  %v124_v27 = vstv %s3172_s10  ;;  %v635_v31 = vmul.f32 %v632_v4, %v3376_v0  ;;  %v66_v32 = vmul.f32 %v62_v19, %v3385_v7  ;;  %s3197_s10 = sld [smem:[#allocation6 + $0x17]] }
  0x28   :  { %v126_v30 = vmul.f32 %v124_v27, %v3387_v8  ;;  %v64_v39 = vmul.f32 %v62_v19, %v3387_v8  ;;  %v65_v42 = vmul.f32 %v62_v19, %v3376_v0  ;;  %v128_v44 = vmul.f32 %v124_v27, %v3385_v7  ;;  %s3195_s29 = sld [smem:[#allocation6 + $0x15]] }
  0x29   :  { %113 = vrot.lane.b32.xlu1 %v102_v16, %s3332_s28  ;;  %111 = vrot.lane.b32.xlu0 %v101_v17, %s3332_s28  ;;  %v691_v16 = vrot.slane %v683_v14, 1  ;;  %v692_v17 = vrot.slane %v3463_v15, 1  ;;  %v213_v45 = vstv %s3175_s11  ;;  %v127_v51 = vmul.f32 %v124_v27, %v3376_v0  ;;  %s3199_s11 = sld [smem:[#allocation6 + $0x19]] }
  0x2a   :  { %164 = vrot.lane.b32.xlu2 %v160_v21, %s3331_s27  ;;  %v636_v21 = vmul.f32 %v632_v4, %v3385_v7  ;;  %v215_v48 = vmul.f32 %v213_v45, %v3387_v8  ;;  %v214_v49 = vmul.f32 %v213_v45, %v3378_v1  ;;  %s3198_s4 = sld [smem:[#allocation6 + $0x18]] }
  0x2b   :  { %v693_v18 = vsel %vm4913_vm0, %v691_v16, %v692_v17  ;;  %s3205_s5 = sld [smem:[#allocation6 + $0x1c]] }
  0x31   :  { %168 = vrot.lane.b32.xlu1 %v163_v25, %s3331_s27  ;;  %166 = vrot.lane.b32.xlu0 %v159_v20, %s3331_s27  ;;  %v610_v20 = vmul.f32 %v606_v60, %v3385_v7  ;;  %v60_v25 = vstv %s59_s9  ;;  %v223_v60 = vrot.slane %v214_v49, 2  ;;  %s3196_s9 = sld [smem:[#allocation6 + $0x16]] }
  0x32   :  { %170 = vrot.lane.b32.xlu2 %v162_v23, %s3331_s27  ;;  %v67_v28 = vadd.f32 %v63_v22, %v60_v25  ;;  %v68_v47 = vadd.f32 %v64_v39, %v60_v25 }
  0x39   :  { %198 = vrot.lane.b32.xlu1 %v191_v29, %s3332_s28  ;;  %196 = vrot.lane.b32.xlu0 %v192_v34, %s3332_s28  ;;  %v125_v29 = vmul.f32 %v124_v27, %v3378_v1  ;;  %v3333_v27 = vmov 1983009808  }
  0x3a   :  { %200 = vrot.lane.b32.xlu2 %v195_v38, %s3332_s28  ;;  %v70_v38 = vadd.f32 %v66_v32, %v60_v25 }
  0x3b   :  { %v134_v36 = vrot.slane %v125_v29, 1 }
  0x41   :  { %253 = vrot.lane.b32.xlu1 %v249_v41, %s3331_s27  ;;  %202 = vrot.lane.b32.xlu0 %v194_v37, %s3332_s28  ;;  %v135_v37 = vrot.slane %v126_v30, 1 }
  0x42   :  { %255 = vrot.lane.b32.xlu2 %v248_v40, %s3331_s27 }
  0x43   :  { %v136_v43 = vsel %vm4913_vm0, %v134_v36, %v135_v37 }
  0x49   :  { %259 = vrot.lane.b32.xlu1 %v251_v46, %s3331_s27  ;;  %257 = vrot.lane.b32.xlu0 %v252_v50, %s3331_s27 }
  0x4a   :  { %285 = vrot.lane.b32.xlu2 %v281_v54, %s3332_s28  ;;  %v69_v54 = vadd.f32 %v65_v42, %v60_v25 }
  0x51   :  { %289 = vrot.lane.b32.xlu1 %v284_v57, %s3332_s28  ;;  %287 = vrot.lane.b32.xlu0 %v280_v53, %s3332_s28 }
  0x52   :  { %291 = vrot.lane.b32.xlu2 %v283_v56, %s3332_s28  ;;  %v138_v56 = vrot.slane %v128_v44, 1 }
  0x59   :  { %619 = vrot.lane.b32.xlu1 %v609_v61, %s3331_s27  ;;  %617 = vrot.lane.b32.xlu0 %v608_v63, %s3331_s27  ;;  %v137_v63 = vrot.slane %v127_v51, 1 }
  0x5a   :  { %615 = vrot.lane.b32.xlu2 %v607_v6, %s3331_s27 }
  0x5b   :  { %v139_v16 = vsel %vm4913_vm0, %v137_v63, %v138_v56 }
  0x61   :  { %643 = vrot.lane.b32.xlu1 %v634_v5, %s3332_s28  ;;  %641 = vrot.lane.b32.xlu0 %v633_v10, %s3332_s28 }
  0x62   :  { %621 = vrot.lane.b32.xlu2 %v610_v20, %s3331_s27  ;;  %v217_v20 = vmul.f32 %v213_v45, %v3385_v7 }
  0x64   :  { %v227_v29 = vrot.slane %v217_v20, 2 }
  0x69   :  { %697 = vrot.lane.b32.xlu1 %v693_v18, %s3331_s27  ;;  %647 = vrot.lane.b32.xlu0 %v636_v21, %s3332_s28  ;;  %v216_v21 = vmul.f32 %v213_v45, %v3376_v0 }
  0x6a   :  { %645 = vrot.lane.b32.xlu2 %v635_v31, %s3332_s28 }
  0x6b   :  { %v226_v30 = vrot.slane %v216_v21, 2 }
  0x6d   :  { %v228_v44 = vsel %vm4912_vm1, %v226_v30, %v227_v29 }
  0x74   :  { %v108_v58 = vpop.permute.xlu2 %107 }
  0x7c   :  { %v3440_v59 = vpop.permute.xlu2 %109 }
  0x84   :  { %v3444_v62 = vpop.permute.xlu2 %164 }
  0x8b   :  { %v3447_v2 = vpop.permute.xlu1 %85  ;;  %v82_v3 = vpop.permute.xlu0 %81 }
  0x8c   :  { %v3453_v9 = vpop.permute.xlu2 %170  ;;  %v93_v33 = vadd.f32 %v82_v3, %v67_v28  ;;  %v95_v3 = vadd.f32 %v3447_v2, %v69_v54 }
  0x8e   :  { %v119_v41 = vadd.f32 %v108_v58, %v93_v33  ;;  %v224_v58 = vrot.slane %v215_v48, 2 }
  0x90   :  { %v144_v50 = vadd.f32 %v136_v43, %v119_v41  ;;  %v225_v14 = vsel %vm4912_vm1, %v223_v60, %v224_v58  ;;  %v3334_v41 = vmov 1934713408  }
  0x91   :  { %v315_v42 = vunpack.c.l.s4 %v3334_v41 }
  0x92   :  { %v176_v61 = vadd.f32 %v3444_v62, %v144_v50 }
  0x93   :  { %v88_v12 = vpop.permute.xlu1 %87  ;;  %v84_v13 = vpop.permute.xlu0 %83 }
  0x94   :  { %v3475_v26 = vpop.permute.xlu2 %200  ;;  %v96_v46 = vadd.f32 %v88_v12, %v70_v38  ;;  %v94_v57 = vadd.f32 %v84_v13, %v68_v47 }
  0x96   :  { %v120_v10 = vadd.f32 %v3440_v59, %v94_v57  ;;  %v305_v59 = vunpack.c.l.s4 %v3333_v27 }
  0x98   :  { %v145_v22 = vadd.f32 %v135_v37, %v120_v10  ;;  %v3500_v36 = vunpack.c.0.s8 %v305_v59 }
  0x9b   :  { %v114_v23 = vpop.permute.xlu1 %113  ;;  %v112_v24 = vpop.permute.xlu0 %111 }
  0x9c   :  { %v3484_v40 = vpop.permute.xlu2 %255  ;;  %v122_v55 = vadd.f32 %v114_v23, %v96_v46  ;;  %v121_v12 = vadd.f32 %v112_v24, %v95_v3  ;;  %v3505_v46 = vunpack.c.0.s8 %v315_v42 }
  0x9e   :  { %v147_v4 = vadd.f32 %v138_v56, %v122_v55  ;;  %v146_v2 = vadd.f32 %v139_v16, %v121_v12 }
  0xa0   :  { %v179_v13 = vadd.f32 %v3453_v9, %v147_v4 }
  0xa3   :  { %v169_v34 = vpop.permute.xlu1 %168  ;;  %v167_v35 = vpop.permute.xlu0 %166 }
  0xa4   :  { %v286_v5 = vpop.permute.xlu2 %285  ;;  %v178_v24 = vadd.f32 %v169_v34, %v146_v2  ;;  %v177_v28 = vadd.f32 %v167_v35, %v145_v22 }
  0xa6   :  { %v210_v37 = vadd.f32 %v3475_v26, %v178_v24 }
  0xa8   :  { %v235_v47 = vadd.f32 %v228_v44, %v210_v37 }
  0xab   :  { %v199_v52 = vpop.permute.xlu1 %198  ;;  %v197_v53 = vpop.permute.xlu0 %196 }
  0xac   :  { %v208_v6 = vadd.f32 %v197_v53, %v176_v61  ;;  %v209_v31 = vadd.f32 %v199_v52, %v177_v28  ;;  %v292_v33 = vpop.permute.xlu2 %291 }
  0xae   :  { %v233_v62 = vadd.f32 %v225_v14, %v208_v6  ;;  %v234_v45 = vadd.f32 %v224_v58, %v209_v31 }
  0xb0   :  { %v266_v49 = vadd.f32 %v3484_v40, %v234_v45 }
  0xb3   :  { %v254_v18 = vpop.permute.xlu1 %253  ;;  %v203_v19 = vpop.permute.xlu0 %202 }
  0xb4   :  { %v211_v23 = vadd.f32 %v203_v19, %v179_v13  ;;  %v265_v25 = vadd.f32 %v254_v18, %v233_v62 }
  0xb6   :  { %v236_v32 = vadd.f32 %v227_v29, %v211_v23  ;;  %v297_v9 = vadd.f32 %v286_v5, %v265_v25 }
  0xb8   :  { %v307_v35 = vperm.slane %v297_v9, %v3500_v36  ;;  %v301_v12 = vrot.slane %v297_v9, 4 }
  0xba   :  { %v3514_v53 = vperm.slane %v307_v35, %v3505_v46  ;;  %v312_v13 = vrot.slane %v307_v35, 4  ;;  %v303_v62 = vsel %vm4911_vm2, 0.0, %v301_v12 }
  0xbb   :  { %v260_v38 = vpop.permute.xlu1 %259  ;;  %v258_v39 = vpop.permute.xlu0 %257  ;;  %v311_v25 = vperm.slane %v303_v62, %v3500_v36 }
  0xbc   :  { %v268_v43 = vadd.f32 %v260_v38, %v236_v32  ;;  %v267_v50 = vadd.f32 %v258_v39, %v235_v47  ;;  %v332_v40 = vrot.slane %v3514_v53, 4  ;;  %v313_v22 = vsel %vm4911_vm2, 0.0, %v312_v13  ;;  %v3591_v13 = vpop.permute.xlu2 %615 }
  0xbd   :  { %v321_v27 = vperm.slane %v313_v22, %v3505_v46  ;;  %v327_v24 = vperm.slane %v311_v25, %v3505_v46 }
  0xbe   :  { %v300_v34 = vadd.f32 %v292_v33, %v268_v43  ;;  %v333_v5 = vsel %vm4911_vm2, 0.0, %v332_v40 }
  0xbf   :  { %v336_v45 = vrot.slane %v327_v24, 4 }
  0xc0   :  { %v3508_v48 = vperm.slane %v300_v34, %v3500_v36  ;;  %v418_v61 = vrot.slane %v300_v34, 4 }
  0xc1   :  { %v337_v47 = vsel %vm4911_vm2, 0.0, %v336_v45 }
  0xc2   :  { %v413_v51 = vperm.slane %v3508_v48, %v3505_v46  ;;  %v419_v10 = vsel %vm4911_vm2, 0.0, %v418_v61  ;;  %v408_v9 = vrot.slane %v3508_v48, 4 }
  0xc3   :  { %v290_v26 = vpop.permute.xlu1 %289  ;;  %v288_v52 = vpop.permute.xlu0 %287  ;;  %v423_v19 = vperm.slane %v419_v10, %v3505_v46  ;;  %v714_v10 = vstv %s3185_s23  ;;  %s3200_s23 = sld [smem:[#allocation6 + $0x1a]] }
  0xc4   :  { %v299_v54 = vadd.f32 %v290_v26, %v267_v50  ;;  %v298_v55 = vadd.f32 %v288_v52, %v266_v49  ;;  %490 = vrot.lane.b32.xlu0 %v413_v51, %s3335_s12  ;;  %v424_v29 = vrot.slane %v413_v51, 4  ;;  %v409_v41 = vsel %vm4911_vm2, 0.0, %v408_v9 }
  0xc5   :  { %v417_v43 = vperm.slane %v409_v41, %v3505_v46  ;;  %v428_v34 = vrot.slane %v423_v19, 4  ;;  %v322_v51 = vrot.slane %v311_v25, 4  ;;  %v334_v52 = vrot.slane %v321_v27, 4 }
  0xc6   :  { %v343_v56 = vperm.slane %v298_v55, %v3500_v36  ;;  %v354_v57 = vrot.slane %v298_v55, 4  ;;  %v371_v58 = vperm.slane %v299_v54, %v3500_v36  ;;  %v366_v14 = vrot.slane %v299_v54, 4 }
  0xc7   :  { %v425_v32 = vsel %vm4911_vm2, 0.0, %v424_v29  ;;  %v429_v49 = vsel %vm4911_vm2, 0.0, %v428_v34  ;;  %v426_v54 = vrot.slane %v417_v43, 4  ;;  %v718_v25 = vmul.f32 %v714_v10, %v3385_v7 }
  0xc8   :  { %v349_v60 = vperm.slane %v343_v56, %v3505_v46  ;;  %v355_v63 = vsel %vm4911_vm2, 0.0, %v354_v57  ;;  %v376_v4 = vrot.slane %v371_v58, 4  ;;  %v3526_v6 = vperm.slane %v371_v58, %v3505_v46 }
  0xc9   :  { %v359_v3 = vperm.slane %v355_v63, %v3505_v46  ;;  %v367_v21 = vsel %vm4911_vm2, 0.0, %v366_v14  ;;  %v344_v28 = vrot.slane %v343_v56, 4  ;;  %v323_v56 = vsel %vm4911_vm2, 0.0, %v322_v51 }
  0xca   :  { %488 = vrot.lane.b32.xlu2 %v349_v60, %s3335_s12  ;;  %v396_v16 = vrot.slane %v3526_v6, 4  ;;  %v377_v18 = vsel %vm4911_vm2, 0.0, %v376_v4  ;;  %v375_v23 = vperm.slane %v367_v21, %v3500_v36  ;;  %v360_v30 = vrot.slane %v349_v60, 4 }
  0xcb   :  { %520 = vrot.lane.b32.xlu1 %v359_v3, %s3336_s13  ;;  %v385_v20 = vperm.slane %v377_v18, %v3505_v46  ;;  %v345_v31 = vsel %vm4911_vm2, 0.0, %v344_v28  ;;  %v364_v42 = vrot.slane %v359_v3, 4  ;;  %v335_v57 = vsel %vm4911_vm2, 0.0, %v334_v52 }
  0xcc   :  { %432 = vrot.lane.b32.xlu0 %v333_v5, %s3337_s14  ;;  %v397_v2 = vsel %vm4911_vm2, 0.0, %v396_v16  ;;  %v391_v59 = vperm.slane %v375_v23, %v3505_v46  ;;  %v353_v33 = vperm.slane %v345_v31, %v3505_v46  ;;  %v361_v38 = vsel %vm4911_vm2, 0.0, %v360_v30  ;;  %v3611_v31 = vpop.permute.xlu0 %617 }
  0xcd   :  { %v398_v39 = vrot.slane %v385_v20, 4  ;;  %v365_v44 = vsel %vm4911_vm2, 0.0, %v364_v42  ;;  %v386_v48 = vrot.slane %v375_v23, 4  ;;  %v427_v58 = vsel %vm4911_vm2, 0.0, %v426_v54 }
  0xce   :  { %v400_v35 = vrot.slane %v391_v59, 4  ;;  %v331_v40 = vperm.slane %v323_v56, %v3505_v46  ;;  %v362_v60 = vrot.slane %v353_v33, 4  ;;  %v685_v3 = vmul.f32 %v3457_v11, %v3376_v0 }
  0xcf   :  { %v399_v37 = vsel %vm4911_vm2, 0.0, %v398_v39  ;;  %v387_v26 = vsel %vm4911_vm2, 0.0, %v386_v48  ;;  %v686_v4 = vmul.f32 %v3457_v11, %v3385_v7  ;;  %v715_v18 = vmul.f32 %v714_v10, %v3378_v1 }
  0xd0   :  { %v401_v50 = vsel %vm4911_vm2, 0.0, %v400_v35  ;;  %v395_v55 = vperm.slane %v387_v26, %v3505_v46  ;;  %v338_v61 = vrot.slane %v331_v40, 4  ;;  %v363_v63 = vsel %vm4911_vm2, 0.0, %v362_v60 }
  0xd1   :  { %v694_v12 = vrot.slane %v685_v3, 1  ;;  %v695_v14 = vrot.slane %v686_v4, 1  ;;  %v723_v62 = vrot.slane %v715_v18, 1  ;;  %v717_v23 = vmul.f32 %v714_v10, %v3376_v0 }
  0xd2   :  { %522 = vrot.lane.b32.xlu2 %v423_v19, %s3336_s13  ;;  %v339_v5 = vsel %vm4911_vm2, 0.0, %v338_v61  ;;  %v402_v16 = vrot.slane %v395_v55, 4  ;;  %v716_v19 = vmul.f32 %v714_v10, %v3387_v8  ;;  %v802_v42 = vstv %s3188_s0 }
  0xd3   :  { %434 = vrot.lane.b32.xlu1 %v397_v2, %s3337_s14  ;;  %v696_v11 = vsel %vm4913_vm0, %v694_v12, %v695_v14  ;;  %v770_v2 = vstv %s3187_s25  ;;  %v805_v45 = vmul.f32 %v802_v42, %v3376_v0  ;;  %v806_v34 = vmul.f32 %v802_v42, %v3385_v7  ;;  %s3204_s25 = sld [smem:[#allocation6 + $0x1b]] }
  0xd4   :  { %442 = vrot.lane.b32.xlu0 %v385_v20, %s3338_s15  ;;  %v403_v20 = vsel %vm4911_vm2, 0.0, %v402_v16  ;;  %v724_v21 = vrot.slane %v716_v19, 1  ;;  %v772_v15 = vmul.f32 %v770_v2, %v3387_v8  ;;  %v773_v30 = vmul.f32 %v770_v2, %v3376_v0  ;;  %v3626_v35 = vpop.permute.xlu0 %641 }
  0xd5   :  { %v774_v9 = vmul.f32 %v770_v2, %v3385_v7  ;;  %v815_v51 = vrot.slane %v806_v34, 2 }
  0xd6   :  { %v725_v22 = vsel %vm4913_vm0, %v723_v62, %v724_v21  ;;  %v780_v29 = vrot.slane %v772_v15, 2 }
  0xd7   :  { %v783_v41 = vrot.slane %v774_v9, 2 }
  0xda   :  { %440 = vrot.lane.b32.xlu2 %v321_v27, %s3338_s15  ;;  %v771_v27 = vmul.f32 %v770_v2, %v3378_v1 }
  0xdb   :  { %458 = vrot.lane.b32.xlu1 %v391_v59, %s3339_s16  ;;  %v726_v59 = vrot.slane %v717_v23, 1 }
  0xdc   :  { %456 = vrot.lane.b32.xlu0 %v327_v24, %s3339_s16  ;;  %v727_v24 = vrot.slane %v718_v25, 1  ;;  %v779_v28 = vrot.slane %v771_v27, 2 }
  0xe2   :  { %498 = vrot.lane.b32.xlu2 %v425_v32, %s3332_s28  ;;  %v728_v32 = vsel %vm4913_vm0, %v726_v59, %v727_v24 }
  0xe3   :  { %496 = vrot.lane.b32.xlu1 %v361_v38, %s3332_s28  ;;  %v782_v38 = vrot.slane %v773_v30, 2 }
  0xe4   :  { %504 = vrot.lane.b32.xlu0 %v353_v33, %s3340_s17  ;;  %v781_v33 = vsel %vm4912_vm1, %v779_v28, %v780_v29 }
  0xea   :  { %450 = vrot.lane.b32.xlu2 %v399_v37, %s3341_s18  ;;  %v784_v37 = vsel %vm4912_vm1, %v782_v38, %v783_v41 }
  0xeb   :  { %506 = vrot.lane.b32.xlu1 %v417_v43, %s3340_s17  ;;  %v803_v43 = vmul.f32 %v802_v42, %v3378_v1 }
  0xec   :  { %528 = vrot.lane.b32.xlu0 %v365_v44, %s3342_s19  ;;  %v804_v44 = vmul.f32 %v802_v42, %v3387_v8 }
  0xed   :  { %v811_v48 = vrot.slane %v803_v43, 2 }
  0xf2   :  { %464 = vrot.lane.b32.xlu2 %v337_v47, %s3343_s20  ;;  %v3629_v47 = vpop.permute.xlu1 %619 }
  0xf3   :  { %530 = vrot.lane.b32.xlu1 %v429_v49, %s3342_s19  ;;  %v812_v49 = vrot.slane %v804_v44, 2 }
  0xf4   :  { %466 = vrot.lane.b32.xlu0 %v401_v50, %s3343_s20  ;;  %v814_v50 = vrot.slane %v805_v45, 2 }
  0xf5   :  { %v813_v52 = vsel %vm4912_vm1, %v811_v48, %v812_v49 }
  0xf6   :  { %v816_v54 = vsel %vm4912_vm1, %v814_v50, %v815_v51 }
  0xfa   :  { %474 = vrot.lane.b32.xlu2 %v395_v55, %s3344_s21  ;;  %v3640_v55 = vpop.permute.xlu0 %647  ;;  %v3642_v56 = vpop.permute.xlu1 %643 }
  0xfb   :  { %448 = vrot.lane.b32.xlu1 %v335_v57, %s3341_s18 }
  0xfc   :  { %514 = vrot.lane.b32.xlu0 %v427_v58, %s3345_s22 }
 0x102   :  { %512 = vrot.lane.b32.xlu2 %v363_v63, %s3345_s22  ;;  %v3647_v58 = vpop.permute.xlu1 %697 }
 0x103   :  { %472 = vrot.lane.b32.xlu1 %v331_v40, %s3344_s21 }
 0x104   :  { %480 = vrot.lane.b32.xlu0 %v339_v5, %s3346_s24 }
 0x10a   :  { %699 = vrot.lane.b32.xlu2 %v692_v17, %s3331_s27  ;;  %v3606_v17 = vpop.permute.xlu2 %621 }
 0x10b   :  { %482 = vrot.lane.b32.xlu1 %v403_v20, %s3346_s24 }
 0x10c   :  { %701 = vrot.lane.b32.xlu0 %v696_v11, %s3331_s27 }
 0x112   :  { %729 = vrot.lane.b32.xlu2 %v725_v22, %s3332_s28  ;;  %v3619_v39 = vpop.permute.xlu2 %645 }
 0x113   :  { %703 = vrot.lane.b32.xlu1 %v695_v14, %s3331_s27 }
 0x114   :  { %731 = vrot.lane.b32.xlu0 %v724_v21, %s3332_s28 }
 0x11a   :  { %735 = vrot.lane.b32.xlu2 %v727_v24, %s3332_s28 }
 0x11b   :  { %733 = vrot.lane.b32.xlu1 %v728_v32, %s3332_s28 }
 0x11c   :  { %785 = vrot.lane.b32.xlu0 %v781_v33, %s3331_s27  ;;  %v584_v33 = vlaneseq }
 0x122   :  { %789 = vrot.lane.b32.xlu2 %v784_v37, %s3331_s27 }
 0x123   :  { %787 = vrot.lane.b32.xlu1 %v780_v29, %s3331_s27 }
 0x124   :  { %791 = vrot.lane.b32.xlu0 %v783_v41, %s3331_s27  ;;  %v3633_v26 = vpop.permute.xlu2 %488 }
 0x12a   :  { %819 = vrot.lane.b32.xlu2 %v812_v49, %s3332_s28 }
 0x12b   :  { %817 = vrot.lane.b32.xlu1 %v813_v52, %s3332_s28 }
 0x12c   :  { %821 = vrot.lane.b32.xlu0 %v816_v54, %s3332_s28  ;;  %v3644_v57 = vpop.permute.xlu2 %522 }
 0x133   :  { %823 = vrot.lane.b32.xlu1 %v815_v51, %s3332_s28 }
 0x134   :  { %v441_v60 = vpop.permute.xlu2 %440 }
 0x136   :  { %v3649_v40 = vpop.permute.xlu0 %490 }
 0x13c   :  { %v3651_v3 = vpop.permute.xlu2 %498 }
 0x13d   :  { %v521_v61 = vpop.permute.xlu1 %520 }
 0x13e   :  { %v433_v63 = vpop.permute.xlu0 %432 }
 0x13f   :  { %v535_v22 = vsel %vm534_vm3, %v3514_v53, %v433_v63 }
 0x140   :  { %v538_v59 = vsel %vm4909_vm4, %v535_v22, %v441_v60 }
 0x144   :  { %v451_v14 = vpop.permute.xlu2 %450 }
 0x145   :  { %v435_v4 = vpop.permute.xlu1 %434 }
 0x146   :  { %v443_v5 = vpop.permute.xlu0 %442  ;;  %v536_v29 = vsel %vm534_vm3, %v3526_v6, %v435_v4 }
 0x147   :  { %v539_v32 = vsel %vm4909_vm4, %v536_v29, %v443_v5  ;;  %vm4914_vm4 = vcmask 1040384   ;;  %v3692_v5 = vstv %s3180_s1  ;;  %s3219_s1 = sld [smem:[#allocation6 + $0x27]] }
 0x148   :  { %v542_v45 = vsel %vm540_vm7, %v539_v32, %v451_v14 }
 0x14c   :  { %v465_v19 = vpop.permute.xlu2 %464 }
 0x14d   :  { %v459_v10 = vpop.permute.xlu1 %458 }
 0x14e   :  { %v457_v12 = vpop.permute.xlu0 %456  ;;  %v545_v50 = vsel %vm543_vm9, %v542_v45, %v459_v10 }
 0x154   :  { %v475_v62 = vpop.permute.xlu2 %474 }
 0x155   :  { %v497_v16 = vpop.permute.xlu1 %496 }
 0x156   :  { %v505_v18 = vpop.permute.xlu0 %504 }
 0x157   :  { %v562_v15 = vsel %vm4910_vm5, %v497_v16, %v505_v18  ;;  %v599_v18 = vmul.f32 %v3692_v5, %v3376_v0 }
 0x15c   :  { %v513_v23 = vpop.permute.xlu2 %512 }
 0x15d   :  { %v507_v11 = vpop.permute.xlu1 %506  ;;  %v565_v24 = vsel %vm564_vm6, %v562_v15, %v513_v23 }
 0x15e   :  { %v529_v20 = vpop.permute.xlu0 %528  ;;  %v568_v53 = vsel %vm567_vm8, %v565_v24, %v521_v61  ;;  %v563_v9 = vsel %vm4910_vm5, %v3651_v3, %v507_v11  ;;  %vm3672_vm5 = vcmp.lt.s32.totalorder %v584_v33, 196 }
 0x15f   :  { %v571_v38 = vsel %vm570_vm10, %v568_v53, %v529_v20  ;;  %v3710_v20 = vstv %s3179_s26  ;;  %s3203_s26 = sld [smem:[#allocation7 + $0x3]] }
 0x160   :  { %v577_v34 = vrot.slane %v571_v38, 7 }
 0x164   :  { %v3694_v10 = vpop.permute.xlu2 %699 }
 0x165   :  { %v531_v21 = vpop.permute.xlu1 %530 }
 0x166   :  { %v467_v2 = vpop.permute.xlu0 %466 }
 0x167   :  { %v548_v54 = vsel %vm546_vm11, %v545_v50, %v467_v2 }
 0x168   :  { %v551_v61 = vsel %vm549_vm12, %v548_v54, %v475_v62  ;;  %v603_v62 = vadd.f32 %v599_v18, %v3710_v20 }
 0x16d   :  { %v449_v25 = vpop.permute.xlu1 %448 }
 0x16e   :  { %v515_v27 = vpop.permute.xlu0 %514  ;;  %v541_v28 = vsel %vm540_vm7, %v538_v59, %v449_v25  ;;  %v629_v59 = vadd.f32 %v3629_v47, %v603_v62 }
 0x16f   :  { %v544_v30 = vsel %vm543_vm9, %v541_v28, %v457_v12  ;;  %v566_v37 = vsel %vm564_vm6, %v563_v9, %v515_v27  ;;  %v730_v28 = vpop.permute.xlu2 %729  ;;  %v746_v9 = vstv %s3186_s6  ;;  %s3206_s6 = sld [smem:[#allocation6 + $0x1d]] }
 0x170   :  { %v547_v41 = vsel %vm546_vm11, %v544_v30, %v465_v19  ;;  %v569_v51 = vsel %vm567_vm8, %v566_v37, %v3644_v57  ;;  %v655_v32 = vadd.f32 %v3619_v39, %v629_v59  ;;  %v3741_v37 = vmul.f32 %v746_v9, %v3387_v8 }
 0x171   :  { %v3744_v39 = vmul.f32 %v746_v9, %v3385_v7 }
 0x172   :  { %v756_v50 = vrot.slane %v3741_v37, 2 }
 0x175   :  { %v473_v6 = vpop.permute.xlu1 %472 }
 0x176   :  { %v481_v42 = vpop.permute.xlu0 %480  ;;  %v550_v43 = vsel %vm549_vm12, %v547_v41, %v473_v6  ;;  %v749_v6 = vmul.f32 %v746_v9, %v3376_v0 }
 0x177   :  { %v553_v44 = vsel %vm552_vm13, %v550_v43, %v481_v42  ;;  %v747_v42 = vmul.f32 %v746_v9, %v3378_v1 }
 0x178   :  { %v556_v49 = vsel %vm555_vm14, %v553_v44, %v3633_v26  ;;  %v572_v26 = vsel %vm570_vm10, %v569_v51, %v531_v21  ;;  %v658_v21 = vstv %s3183_s30  ;;  %v3746_v44 = vpop.permute.xlu2 %735  ;;  %v758_v45 = vrot.slane %v749_v6, 2  ;;  %s3191_s30 = sld [smem:[#allocation7 + $0x2]] }
 0x179   :  { %v559_v52 = vsel %vm4915_vm15, %v556_v49, %v497_v16  ;;  %v578_v12 = vrot.slane %v572_v26, 7  ;;  %v597_v16 = vmul.f32 %v3692_v5, %v3378_v1  ;;  %v659_v2 = vmul.f32 %v658_v21, %v3378_v1 }
 0x17a   :  { %v580_v60 = vsel %vm4914_vm4, %v559_v52, %v577_v34  ;;  %v3717_v22 = vmul.f32 %v658_v21, %v3385_v7  ;;  %v3724_v27 = vmul.f32 %v658_v21, %v3387_v8  ;;  %v755_v49 = vrot.slane %v747_v42, 2 }
 0x17b   :  { %588 = vst.msk [vmem:[%s4908_s3] ss:$8 sm:$0x3] %vm3672_vm5, %v580_v60  ;;  %v667_v24 = vrot.slane %v659_v2, 1  ;;  %v759_v51 = vrot.slane %v3744_v39, 2 }
 0x17c   :  { %v671_v53 = vrot.slane %v3717_v22, 1  ;;  %v668_v30 = vrot.slane %v3724_v27, 1  ;;  %v757_v26 = vsel %vm4912_vm1, %v755_v49, %v756_v50 }
 0x17d   :  { %v483_v63 = vpop.permute.xlu1 %482  ;;  %v760_v52 = vsel %vm4912_vm1, %v758_v45, %v759_v51 }
 0x17e   :  { %v702_v57 = vpop.permute.xlu0 %701  ;;  %v554_v4 = vsel %vm552_vm13, %v551_v61, %v483_v63  ;;  %v669_v38 = vsel %vm4913_vm0, %v667_v24, %v668_v30 }
 0x17f   :  { %v557_v14 = vsel %vm555_vm14, %v554_v4, %v3649_v40  ;;  %v601_v40 = vadd.f32 %v597_v16, %v3710_v20 }
 0x180   :  { %v560_v19 = vsel %vm4915_vm15, %v557_v14, %v3651_v3  ;;  %v661_v3 = vmul.f32 %v658_v21, %v3376_v0 }
 0x181   :  { %v581_v11 = vsel %vm4914_vm4, %v560_v19, %v578_v12  ;;  %v627_v15 = vadd.f32 %v3591_v13, %v601_v40  ;;  %v598_v19 = vmul.f32 %v3692_v5, %v3387_v8 }
 0x182   :  { %3178 = vst.msk [vmem:[%s4908_s3 + $0x10] ss:$8 sm:$0x3] %vm3672_vm5, %v581_v11  ;;  %v670_v29 = vrot.slane %v661_v3, 1  ;;  %v3763_v11 = vld [vmem:[#allocation2 + $0x18] sm:$0xff] }
 0x183   :  { %v653_v33 = vadd.f32 %v3626_v35, %v627_v15  ;;  %v600_v40 = vmul.f32 %v3763_v11, %v3692_v5  ;;  %v602_v15 = vadd.f32 %v598_v19, %v3710_v20 }
 0x184   :  { %v672_v13 = vsel %vm4913_vm0, %v670_v29, %v671_v53 }
 0x185   :  { %v3719_v23 = vpop.permute.xlu1 %703  ;;  %v677_v35 = vadd.f32 %v669_v38, %v653_v33  ;;  %v679_v43 = vadd.f32 %v672_v13, %v655_v32  ;;  %v604_v8 = vadd.f32 %v600_v40, %v3710_v20  ;;  %v628_v13 = vadd.f32 %v3611_v31, %v602_v15 }
 0x186   :  { %v3721_v25 = vpop.permute.xlu0 %731 }
 0x187   :  { %v711_v34 = vadd.f32 %v702_v57, %v679_v43  ;;  %v709_v0 = vadd.f32 %v3647_v58, %v677_v35  ;;  %v790_v57 = vpop.permute.xlu2 %789  ;;  %v630_v6 = vadd.f32 %v3606_v17, %v604_v8  ;;  %v654_v43 = vadd.f32 %v3642_v56, %v628_v13 }
 0x189   :  { %v741_v60 = vadd.f32 %v730_v28, %v709_v0  ;;  %v678_v17 = vadd.f32 %v668_v30, %v654_v43 }
 0x18b   :  { %v765_v63 = vadd.f32 %v757_v26, %v741_v60 }
 0x18d   :  { %v734_v47 = vpop.permute.xlu1 %733 }
 0x18e   :  { %v786_v41 = vpop.permute.xlu0 %785  ;;  %v743_v1 = vadd.f32 %v734_v47, %v711_v34  ;;  %v656_v34 = vadd.f32 %v3640_v55, %v630_v6  ;;  %v710_v55 = vadd.f32 %v3694_v10, %v678_v17  ;;  %v3859_v17 = vld [vmem:[#allocation2] sm:$0xff] }
 0x18f   :  { %v797_v4 = vadd.f32 %v786_v41, %v765_v63 }
 0x190   :  { %v767_v61 = vadd.f32 %v760_v52, %v743_v1  ;;  %v680_v56 = vadd.f32 %v671_v53, %v656_v34  ;;  %v742_v30 = vadd.f32 %v3721_v25, %v710_v55 }
 0x192   :  { %v799_v12 = vadd.f32 %v790_v57, %v767_v61  ;;  %v712_v60 = vadd.f32 %v3719_v23, %v680_v56  ;;  %v766_v57 = vadd.f32 %v756_v50, %v742_v30  ;;  %v3871_v30 = vld [vmem:[#allocation2 + $0x8] sm:$0xff] }
 0x194   :  { %v744_v61 = vadd.f32 %v3746_v44, %v712_v60  ;;  %v820_v44 = vpop.permute.xlu2 %819 }
 0x195   :  { %v3754_v7 = vpop.permute.xlu1 %787 }
 0x196   :  { %v3756_v54 = vpop.permute.xlu0 %791  ;;  %v798_v23 = vadd.f32 %v3754_v7, %v766_v57  ;;  %v768_v25 = vadd.f32 %v759_v51, %v744_v61 }
 0x198   :  { %v800_v50 = vadd.f32 %v3756_v54, %v768_v25 }
 0x19d   :  { %v818_v58 = vpop.permute.xlu1 %817 }
 0x19e   :  { %v822_v14 = vpop.permute.xlu0 %821  ;;  %v829_v16 = vadd.f32 %v818_v58, %v797_v4 }
 0x19f   :  { %v831_v18 = vadd.f32 %v822_v14, %v799_v12  ;;  %v830_v14 = vadd.f32 %v820_v44, %v798_v23 }
 0x1a0   :  { %v838_v62 = vperm.slane %v829_v16, %v3500_v36  ;;  %v833_v59 = vrot.slane %v829_v16, 4 }
 0x1a1   :  { %v902_v21 = vperm.slane %v831_v18, %v3500_v36  ;;  %v897_v31 = vrot.slane %v831_v18, 4  ;;  %v874_v39 = vperm.slane %v830_v14, %v3500_v36  ;;  %v885_v6 = vrot.slane %v830_v14, 4 }
 0x1a2   :  { %v843_v2 = vrot.slane %v838_v62, 4  ;;  %v3771_v24 = vperm.slane %v838_v62, %v3505_v46  ;;  %v834_v47 = vsel %vm4911_vm2, 0.0, %v833_v59 }
 0x1a3   :  { %v907_v3 = vrot.slane %v902_v21, 4  ;;  %v3774_v28 = vperm.slane %v902_v21, %v3505_v46  ;;  %v842_v35 = vperm.slane %v834_v47, %v3500_v36  ;;  %v898_v1 = vsel %vm4911_vm2, 0.0, %v897_v31 }
 0x1a4   :  { %v844_v29 = vsel %vm4911_vm2, 0.0, %v843_v2  ;;  %v863_v32 = vrot.slane %v3771_v24, 4  ;;  %v906_v27 = vperm.slane %v898_v1, %v3500_v36  ;;  %v880_v62 = vperm.slane %v874_v39, %v3505_v46 }
 0x1a5   :  { %v908_v5 = vsel %vm4911_vm2, 0.0, %v907_v3  ;;  %v852_v33 = vperm.slane %v844_v29, %v3505_v46  ;;  %v927_v9 = vrot.slane %v3774_v28, 4  ;;  %v858_v0 = vperm.slane %v842_v35, %v3505_v46  ;;  %v824_v12 = vpop.permute.xlu1 %823 }
 0x1a6   :  { %v916_v38 = vperm.slane %v908_v5, %v3505_v46  ;;  %v864_v41 = vsel %vm4911_vm2, 0.0, %v863_v32  ;;  %v922_v22 = vperm.slane %v906_v27, %v3505_v46  ;;  %v917_v53 = vrot.slane %v906_v27, 4 }
 0x1a7   :  { %971 = vrot.lane.b32.xlu1 %v852_v33, %s3338_s15  ;;  %v928_v20 = vsel %vm4911_vm2, 0.0, %v927_v9  ;;  %963 = vrot.lane.b32.xlu2 %v864_v41, %s3337_s14  ;;  %v865_v45 = vrot.slane %v852_v33, 4  ;;  %v867_v26 = vrot.slane %v858_v0, 4  ;;  %v853_v10 = vrot.slane %v842_v35, 4 }
 0x1a8   :  { %965 = vrot.lane.b32.xlu0 %v928_v20, %s3337_s14  ;;  %v929_v42 = vrot.slane %v916_v38, 4  ;;  %v918_v4 = vsel %vm4911_vm2, 0.0, %v917_v53  ;;  %v931_v58 = vrot.slane %v922_v22, 4  ;;  %v832_v18 = vadd.f32 %v824_v12, %v800_v50 }
 0x1a9   :  { %v866_v52 = vsel %vm4911_vm2, 0.0, %v865_v45  ;;  %v868_v63 = vsel %vm4911_vm2, 0.0, %v867_v26  ;;  %v854_v37 = vsel %vm4911_vm2, 0.0, %v853_v10  ;;  %v926_v16 = vperm.slane %v918_v4, %v3505_v46  ;;  %v3868_v26 = vld [vmem:[#allocation2 + $0x10] sm:$0xff] }
 0x1aa   :  { %v930_v49 = vsel %vm4911_vm2, 0.0, %v929_v42  ;;  %v862_v19 = vperm.slane %v854_v37, %v3505_v46  ;;  %v932_v7 = vsel %vm4911_vm2, 0.0, %v931_v58  ;;  %v938_v51 = vperm.slane %v832_v18, %v3500_v36 }
 0x1ab   :  { %v933_v54 = vrot.slane %v926_v16, 4  ;;  %v875_v2 = vrot.slane %v874_v39, 4  ;;  %v891_v8 = vrot.slane %v880_v62, 4  ;;  %v949_v47 = vrot.slane %v832_v18, 4 }
 0x1ac   :  { %v869_v40 = vrot.slane %v862_v19, 4  ;;  %v944_v21 = vperm.slane %v938_v51, %v3505_v46  ;;  %v939_v33 = vrot.slane %v938_v51, 4  ;;  %v886_v43 = vsel %vm4911_vm2, 0.0, %v885_v6 }
 0x1ad   :  { %v934_v15 = vsel %vm4911_vm2, 0.0, %v933_v54  ;;  %v876_v29 = vsel %vm4911_vm2, 0.0, %v875_v2  ;;  %v892_v9 = vsel %vm4911_vm2, 0.0, %v891_v8  ;;  %v950_v42 = vsel %vm4911_vm2, 0.0, %v949_v47 }
 0x1ae   :  { %v870_v3 = vsel %vm4911_vm2, 0.0, %v869_v40  ;;  %v955_v59 = vrot.slane %v944_v21, 4  ;;  %v884_v32 = vperm.slane %v876_v29, %v3505_v46  ;;  %v940_v13 = vsel %vm4911_vm2, 0.0, %v939_v33 }
 0x1af   :  { %981 = vrot.lane.b32.xlu1 %v930_v49, %s3341_s18  ;;  %973 = vrot.lane.b32.xlu2 %v916_v38, %s3338_s15  ;;  %v948_v20 = vperm.slane %v940_v13, %v3505_v46  ;;  %v954_v31 = vperm.slane %v950_v42, %v3505_v46  ;;  %v890_v45 = vperm.slane %v886_v43, %v3505_v46  ;;  %v1120_v49 = vstv %s3193_s7  ;;  %s3208_s7 = sld [smem:[#allocation6 + $0x1f]] }
 0x1b0   :  { %979 = vrot.lane.b32.xlu0 %v866_v52, %s3341_s18  ;;  %v956_v5 = vsel %vm4911_vm2, 0.0, %v955_v59  ;;  %v893_v38 = vrot.slane %v884_v32, 4  ;;  %v1121_v1 = vmul.f32 %v3859_v17, %v1120_v49  ;;  %v1124_v60 = vmul.f32 %v3763_v11, %v1120_v49 }
 0x1b1   :  { %v957_v35 = vrot.slane %v948_v20, 4  ;;  %v959_v52 = vrot.slane %v954_v31, 4  ;;  %v1123_v27 = vmul.f32 %v3868_v26, %v1120_v49  ;;  %v1122_v61 = vmul.f32 %v3871_v30, %v1120_v49 }
 0x1b2   :  { %v894_v41 = vsel %vm4911_vm2, 0.0, %v893_v38  ;;  %v1228_v12 = vstv %s3197_s10  ;;  %v1284_v59 = vstv %s3199_s11  ;;  %s3212_s10 = sld [smem:[#allocation6 + $0x23]] }
 0x1b3   :  { %v958_v34 = vsel %vm4911_vm2, 0.0, %v957_v35  ;;  %v960_v55 = vsel %vm4911_vm2, 0.0, %v959_v52  ;;  %v1229_v58 = vmul.f32 %v3859_v17, %v1228_v12  ;;  %v1230_v37 = vmul.f32 %v3871_v30, %v1228_v12  ;;  %s3227_s11 = sld [smem:[#allocation7 + $0x5]] }
 0x1b4   :  { %v1287_v29 = vmul.f32 %v3868_v26, %v1284_v59  ;;  %v1285_v33 = vmul.f32 %v3859_v17, %v1284_v59 }
 0x1b6   :  { %v1296_v38 = vrot.slane %v1287_v29, 2  ;;  %v1293_v47 = vrot.slane %v1285_v33, 2 }
 0x1b7   :  { %995 = vrot.lane.b32.xlu1 %v868_v63, %s3343_s20  ;;  %987 = vrot.lane.b32.xlu2 %v858_v0, %s3339_s16  ;;  %v895_v0 = vrot.slane %v890_v45, 4  ;;  %v1146_v63 = vstv %s3194_s8  ;;  %s3209_s8 = sld [smem:[#allocation6 + $0x20]] }
 0x1b8   :  { %989 = vrot.lane.b32.xlu0 %v922_v22, %s3339_s16  ;;  %v1196_v22 = vstv %s3196_s9  ;;  %v1149_v53 = vmul.f32 %v3868_v26, %v1146_v63  ;;  %v1148_v57 = vmul.f32 %v3871_v30, %v1146_v63  ;;  %v1147_v10 = vmul.f32 %v3859_v17, %v1146_v63  ;;  %s3211_s9 = sld [smem:[#allocation6 + $0x22]] }
 0x1b9   :  { %v896_v56 = vsel %vm4911_vm2, 0.0, %v895_v0  ;;  %v1198_v23 = vmul.f32 %v3871_v30, %v1196_v22  ;;  %v1197_v25 = vmul.f32 %v3859_v17, %v1196_v22  ;;  %v1150_v50 = vmul.f32 %v3763_v11, %v1146_v63 }
 0x1ba   :  { %v1200_v18 = vmul.f32 %v3763_v11, %v1196_v22  ;;  %vm4918_vm2 = vcmask 228352  }
 0x1bb   :  { %v1206_v44 = vrot.slane %v1198_v23, 1  ;;  %v1205_v4 = vrot.slane %v1197_v25, 1 }
 0x1bc   :  { %v1209_v40 = vrot.slane %v1200_v18, 1 }
 0x1bd   :  { %v1207_v14 = vsel %vm4913_vm0, %v1205_v4, %v1206_v44 }
 0x1bf   :  { %1005 = vrot.lane.b32.xlu1 %v926_v16, %s3344_s21  ;;  %997 = vrot.lane.b32.xlu2 %v932_v7, %s3343_s20  ;;  %v1199_v16 = vmul.f32 %v3868_v26, %v1196_v22  ;;  %v1238_v7 = vrot.slane %v1230_v37, 1 }
 0x1c0   :  { %1003 = vrot.lane.b32.xlu0 %v862_v19, %s3344_s21  ;;  %v1237_v19 = vrot.slane %v1229_v58, 1 }
 0x1c1   :  { %v1208_v39 = vrot.slane %v1199_v16, 1 }
 0x1c2   :  { %v1239_v54 = vsel %vm4913_vm0, %v1237_v19, %v1238_v7 }
 0x1c3   :  { %v1210_v2 = vsel %vm4913_vm0, %v1208_v39, %v1209_v40 }
 0x1c7   :  { %1019 = vrot.lane.b32.xlu1 %v880_v62, %s3335_s12  ;;  %1011 = vrot.lane.b32.xlu2 %v870_v3, %s3346_s24  ;;  %v1232_v62 = vmul.f32 %v3763_v11, %v1228_v12 }
 0x1c8   :  { %1013 = vrot.lane.b32.xlu0 %v934_v15, %s3346_s24 }
 0x1c9   :  { %v1241_v3 = vrot.slane %v1232_v62, 1 }
 0x1cf   :  { %1029 = vrot.lane.b32.xlu1 %v956_v5, %s3332_s28  ;;  %1021 = vrot.lane.b32.xlu2 %v944_v21, %s3335_s12  ;;  %v1231_v21 = vmul.f32 %v3868_v26, %v1228_v12  ;;  %v1288_v5 = vmul.f32 %v3763_v11, %v1284_v59 }
 0x1d0   :  { %1027 = vrot.lane.b32.xlu0 %v892_v9, %s3332_s28  ;;  %v1286_v9 = vmul.f32 %v3871_v30, %v1284_v59 }
 0x1d1   :  { %v1240_v15 = vrot.slane %v1231_v21, 1  ;;  %v1297_v13 = vrot.slane %v1288_v5, 2 }
 0x1d2   :  { %v1294_v6 = vrot.slane %v1286_v9, 2 }
 0x1d3   :  { %v1298_v42 = vsel %vm4912_vm1, %v1296_v38, %v1297_v13 }
 0x1d7   :  { %1043 = vrot.lane.b32.xlu1 %v894_v41, %s3345_s22  ;;  %1035 = vrot.lane.b32.xlu2 %v884_v32, %s3340_s17  ;;  %v1242_v32 = vsel %vm4913_vm0, %v1240_v15, %v1241_v3  ;;  %vm4920_vm0 = vmmov %vm4918_vm2 }
 0x1d8   :  { %1037 = vrot.lane.b32.xlu0 %v948_v20, %s3340_s17  ;;  %v1316_v20 = vstv %s3200_s23  ;;  %s3215_s23 = sld [smem:[#allocation7 + $0x4]] }
 0x1d9   :  { %v1318_v35 = vmul.f32 %v3871_v30, %v1316_v20  ;;  %v1317_v43 = vmul.f32 %v3859_v17, %v1316_v20 }
 0x1db   :  { %v1325_v49 = vrot.slane %v1317_v43, 2 }
 0x1df   :  { %1053 = vrot.lane.b32.xlu1 %v954_v31, %s3336_s13  ;;  %1045 = vrot.lane.b32.xlu2 %v958_v34, %s3345_s22  ;;  %v1295_v31 = vsel %vm4912_vm1, %v1293_v47, %v1294_v6  ;;  %v1326_v34 = vrot.slane %v1318_v35, 2 }
 0x1e0   :  { %1051 = vrot.lane.b32.xlu0 %v890_v45, %s3336_s13 }
 0x1e1   :  { %v1327_v52 = vsel %vm4912_vm1, %v1325_v49, %v1326_v34 }
 0x1e7   :  { %1129 = vrot.lane.b32.xlu1 %v1121_v1, %s3331_s27  ;;  %1059 = vrot.lane.b32.xlu2 %v896_v56, %s3342_s19  ;;  %v1319_v56 = vmul.f32 %v3868_v26, %v1316_v20 }
 0x1e8   :  { %1061 = vrot.lane.b32.xlu0 %v960_v55, %s3342_s19  ;;  %v1320_v55 = vmul.f32 %v3763_v11, %v1316_v20 }
 0x1ea   :  { %v1329_v22 = vrot.slane %v1320_v55, 2 }
 0x1ef   :  { %1135 = vrot.lane.b32.xlu1 %v1124_v60, %s3331_s27  ;;  %1131 = vrot.lane.b32.xlu2 %v1122_v61, %s3331_s27 }
 0x1f0   :  { %1133 = vrot.lane.b32.xlu0 %v1123_v27, %s3331_s27  ;;  %v1328_v27 = vrot.slane %v1319_v56, 2 }
 0x1f7   :  { %1159 = vrot.lane.b32.xlu1 %v1149_v53, %s3332_s28  ;;  %1155 = vrot.lane.b32.xlu2 %v1147_v10, %s3332_s28  ;;  %v1330_v53 = vsel %vm4912_vm1, %v1328_v27, %v1329_v22  ;;  %vm4919_vm1 = vcmask 97280  }
 0x1f8   :  { %1157 = vrot.lane.b32.xlu0 %v1148_v57, %s3332_s28 }
 0x1ff   :  { %1213 = vrot.lane.b32.xlu1 %v1206_v44, %s3331_s27  ;;  %1161 = vrot.lane.b32.xlu2 %v1150_v50, %s3332_s28 }
 0x200   :  { %1211 = vrot.lane.b32.xlu0 %v1207_v14, %s3331_s27 }
 0x201   :  { %v3894_v51 = vpop.permute.xlu2 %963 }
 0x202   :  { %v1065_v19 = vsel %vm534_vm3, %v3771_v24, %v3894_v51 }
 0x207   :  { %1243 = vrot.lane.b32.xlu1 %v1239_v54, %s3332_s28  ;;  %1215 = vrot.lane.b32.xlu2 %v1210_v2, %s3331_s27 }
 0x208   :  { %1217 = vrot.lane.b32.xlu0 %v1209_v40, %s3331_s27 }
 0x209   :  { %v3903_v8 = vpop.permute.xlu2 %973 }
 0x20f   :  { %1249 = vrot.lane.b32.xlu1 %v1241_v3, %s3332_s28  ;;  %1245 = vrot.lane.b32.xlu2 %v1238_v7, %s3332_s28 }
 0x210   :  { %1247 = vrot.lane.b32.xlu0 %v1242_v32, %s3332_s28 }
 0x211   :  { %v988_v41 = vpop.permute.xlu2 %987 }
 0x217   :  { %1303 = vrot.lane.b32.xlu1 %v1298_v42, %s3331_s27  ;;  %1299 = vrot.lane.b32.xlu2 %v1295_v31, %s3331_s27 }
 0x218   :  { %1301 = vrot.lane.b32.xlu0 %v1294_v6, %s3331_s27 }
 0x219   :  { %v972_v45 = vpop.permute.xlu1 %971  ;;  %v998_v0 = vpop.permute.xlu2 %997 }
 0x21a   :  { %v966_v1 = vpop.permute.xlu0 %965  ;;  %v1067_v40 = vsel %vm4918_vm2, %v1065_v19, %v972_v45 }
 0x21b   :  { %v1066_v62 = vsel %vm534_vm3, %v3774_v28, %v966_v1 }
 0x21c   :  { %v1068_v24 = vsel %vm4920_vm0, %v1066_v62, %v3903_v8  ;;  %vm4921_vm0 = vmmov %vm4919_vm1 }
 0x21f   :  { %1333 = vrot.lane.b32.xlu1 %v1326_v34, %s3332_s28  ;;  %1305 = vrot.lane.b32.xlu2 %v1297_v13, %s3331_s27 }
 0x220   :  { %1331 = vrot.lane.b32.xlu0 %v1327_v52, %s3332_s28 }
 0x221   :  { %v982_v60 = vpop.permute.xlu1 %981  ;;  %v1012_v61 = vpop.permute.xlu2 %1011 }
 0x222   :  { %v980_v63 = vpop.permute.xlu0 %979  ;;  %v1070_v32 = vsel %vm540_vm7, %v1068_v24, %v982_v60 }
 0x223   :  { %v1069_v54 = vsel %vm540_vm7, %v1067_v40, %v980_v63 }
 0x224   :  { %v1071_v21 = vsel %vm543_vm9, %v1069_v54, %v988_v41 }
 0x227   :  { %1335 = vrot.lane.b32.xlu2 %v1330_v53, %s3332_s28 }
 0x228   :  { %1337 = vrot.lane.b32.xlu0 %v1329_v22, %s3332_s28 }
 0x229   :  { %v996_v57 = vpop.permute.xlu1 %995  ;;  %v1022_v10 = vpop.permute.xlu2 %1021 }
 0x22a   :  { %v990_v23 = vpop.permute.xlu0 %989  ;;  %v1073_v2 = vsel %vm546_vm11, %v1071_v21, %v996_v57  ;;  %v3983_v57 = vstv %s3192_s2  ;;  %s3207_s2 = sld [smem:[#allocation6 + $0x1e]] }
 0x22b   :  { %v1072_v33 = vsel %vm543_vm9, %v1070_v32, %v990_v23  ;;  %v1172_v23 = vstv %s3195_s29  ;;  %s3210_s29 = sld [smem:[#allocation6 + $0x21]] }
 0x22c   :  { %v1074_v20 = vsel %vm546_vm11, %v1072_v33, %v998_v0  ;;  %v4001_v62 = vmul.f32 %v3871_v30, %v1172_v23  ;;  %v1173_v21 = vmul.f32 %v3859_v17, %v1172_v23 }
 0x22e   :  { %v1182_v32 = vrot.slane %v4001_v62, 1 }
 0x231   :  { %v1006_v25 = vpop.permute.xlu1 %1005  ;;  %v1036_v44 = vpop.permute.xlu2 %1035 }
 0x232   :  { %v1004_v4 = vpop.permute.xlu0 %1003  ;;  %v1076_v42 = vsel %vm549_vm12, %v1074_v20, %v1006_v25  ;;  %v3987_v25 = vstv %s3191_s30  ;;  %s3217_s30 = sld [smem:[#allocation6 + $0x25]] }
 0x233   :  { %v1075_v3 = vsel %vm549_vm12, %v1073_v2, %v1004_v4 }
 0x234   :  { %v1077_v9 = vsel %vm552_vm13, %v1075_v3, %v1012_v61 }
 0x239   :  { %v1020_v12 = vpop.permute.xlu1 %1019  ;;  %v1046_v58 = vpop.permute.xlu2 %1045 }
 0x23a   :  { %v1014_v37 = vpop.permute.xlu0 %1013  ;;  %v1079_v13 = vsel %vm555_vm14, %v1077_v9, %v1020_v12  ;;  %v1175_v12 = vmul.f32 %v3868_v26, %v1172_v23 }
 0x23b   :  { %v1078_v35 = vsel %vm552_vm13, %v1076_v42, %v1014_v37 }
 0x23c   :  { %v1080_v1 = vsel %vm555_vm14, %v1078_v35, %v1022_v10  ;;  %v1113_v10 = vmul.f32 %v3868_v26, %v3983_v57 }
 0x23e   :  { %v1117_v37 = vadd.f32 %v1113_v10, %v3987_v25 }
 0x241   :  { %v1030_v50 = vpop.permute.xlu1 %1029  ;;  %v1060_v14 = vpop.permute.xlu2 %1059 }
 0x242   :  { %v1028_v16 = vpop.permute.xlu0 %1027  ;;  %v1082_v56 = vsel %vm4915_vm15, %v1080_v1, %v1030_v50 }
 0x243   :  { %v1083_v15 = vsel %vm4919_vm1, %v1028_v16, %v1036_v44  ;;  %v1081_v8 = vsel %vm4915_vm15, %v1079_v13, %v1028_v16  ;;  %v1184_v16 = vrot.slane %v1175_v12, 1  ;;  %vm4922_vm1 = vcmask 1046528  }
 0x244   :  { %vm4923_vm2 = vmmov %vm4922_vm1 }
 0x249   :  { %v1044_v18 = vpop.permute.xlu1 %1043  ;;  %v3932_v39 = vpop.permute.xlu2 %1131 }
 0x24a   :  { %v1038_v7 = vpop.permute.xlu0 %1037  ;;  %v1085_v51 = vsel %vm564_vm6, %v1083_v15, %v1044_v18  ;;  %v1260_v15 = vstv %s3198_s4  ;;  %s3218_s4 = sld [smem:[#allocation6 + $0x26]] }
 0x24b   :  { %v1084_v41 = vsel %vm4921_vm0, %v1030_v50, %v1038_v7  ;;  %v1111_v50 = vmul.f32 %v3859_v17, %v3983_v57  ;;  %v4010_v24 = vmul.f32 %v3763_v11, %v1260_v15  ;;  %v1261_v20 = vmul.f32 %v3859_v17, %v1260_v15 }
 0x24c   :  { %v1086_v43 = vsel %vm564_vm6, %v1084_v41, %v1046_v58  ;;  %v3993_v58 = vmul.f32 %v3763_v11, %v1172_v23  ;;  %v4025_v42 = vmul.f32 %v3871_v30, %v1260_v15  ;;  %vm4924_vm0 = vcmask 1045504  }
 0x24d   :  { %v1115_v7 = vadd.f32 %v1111_v50, %v3987_v25  ;;  %v1273_v13 = vrot.slane %v4010_v24, 2 }
 0x24e   :  { %v1185_v18 = vrot.slane %v3993_v58, 1 }
 0x250   :  { %v1186_v3 = vsel %vm4922_vm1, %v1184_v16, %v1185_v18  ;;  %vm4925_vm1 = vmmov %vm4924_vm0 }
 0x251   :  { %v1054_v59 = vpop.permute.xlu1 %1053  ;;  %v3945_v5 = vpop.permute.xlu2 %1155 }
 0x252   :  { %v1052_v29 = vpop.permute.xlu0 %1051  ;;  %v1088_v45 = vsel %vm567_vm8, %v1086_v43, %v1054_v59 }
 0x253   :  { %v1087_v28 = vsel %vm567_vm8, %v1085_v51, %v1052_v29  ;;  %v1263_v51 = vmul.f32 %v3868_v26, %v1260_v15 }
 0x254   :  { %v1089_v38 = vsel %vm570_vm10, %v1087_v28, %v1060_v14  ;;  %v1181_v28 = vrot.slane %v1173_v21, 1 }
 0x255   :  { %v1095_v47 = vrot.slane %v1089_v38, 7 }
 0x256   :  { %v1183_v41 = vsel %vm4923_vm2, %v1181_v28, %v1182_v32  ;;  %vm4926_vm2 = vcmask 1047556  }
 0x257   :  { %v1097_v6 = vsel %vm4914_vm4, %v1081_v8, %v1095_v47  ;;  %v1272_v47 = vrot.slane %v1263_v51, 2 }
 0x258   :  { %3189 = vst.msk [vmem:[%s4908_s3 + $0x1] ss:$8 sm:$0x3] %vm3672_vm5, %v1097_v6 }
 0x259   :  { %v1130_v31 = vpop.permute.xlu1 %1129  ;;  %v3966_v49 = vpop.permute.xlu2 %1161 }
 0x25a   :  { %v1062_v34 = vpop.permute.xlu0 %1061  ;;  %v1141_v59 = vadd.f32 %v1130_v31, %v1115_v7  ;;  %v1269_v31 = vrot.slane %v1261_v20, 2 }
 0x25b   :  { %v1090_v0 = vsel %vm570_vm10, %v1088_v45, %v1062_v34  ;;  %v1270_v34 = vrot.slane %v4025_v42, 2 }
 0x25c   :  { %v1096_v52 = vrot.slane %v1090_v0, 7  ;;  %v1167_v9 = vadd.f32 %v3945_v5, %v1141_v59  ;;  %v1274_v5 = vsel %vm4924_vm0, %v1272_v47, %v1273_v13  ;;  %vm4927_vm0 = vmmov %vm4926_vm2 }
 0x25d   :  { %vm4940_vm15 = vmmov %vm4927_vm0 }
 0x25e   :  { %v1098_v55 = vsel %vm4914_vm4, %v1082_v56, %v1096_v52  ;;  %v1191_v43 = vadd.f32 %v1183_v41, %v1167_v9  ;;  %vm4930_vm4 = vmmov %vm4927_vm0 }
 0x25f   :  { %3190 = vst.msk [vmem:[%s4908_s3 + $0x11] ss:$8 sm:$0x3] %vm3672_vm5, %v1098_v55  ;;  %v1271_v55 = vsel %vm4925_vm1, %v1269_v31, %v1270_v34  ;;  %vm4928_vm1 = vmmov %vm4927_vm0 }
 0x261   :  { %v3977_v60 = vpop.permute.xlu1 %1135  ;;  %v1216_v61 = vpop.permute.xlu2 %1215 }
 0x262   :  { %v1134_v27 = vpop.permute.xlu0 %1133 }
 0x263   :  { %v1143_v19 = vadd.f32 %v1134_v27, %v1117_v37  ;;  %v1112_v37 = vmul.f32 %v3871_v30, %v3983_v57 }
 0x269   :  { %v1160_v63 = vpop.permute.xlu1 %1159  ;;  %v3981_v53 = vpop.permute.xlu2 %1245 }
 0x26a   :  { %v3979_v22 = vpop.permute.xlu0 %1157  ;;  %v1169_v54 = vadd.f32 %v1160_v63, %v1143_v19 }
 0x26c   :  { %v1193_v29 = vadd.f32 %v1186_v3, %v1169_v54  ;;  %v1114_v54 = vmul.f32 %v3763_v11, %v3983_v57  ;;  %v1116_v3 = vadd.f32 %v1112_v37, %v3987_v25 }
 0x26e   :  { %v1225_v8 = vadd.f32 %v1216_v61, %v1193_v29  ;;  %v1118_v29 = vadd.f32 %v1114_v54, %v3987_v25  ;;  %v1142_v57 = vadd.f32 %v3932_v39, %v1116_v3 }
 0x271   :  { %v3989_v44 = vpop.permute.xlu1 %1213  ;;  %v1300_v14 = vpop.permute.xlu2 %1299 }
 0x272   :  { %v1212_v4 = vpop.permute.xlu0 %1211 }
 0x273   :  { %v1223_v45 = vadd.f32 %v1212_v4, %v1191_v43  ;;  %v1144_v43 = vadd.f32 %v3977_v60, %v1118_v29 }
 0x279   :  { %v1244_v40 = vpop.permute.xlu1 %1243  ;;  %v4014_v33 = vpop.permute.xlu2 %1305 }
 0x27a   :  { %v4004_v2 = vpop.permute.xlu0 %1217  ;;  %v1255_v1 = vadd.f32 %v1244_v40, %v1223_v45 }
 0x27c   :  { %v1279_v10 = vadd.f32 %v1271_v55, %v1255_v1 }
 0x27e   :  { %v1311_v4 = vadd.f32 %v1300_v14, %v1279_v10 }
 0x281   :  { %v4017_v38 = vpop.permute.xlu1 %1249  ;;  %v1336_v56 = vpop.permute.xlu2 %1335 }
 0x282   :  { %v1248_v6 = vpop.permute.xlu0 %1247 }
 0x283   :  { %v1257_v35 = vadd.f32 %v1248_v6, %v1225_v8  ;;  %v1168_v6 = vadd.f32 %v3979_v22, %v1142_v57 }
 0x285   :  { %v1281_v0 = vadd.f32 %v1274_v5, %v1257_v35  ;;  %v1192_v22 = vadd.f32 %v1182_v32, %v1168_v6 }
 0x289   :  { %v1304_v52 = vpop.permute.xlu1 %1303 }
 0x28a   :  { %v1313_v27 = vadd.f32 %v1304_v52, %v1281_v0  ;;  %v1302_v61 = vpop.permute.xlu0 %1301  ;;  %v1170_v0 = vadd.f32 %v3966_v49, %v1144_v43  ;;  %v1224_v52 = vadd.f32 %v3989_v44, %v1192_v22 }
 0x28c   :  { %v1345_v63 = vadd.f32 %v1336_v56, %v1313_v27  ;;  %v1194_v55 = vadd.f32 %v1185_v18, %v1170_v0  ;;  %v1256_v32 = vadd.f32 %v3981_v53, %v1224_v52  ;;  %v1634_v52 = vstv %s3205_s5  ;;  %s3220_s5 = sld [smem:[#allocation6 + $0x28]] }
 0x28e   :  { %v1416_v23 = vperm.slane %v1345_v63, %v3500_v36  ;;  %v1411_v47 = vrot.slane %v1345_v63, 4  ;;  %v1226_v27 = vadd.f32 %v4004_v2, %v1194_v55  ;;  %v1635_v55 = vmul.f32 %v3859_v17, %v1634_v52 }
 0x290   :  { %v4036_v12 = vperm.slane %v1416_v23, %v3505_v46  ;;  %v1421_v7 = vrot.slane %v1416_v23, 4  ;;  %v1412_v39 = vsel %vm4927_vm0, 0.0, %v1411_v47  ;;  %v1258_v10 = vadd.f32 %v4017_v38, %v1226_v27 }
 0x291   :  { %v1420_v1 = vperm.slane %v1412_v39, %v3500_v36  ;;  %v1280_v23 = vadd.f32 %v1270_v34, %v1256_v32  ;;  %v1334_v58 = vpop.permute.xlu1 %1333  ;;  %v1637_v32 = vmul.f32 %v3868_v26, %v1634_v52  ;;  %v1636_v27 = vmul.f32 %v3871_v30, %v1634_v52 }
 0x292   :  { %v1332_v50 = vpop.permute.xlu0 %1331  ;;  %v1441_v16 = vrot.slane %v4036_v12, 4  ;;  %v1422_v51 = vsel %vm4927_vm0, 0.0, %v1421_v7  ;;  %v1282_v2 = vadd.f32 %v1273_v13, %v1258_v10 }
 0x293   :  { %v1343_v19 = vadd.f32 %v1332_v50, %v1311_v4  ;;  %v1430_v20 = vperm.slane %v1422_v51, %v3505_v46  ;;  %v1436_v62 = vperm.slane %v1420_v1, %v3505_v46  ;;  %v1431_v63 = vrot.slane %v1420_v1, 4 }
 0x294   :  { %v1442_v40 = vsel %vm4926_vm2, 0.0, %v1441_v16  ;;  %vm4929_vm2 = vmmov %vm4927_vm0  ;;  %v1312_v53 = vadd.f32 %v1302_v61, %v1280_v23 }
 0x295   :  { %v1352_v21 = vperm.slane %v1343_v19, %v3500_v36  ;;  %1479 = vrot.lane.b32.xlu2 %v1442_v40, %s3337_s14  ;;  %v1347_v59 = vrot.slane %v1343_v19, 4  ;;  %v1443_v31 = vrot.slane %v1430_v20, 4  ;;  %v1445_v34 = vrot.slane %v1436_v62, 4 }
 0x296   :  { %v1344_v50 = vadd.f32 %v1334_v58, %v1312_v53  ;;  %v1314_v19 = vadd.f32 %v4014_v33, %v1282_v2 }
 0x297   :  { %v1357_v14 = vrot.slane %v1352_v21, 4  ;;  %v4048_v15 = vperm.slane %v1352_v21, %v3505_v46  ;;  %v1348_v35 = vsel %vm4930_vm4, 0.0, %v1347_v59  ;;  %vm4932_vm4 = vmmov %vm4927_vm0 }
 0x298   :  { %v1356_v45 = vperm.slane %v1348_v35, %v3500_v36  ;;  %v1444_v60 = vsel %vm4932_vm4, 0.0, %v1443_v31  ;;  %v1388_v61 = vperm.slane %v1344_v50, %v3500_v36  ;;  %vm4935_vm4 = vmmov %vm4927_vm0  ;;  %v1399_v6 = vrot.slane %v1344_v50, 4 }
 0x299   :  { %v1377_v28 = vrot.slane %v4048_v15, 4  ;;  %v1358_v9 = vsel %vm4928_vm1, 0.0, %v1357_v14  ;;  %vm4931_vm1 = vmmov %vm4927_vm0  ;;  %v1446_v54 = vsel %vm4935_vm4, 0.0, %v1445_v34 }
 0x29a   :  { %v1366_v8 = vperm.slane %v1358_v9, %v3505_v46  ;;  %v1372_v56 = vperm.slane %v1356_v45, %v3505_v46  ;;  %v1367_v49 = vrot.slane %v1356_v45, 4  ;;  %v1338_v16 = vpop.permute.xlu0 %1337  ;;  %v1394_v13 = vperm.slane %v1388_v61, %v3505_v46  ;;  %vm4938_vm4 = vmmov %vm4927_vm0 }
 0x29b   :  { %v1378_v41 = vsel %vm4929_vm2, 0.0, %v1377_v28  ;;  %vm4933_vm2 = vmmov %vm4927_vm0  ;;  %v1346_v40 = vadd.f32 %v1338_v16, %v1314_v19  ;;  %v1389_v51 = vrot.slane %v1388_v61, 4  ;;  %v1400_v43 = vsel %vm4927_vm0, 0.0, %v1399_v6 }
 0x29c   :  { %1477 = vrot.lane.b32.xlu1 %v1378_v41, %s3337_s14  ;;  %1485 = vrot.lane.b32.xlu0 %v1366_v8, %s3338_s15  ;;  %v1379_v25 = vrot.slane %v1366_v8, 4  ;;  %v1381_v44 = vrot.slane %v1372_v56, 4  ;;  %v1368_v4 = vsel %vm4933_vm2, 0.0, %v1367_v49  ;;  %vm4936_vm2 = vmmov %vm4927_vm0  ;;  %v1405_v33 = vrot.slane %v1394_v13, 4 }
 0x29d   :  { %v1376_v38 = vperm.slane %v1368_v4, %v3505_v46  ;;  %v1452_v21 = vperm.slane %v1346_v40, %v3500_v36  ;;  %v1390_v57 = vsel %vm4938_vm4, 0.0, %v1389_v51  ;;  %v1463_v35 = vrot.slane %v1346_v40, 4  ;;  %vm4942_vm4 = vmmov %vm4927_vm0 }
 0x29e   :  { %v1380_v5 = vsel %vm4931_vm1, 0.0, %v1379_v25  ;;  %v1382_v18 = vsel %vm4927_vm0, 0.0, %v1381_v44  ;;  %vm4934_vm1 = vmmov %vm4927_vm0  ;;  %v1398_v41 = vperm.slane %v1390_v57, %v3505_v46  ;;  %v1404_v31 = vperm.slane %v1400_v43, %v3505_v46 }
 0x29f   :  { %1493 = vrot.lane.b32.xlu2 %v1380_v5, %s3341_s18  ;;  %v1432_v37 = vsel %vm4934_vm1, 0.0, %v1431_v63  ;;  %v1383_v3 = vrot.slane %v1376_v38, 4  ;;  %v1458_v59 = vperm.slane %v1452_v21, %v3505_v46  ;;  %v1453_v29 = vrot.slane %v1452_v21, 4  ;;  %vm4937_vm1 = vmmov %vm4927_vm0 }
 0x2a0   :  { %v1440_v42 = vperm.slane %v1432_v37, %v3505_v46  ;;  %v1406_v28 = vsel %vm4937_vm1, 0.0, %v1405_v33  ;;  %v1407_v25 = vrot.slane %v1398_v41, 4  ;;  %vm4941_vm1 = vmmov %vm4927_vm0  ;;  %v1638_v49 = vmul.f32 %v3763_v11, %v1634_v52 }
 0x2a1   :  { %v1384_v14 = vsel %vm4927_vm0, 0.0, %v1383_v3  ;;  %v1469_v9 = vrot.slane %v1458_v59, 4  ;;  %v1464_v39 = vsel %vm4941_vm1, 0.0, %v1463_v35  ;;  %v1660_v44 = vstv %s3206_s6  ;;  %s3221_s6 = sld [smem:[#allocation6 + $0x29]] }
 0x2a2   :  { %v1447_v7 = vrot.slane %v1440_v42, 4  ;;  %v1408_v5 = vsel %vm4942_vm4, 0.0, %v1407_v25  ;;  %v1468_v45 = vperm.slane %v1464_v39, %v3505_v46  ;;  %v1710_v63 = vstv %s3208_s7  ;;  %s3223_s7 = sld [smem:[#allocation6 + $0x2b]] }
 0x2a3   :  { %v1470_v8 = vsel %vm4940_vm15, 0.0, %v1469_v9  ;;  %vm4943_vm15 = vmmov %vm4927_vm0  ;;  %v1662_v10 = vmul.f32 %v3871_v30, %v1660_v44  ;;  %v1711_v23 = vmul.f32 %v3859_v17, %v1710_v63  ;;  %v1712_v4 = vmul.f32 %v3871_v30, %v1710_v63 }
 0x2a4   :  { %1487 = vrot.lane.b32.xlu1 %v1430_v20, %s3338_s15  ;;  %1495 = vrot.lane.b32.xlu0 %v1444_v60, %s3341_s18  ;;  %v1448_v24 = vsel %vm4936_vm2, 0.0, %v1447_v7  ;;  %vm4939_vm2 = vmmov %vm4927_vm0  ;;  %v1473_v0 = vrot.slane %v1468_v45, 4  ;;  %v1663_v58 = vmul.f32 %v3868_v26, %v1660_v44  ;;  %vm4945_vm1 = vcmask 1046528  }
 0x2a5   :  { %v1454_v47 = vsel %vm4939_vm2, 0.0, %v1453_v29  ;;  %vm4944_vm2 = vmmov %vm4927_vm0  ;;  %v1719_v37 = vrot.slane %v1711_v23, 1  ;;  %v1720_v53 = vrot.slane %v1712_v4, 1  ;;  %v1664_v50 = vmul.f32 %v3763_v11, %v1660_v44 }
 0x2a6   :  { %v1462_v20 = vperm.slane %v1454_v47, %v3505_v46  ;;  %v1474_v60 = vsel %vm4944_vm2, 0.0, %v1473_v0  ;;  %v1713_v19 = vmul.f32 %v3868_v26, %v1710_v63  ;;  %v1714_v61 = vmul.f32 %v3763_v11, %v1710_v63  ;;  %vm4946_vm4 = vmmov %vm4945_vm1 }
 0x2a7   :  { %1503 = vrot.lane.b32.xlu2 %v1436_v62, %s3339_s16  ;;  %v1721_v2 = vsel %vm4945_vm1, %v1719_v37, %v1720_v53  ;;  %vm4948_vm2 = vmmov %vm4945_vm1 }
 0x2a8   :  { %v1471_v22 = vrot.slane %v1462_v20, 4 }
 0x2aa   :  { %v1472_v1 = vsel %vm4943_vm15, 0.0, %v1471_v22  ;;  %vm4947_vm15 = vmmov %vm4945_vm1 }
 0x2ac   :  { %1501 = vrot.lane.b32.xlu1 %v1372_v56, %s3339_s16  ;;  %1509 = vrot.lane.b32.xlu0 %v1382_v18, %s3343_s20  ;;  %v1409_v56 = vrot.slane %v1404_v31, 4  ;;  %v1661_v18 = vmul.f32 %v3859_v17, %v1660_v44 }
 0x2ae   :  { %v1410_v62 = vsel %vm4927_vm0, 0.0, %v1409_v56  ;;  %vm4949_vm0 = vcmask 1045504  }
 0x2af   :  { %1517 = vrot.lane.b32.xlu2 %v1376_v38, %s3344_s21  ;;  %v1742_v38 = vstv %s3209_s8  ;;  %vm4950_vm1 = vmmov %vm4949_vm0  ;;  %s3224_s8 = sld [smem:[#allocation6 + $0x2c]] }
 0x2b0   :  { %v1743_v34 = vmul.f32 %v3859_v17, %v1742_v38  ;;  %v1744_v16 = vmul.f32 %v3871_v30, %v1742_v38  ;;  %v1745_v21 = vmul.f32 %v3868_v26, %v1742_v38 }
 0x2b2   :  { %v1751_v7 = vrot.slane %v1743_v34, 1  ;;  %v1752_v40 = vrot.slane %v1744_v16, 1  ;;  %v1754_v3 = vrot.slane %v1745_v21, 1 }
 0x2b4   :  { %1511 = vrot.lane.b32.xlu1 %v1446_v54, %s3343_s20  ;;  %1519 = vrot.lane.b32.xlu0 %v1440_v42, %s3344_s21  ;;  %v1722_v54 = vrot.slane %v1713_v19, 1 }
 0x2b7   :  { %1527 = vrot.lane.b32.xlu2 %v1448_v24, %s3346_s24  ;;  %v1723_v24 = vrot.slane %v1714_v61, 1 }
 0x2bc   :  { %1533 = vrot.lane.b32.xlu0 %v1394_v13, %s3335_s12  ;;  %1525 = vrot.lane.b32.xlu1 %v1384_v14, %s3346_s24  ;;  %v1746_v13 = vmul.f32 %v3763_v11, %v1742_v38  ;;  %v1753_v14 = vsel %vm4946_vm4, %v1751_v7, %v1752_v40  ;;  %vm4951_vm4 = vmmov %vm4949_vm0 }
 0x2be   :  { %v1755_v51 = vrot.slane %v1746_v13, 1 }
 0x2bf   :  { %1541 = vrot.lane.b32.xlu2 %v1406_v28, %s3332_s28  ;;  %v1798_v28 = vstv %s3211_s9  ;;  %s3216_s9 = sld [smem:[#allocation6 + $0x24]] }
 0x2c0   :  { %v1756_v29 = vsel %vm4948_vm2, %v1754_v3, %v1755_v51  ;;  %v1801_v57 = vmul.f32 %v3868_v26, %v1798_v28  ;;  %v1802_v47 = vmul.f32 %v3763_v11, %v1798_v28  ;;  %vm4953_vm2 = vcmask 228352  }
 0x2c2   :  { %v1810_v6 = vrot.slane %v1801_v57, 2  ;;  %v1811_v35 = vrot.slane %v1802_v47, 2 }
 0x2c4   :  { %1535 = vrot.lane.b32.xlu1 %v1458_v59, %s3335_s12  ;;  %1543 = vrot.lane.b32.xlu0 %v1470_v8, %s3332_s28  ;;  %v1724_v59 = vsel %vm4947_vm15, %v1722_v54, %v1723_v24  ;;  %v1799_v8 = vmul.f32 %v3859_v17, %v1798_v28  ;;  %vm4952_vm15 = vmmov %vm4949_vm0 }
 0x2c6   :  { %v1807_v25 = vrot.slane %v1799_v8, 2 }
 0x2c7   :  { %1551 = vrot.lane.b32.xlu2 %v1462_v20, %s3340_s17  ;;  %v1830_v20 = vstv %s3212_s10  ;;  %s3228_s10 = sld [smem:[#allocation6 + $0x2d]] }
 0x2c8   :  { %v1832_v39 = vmul.f32 %v3871_v30, %v1830_v20 }
 0x2ca   :  { %v1840_v0 = vrot.slane %v1832_v39, 2 }
 0x2cc   :  { %1549 = vrot.lane.b32.xlu1 %v1398_v41, %s3340_s17  ;;  %1557 = vrot.lane.b32.xlu0 %v1408_v5, %s3345_s22  ;;  %v1800_v41 = vmul.f32 %v3871_v30, %v1798_v28  ;;  %v1831_v5 = vmul.f32 %v3859_v17, %v1830_v20 }
 0x2ce   :  { %v1808_v43 = vrot.slane %v1800_v41, 2  ;;  %v1839_v11 = vrot.slane %v1831_v5, 2 }
 0x2cf   :  { %1565 = vrot.lane.b32.xlu2 %v1404_v31, %s3336_s13 }
 0x2d0   :  { %v1809_v22 = vsel %vm4950_vm1, %v1807_v25, %v1808_v43  ;;  %vm4955_vm1 = vcmask 97280  }
 0x2d4   :  { %1567 = vrot.lane.b32.xlu0 %v1468_v45, %s3336_s13  ;;  %1559 = vrot.lane.b32.xlu1 %v1472_v1, %s3345_s22  ;;  %v1812_v45 = vsel %vm4949_vm0, %v1810_v6, %v1811_v35  ;;  %v1841_v1 = vsel %vm4951_vm4, %v1839_v11, %v1840_v0  ;;  %vm4954_vm0 = vmmov %vm4953_vm2 }
 0x2d5   :  { %vm4956_vm4 = vmmov %vm4955_vm1 }
 0x2d7   :  { %1575 = vrot.lane.b32.xlu2 %v1474_v60, %s3342_s19 }
 0x2dc   :  { %1643 = vrot.lane.b32.xlu0 %v1635_v55, %s3331_s27  ;;  %1573 = vrot.lane.b32.xlu1 %v1410_v62, %s3342_s19  ;;  %v1833_v55 = vmul.f32 %v3868_v26, %v1830_v20  ;;  %v4187_v62 = vld [vmem:[#allocation2 + $0x18] sm:$0xff] }
 0x2df   :  { %1647 = vrot.lane.b32.xlu2 %v1637_v32, %s3331_s27  ;;  %v1834_v32 = vmul.f32 %v4187_v62, %v1830_v20 }
 0x2e4   :  { %1649 = vrot.lane.b32.xlu0 %v1638_v49, %s3331_s27  ;;  %1645 = vrot.lane.b32.xlu1 %v1636_v27, %s3331_s27  ;;  %v1842_v49 = vrot.slane %v1833_v55, 2  ;;  %v1843_v27 = vrot.slane %v1834_v32, 2 }
 0x2e7   :  { %1671 = vrot.lane.b32.xlu2 %v1662_v10, %s3332_s28  ;;  %v1844_v10 = vsel %vm4952_vm15, %v1842_v49, %v1843_v27  ;;  %vm4957_vm15 = vcmask 1031168  }
 0x2ec   :  { %1673 = vrot.lane.b32.xlu0 %v1663_v58, %s3332_s28  ;;  %1669 = vrot.lane.b32.xlu1 %v1661_v18, %s3332_s28 }
 0x2ef   :  { %1725 = vrot.lane.b32.xlu2 %v1721_v2, %s3331_s27  ;;  %v4152_v42 = vpop.permute.xlu2 %1479 }
 0x2f0   :  { %v1580_v19 = vsel %vm534_vm3, %v4036_v12, %v4152_v42 }
 0x2f4   :  { %1727 = vrot.lane.b32.xlu0 %v1720_v53, %s3331_s27  ;;  %1675 = vrot.lane.b32.xlu1 %v1664_v50, %s3332_s28 }
 0x2f7   :  { %1731 = vrot.lane.b32.xlu2 %v1723_v24, %s3331_s27 }
 0x2f9   :  { %v4163_v33 = vpop.permute.xlu2 %1493 }
 0x2fc   :  { %1757 = vrot.lane.b32.xlu0 %v1753_v14, %s3332_s28  ;;  %1729 = vrot.lane.b32.xlu1 %v1724_v59, %s3331_s27 }
 0x2ff   :  { %1761 = vrot.lane.b32.xlu2 %v1756_v29, %s3332_s28 }
 0x301   :  { %v1504_v9 = vpop.permute.xlu2 %1503 }
 0x304   :  { %1763 = vrot.lane.b32.xlu0 %v1755_v51, %s3332_s28  ;;  %1759 = vrot.lane.b32.xlu1 %v1752_v40, %s3332_s28 }
 0x307   :  { %1815 = vrot.lane.b32.xlu2 %v1808_v43, %s3331_s27 }
 0x309   :  { %v1518_v31 = vpop.permute.xlu2 %1517 }
 0x30c   :  { %1817 = vrot.lane.b32.xlu0 %v1812_v45, %s3331_s27  ;;  %1813 = vrot.lane.b32.xlu1 %v1809_v22, %s3331_s27 }
 0x30e   :  { %v1478_v52 = vpop.permute.xlu1 %1477  ;;  %v1486_v60 = vpop.permute.xlu0 %1485 }
 0x30f   :  { %1845 = vrot.lane.b32.xlu2 %v1841_v1, %s3332_s28  ;;  %v1579_v40 = vsel %vm534_vm3, %v4048_v15, %v1478_v52 }
 0x310   :  { %v1581_v21 = vsel %vm4954_vm0, %v1579_v40, %v1486_v60  ;;  %vm4959_vm0 = vmmov %vm4957_vm15 }
 0x311   :  { %v1528_v56 = vpop.permute.xlu2 %1527  ;;  %v1583_v12 = vsel %vm540_vm7, %v1581_v21, %v4163_v33 }
 0x314   :  { %1847 = vrot.lane.b32.xlu0 %v1840_v0, %s3332_s28  ;;  %1819 = vrot.lane.b32.xlu1 %v1811_v35, %s3331_s27 }
 0x316   :  { %v1488_v44 = vpop.permute.xlu1 %1487  ;;  %v1496_v63 = vpop.permute.xlu0 %1495 }
 0x317   :  { %1851 = vrot.lane.b32.xlu2 %v1843_v27, %s3332_s28  ;;  %v1582_v61 = vsel %vm4953_vm2, %v1580_v19, %v1488_v44  ;;  %vm4958_vm2 = vcmask 1040384   ;;  %v4243_v27 = vstv %s3204_s25  ;;  %s3234_s25 = sld [smem:[#allocation6 + $0x33]] }
 0x318   :  { %v1584_v54 = vsel %vm540_vm7, %v1582_v61, %v1496_v63  ;;  %v1628_v44 = vmul.f32 %v4187_v62, %v4243_v27  ;;  %v4247_v63 = vstv %s3203_s26  ;;  %s3222_s26 = sld [smem:[#allocation6 + $0x2a]] }
 0x319   :  { %v1542_v23 = vpop.permute.xlu2 %1541  ;;  %v1586_v3 = vsel %vm543_vm9, %v1584_v54, %v1504_v9 }
 0x31c   :  { %1849 = vrot.lane.b32.xlu1 %v1844_v10, %s3332_s28 }
 0x31e   :  { %v1502_v4 = vpop.permute.xlu1 %1501  ;;  %v1510_v58 = vpop.permute.xlu0 %1509 }
 0x31f   :  { %v1585_v42 = vsel %vm543_vm9, %v1583_v12, %v1502_v4 }
 0x320   :  { %v1587_v57 = vsel %vm546_vm11, %v1585_v42, %v1510_v58  ;;  %v1774_v42 = vstv %s3210_s29  ;;  %s3230_s29 = sld [smem:[#allocation6 + $0x2f]] }
 0x321   :  { %v1552_v18 = vpop.permute.xlu2 %1551  ;;  %v1589_v6 = vsel %vm549_vm12, %v1587_v57, %v1518_v31 }
 0x326   :  { %v1512_v37 = vpop.permute.xlu1 %1511  ;;  %v1520_v53 = vpop.permute.xlu0 %1519 }
 0x327   :  { %v1588_v14 = vsel %vm546_vm11, %v1586_v3, %v1512_v37  ;;  %v1625_v37 = vmul.f32 %v3859_v17, %v4243_v27 }
 0x328   :  { %v1590_v51 = vsel %vm549_vm12, %v1588_v14, %v1520_v53 }
 0x329   :  { %v1566_v50 = vpop.permute.xlu2 %1565  ;;  %v1592_v47 = vsel %vm552_vm13, %v1590_v51, %v1528_v56  ;;  %v4267_v51 = vmul.f32 %v3871_v30, %v1774_v42 }
 0x32e   :  { %v1526_v2 = vpop.permute.xlu1 %1525  ;;  %v1534_v38 = vpop.permute.xlu0 %1533 }
 0x32f   :  { %v1591_v25 = vsel %vm552_vm13, %v1589_v6, %v1526_v2 }
 0x330   :  { %v1593_v45 = vsel %vm555_vm14, %v1591_v25, %v1534_v38 }
 0x331   :  { %v1576_v7 = vpop.permute.xlu2 %1575  ;;  %v1595_v60 = vsel %vm4959_vm0, %v1593_v45, %v1542_v23  ;;  %vm4964_vm0 = vcmask 1047556  }
 0x336   :  { %v1536_v34 = vpop.permute.xlu1 %1535  ;;  %v1544_v16 = vpop.permute.xlu0 %1543 }
 0x337   :  { %v1598_v15 = vsel %vm4955_vm1, %v1544_v16, %v1552_v18  ;;  %v1594_v8 = vsel %vm555_vm14, %v1592_v47, %v1536_v34  ;;  %vm4960_vm1 = vmmov %vm4958_vm2  ;;  %v1686_v18 = vstv %s3207_s2  ;;  %s3229_s2 = sld [smem:[#allocation6 + $0x2e]] }
 0x338   :  { %v1596_v43 = vsel %vm4957_vm15, %v1594_v8, %v1544_v16  ;;  %v1690_v2 = vmul.f32 %v4187_v62, %v1686_v18  ;;  %v1687_v19 = vmul.f32 %v3859_v17, %v1686_v18  ;;  %vm4962_vm15 = vcmask 1045504  }
 0x339   :  { %v4205_v59 = vpop.permute.xlu2 %1647 }
 0x33a   :  { %v1699_v16 = vrot.slane %v1690_v2, 1 }
 0x33e   :  { %v1550_v24 = vpop.permute.xlu1 %1549  ;;  %v1558_v13 = vpop.permute.xlu0 %1557 }
 0x33f   :  { %v1597_v41 = vsel %vm4956_vm4, %v1542_v23, %v1550_v24  ;;  %v1632_v23 = vadd.f32 %v1628_v44, %v4247_v63  ;;  %vm4961_vm4 = vcmask 1046528  }
 0x340   :  { %v1599_v39 = vsel %vm564_vm6, %v1597_v41, %v1558_v13  ;;  %v1695_v13 = vrot.slane %v1687_v19, 1  ;;  %v4304_v19 = vld [vmem:[#allocation2 + $0x8] sm:$0xff] }
 0x341   :  { %v4224_v11 = vpop.permute.xlu2 %1671  ;;  %v1601_v22 = vsel %vm567_vm8, %v1599_v39, %v1566_v50  ;;  %v1629_v50 = vadd.f32 %v1625_v37, %v4247_v63 }
 0x346   :  { %v1560_v29 = vpop.permute.xlu1 %1559  ;;  %v1568_v28 = vpop.permute.xlu0 %1567 }
 0x347   :  { %v1600_v9 = vsel %vm564_vm6, %v1598_v15, %v1560_v29  ;;  %v4269_v15 = vld [vmem:[#allocation2] sm:$0xff] }
 0x348   :  { %v1602_v33 = vsel %vm567_vm8, %v1600_v9, %v1568_v28  ;;  %v1775_v29 = vmul.f32 %v4269_v15, %v1774_v42  ;;  %v1627_v28 = vmul.f32 %v3868_v26, %v4243_v27  ;;  %v1689_v9 = vmul.f32 %v3868_v26, %v1686_v18 }
 0x349   :  { %v1604_v20 = vsel %vm570_vm10, %v1602_v33, %v1576_v7  ;;  %v1726_v32 = vpop.permute.xlu2 %1725  ;;  %v4256_v7 = vmul.f32 %v3871_v30, %v1686_v18  ;;  %v1784_v33 = vrot.slane %v4267_v51, 2 }
 0x34a   :  { %v1610_v35 = vrot.slane %v1604_v20, 7  ;;  %v1783_v20 = vrot.slane %v1775_v29, 2  ;;  %v1631_v30 = vadd.f32 %v1627_v28, %v4247_v63  ;;  %v1698_v25 = vrot.slane %v1689_v9, 1 }
 0x34b   :  { %v1696_v3 = vrot.slane %v4256_v7, 1 }
 0x34c   :  { %v1612_v5 = vsel %vm4958_vm2, %v1596_v43, %v1610_v35  ;;  %v1785_v43 = vsel %vm4962_vm15, %v1783_v20, %v1784_v33  ;;  %v1657_v39 = vadd.f32 %v4205_v59, %v1631_v30  ;;  %vm4963_vm2 = vmmov %vm4961_vm4 }
 0x34d   :  { %3202 = vst.msk [vmem:[%s4908_s3 + $0x12] ss:$8 sm:$0x3] %vm3672_vm5, %v1612_v5  ;;  %v1697_v17 = vsel %vm4961_vm4, %v1695_v13, %v1696_v3  ;;  %v1700_v26 = vsel %vm4963_vm2, %v1698_v25, %v1699_v16  ;;  %vm4966_vm4 = vmmov %vm4964_vm0 }
 0x34e   :  { %v1574_v31 = vpop.permute.xlu1 %1573  ;;  %v1644_v0 = vpop.permute.xlu0 %1643  ;;  %vm4968_vm2 = vmmov %vm4964_vm0 }
 0x34f   :  { %v1603_v1 = vsel %vm570_vm10, %v1601_v22, %v1574_v31  ;;  %v1655_v54 = vadd.f32 %v1644_v0, %v1629_v50 }
 0x350   :  { %v1609_v52 = vrot.slane %v1603_v1, 7 }
 0x351   :  { %v1732_v4 = vpop.permute.xlu2 %1731 }
 0x352   :  { %v1611_v56 = vsel %vm4960_vm1, %v1595_v60, %v1609_v52  ;;  %v4286_v52 = vld [vmem:[#allocation2 + $0x10] sm:$0xff]  ;;  %vm4965_vm1 = vmmov %vm4962_vm15 }
 0x353   :  { %3201 = vst.msk [vmem:[%s4908_s3 + $0x2] ss:$8 sm:$0x3] %vm3672_vm5, %v1611_v56  ;;  %v1777_v60 = vmul.f32 %v4286_v52, %v1774_v42  ;;  %v4290_v56 = vmul.f32 %v4187_v62, %v1774_v42  ;;  %vm4967_vm15 = vmmov %vm4964_vm0 }
 0x356   :  { %v4241_v55 = vpop.permute.xlu1 %1645  ;;  %v1650_v49 = vpop.permute.xlu0 %1649 }
 0x357   :  { %v1658_v53 = vadd.f32 %v1650_v49, %v1632_v23  ;;  %v1787_v23 = vrot.slane %v4290_v56, 2 }
 0x359   :  { %v1762_v40 = vpop.permute.xlu2 %1761 }
 0x35e   :  { %v1670_v10 = vpop.permute.xlu1 %1669  ;;  %v1674_v58 = vpop.permute.xlu0 %1673 }
 0x35f   :  { %v1681_v12 = vadd.f32 %v1670_v10, %v1655_v54  ;;  %v1683_v5 = vadd.f32 %v1674_v58, %v1657_v39  ;;  %v1786_v10 = vrot.slane %v1777_v60, 2 }
 0x361   :  { %v1705_v57 = vadd.f32 %v1697_v17, %v1681_v12  ;;  %v4274_v47 = vpop.permute.xlu2 %1815 }
 0x363   :  { %v1737_v6 = vadd.f32 %v1726_v32, %v1705_v57  ;;  %v1707_v32 = vadd.f32 %v1700_v26, %v1683_v5 }
 0x366   :  { %v1676_v38 = vpop.permute.xlu1 %1675  ;;  %v4260_v21 = vpop.permute.xlu0 %1727 }
 0x367   :  { %v1684_v34 = vadd.f32 %v1676_v38, %v1658_v53  ;;  %v1788_v38 = vsel %vm4965_vm1, %v1786_v10, %v1787_v23  ;;  %vm4969_vm1 = vmmov %vm4964_vm0 }
 0x369   :  { %v1708_v61 = vadd.f32 %v1699_v16, %v1684_v34  ;;  %v1846_v22 = vpop.permute.xlu2 %1845 }
 0x36b   :  { %v4258_v24 = vadd.f32 %v1732_v4, %v1708_v61  ;;  %v1626_v61 = vmul.f32 %v4304_v19, %v4243_v27 }
 0x36e   :  { %v1730_v14 = vpop.permute.xlu1 %1729  ;;  %v1758_v8 = vpop.permute.xlu0 %1757 }
 0x36f   :  { %v1769_v35 = vadd.f32 %v1758_v8, %v1737_v6  ;;  %v1739_v44 = vadd.f32 %v1730_v14, %v1707_v32  ;;  %v1630_v14 = vadd.f32 %v1626_v61, %v4247_v63 }
 0x371   :  { %v1793_v45 = vadd.f32 %v1785_v43, %v1769_v35  ;;  %v1771_v37 = vadd.f32 %v1762_v40, %v1739_v44  ;;  %v1656_v29 = vadd.f32 %v4241_v55, %v1630_v14 }
 0x373   :  { %v1795_v40 = vadd.f32 %v1788_v38, %v1771_v37  ;;  %v1682_v6 = vadd.f32 %v4224_v11, %v1656_v29 }
 0x375   :  { %v1706_v5 = vadd.f32 %v1696_v3, %v1682_v6 }
 0x376   :  { %v4277_v41 = vpop.permute.xlu1 %1759  ;;  %v1764_v1 = vpop.permute.xlu0 %1763 }
 0x377   :  { %v1738_v26 = vadd.f32 %v4260_v21, %v1706_v5  ;;  %v1772_v56 = vadd.f32 %v1764_v1, %v4258_v24  ;;  %v2148_v5 = vstv %s3217_s30  ;;  %s3232_s30 = sld [smem:[#allocation6 + $0x31]] }
 0x37e   :  { %v1814_v31 = vpop.permute.xlu1 %1813  ;;  %v1818_v16 = vpop.permute.xlu0 %1817 }
 0x37f   :  { %v1825_v0 = vadd.f32 %v1814_v31, %v1793_v45  ;;  %v1827_v54 = vadd.f32 %v1818_v16, %v1795_v40 }
 0x381   :  { %v1857_v49 = vadd.f32 %v1846_v22, %v1825_v0  ;;  %v1770_v22 = vadd.f32 %v4277_v41, %v1738_v26 }
 0x383   :  { %v1866_v59 = vperm.slane %v1857_v49, %v3500_v36  ;;  %v1861_v12 = vrot.slane %v1857_v49, 4  ;;  %v1794_v21 = vadd.f32 %v1784_v33, %v1770_v22  ;;  %v1796_v49 = vadd.f32 %v1787_v23, %v1772_v56 }
 0x384   :  { %v2151_v56 = vmul.f32 %v4286_v52, %v2148_v5 }
 0x385   :  { %v1871_v4 = vrot.slane %v1866_v59, 4  ;;  %v4295_v58 = vperm.slane %v1866_v59, %v3505_v46  ;;  %v1862_v28 = vsel %vm4967_vm15, 0.0, %v1861_v12  ;;  %vm4971_vm15 = vmmov %vm4964_vm0  ;;  %v1826_v1 = vadd.f32 %v4274_v47, %v1794_v21 }
 0x386   :  { %v1820_v18 = vpop.permute.xlu1 %1819  ;;  %v1870_v30 = vperm.slane %v1862_v28, %v3500_v36  ;;  %v1848_v10 = vpop.permute.xlu0 %1847 }
 0x387   :  { %v1872_v53 = vsel %vm4964_vm0, 0.0, %v1871_v4  ;;  %v1891_v2 = vrot.slane %v4295_v58, 4  ;;  %v1828_v59 = vadd.f32 %v1820_v18, %v1796_v49  ;;  %v1852_v4 = vpop.permute.xlu2 %1851  ;;  %v1858_v51 = vadd.f32 %v1848_v10, %v1826_v1 }
 0x388   :  { %v1880_v50 = vperm.slane %v1872_v53, %v3505_v46  ;;  %v1886_v39 = vperm.slane %v1870_v30, %v3505_v46  ;;  %v1881_v32 = vrot.slane %v1870_v30, 4 }
 0x389   :  { %v1892_v34 = vsel %vm4966_vm4, 0.0, %v1891_v2  ;;  %vm4970_vm4 = vmmov %vm4964_vm0  ;;  %v1860_v23 = vadd.f32 %v1852_v4, %v1828_v59  ;;  %v1902_v2 = vperm.slane %v1858_v51, %v3500_v36 }
 0x38a   :  { %1991 = vrot.lane.b32.xlu0 %v1892_v34, %s3337_s14  ;;  %1999 = vrot.lane.b32.xlu2 %v1880_v50, %s3338_s15  ;;  %v1893_v11 = vrot.slane %v1880_v50, 4  ;;  %v1895_v31 = vrot.slane %v1886_v39, 4  ;;  %v1882_v44 = vsel %vm4964_vm0, 0.0, %v1881_v32 }
 0x38b   :  { %v1890_v53 = vperm.slane %v1882_v44, %v3505_v46  ;;  %v1966_v47 = vperm.slane %v1860_v23, %v3500_v36  ;;  %v1908_v50 = vperm.slane %v1902_v2, %v3505_v46  ;;  %v1903_v16 = vrot.slane %v1902_v2, 4 }
 0x38c   :  { %v1894_v0 = vsel %vm4971_vm15, 0.0, %v1893_v11  ;;  %vm4975_vm15 = vmmov %vm4964_vm0  ;;  %v2149_v11 = vmul.f32 %v4269_v15, %v2148_v5 }
 0x38d   :  { %v1897_v18 = vrot.slane %v1890_v53, 4  ;;  %v1972_v34 = vperm.slane %v1966_v47, %v3505_v46  ;;  %v1967_v14 = vrot.slane %v1966_v47, 4 }
 0x38e   :  { %v1850_v13 = vpop.permute.xlu1 %1849 }
 0x38f   :  { %v1859_v42 = vadd.f32 %v1850_v13, %v1827_v54  ;;  %v1898_v38 = vsel %vm4975_vm15, 0.0, %v1897_v18  ;;  %v1983_v40 = vrot.slane %v1972_v34, 4  ;;  %vm4979_vm15 = vmmov %vm4964_vm0 }
 0x391   :  { %v1930_v17 = vperm.slane %v1859_v42, %v3500_v36  ;;  %v1925_v8 = vrot.slane %v1859_v42, 4 }
 0x393   :  { %v1935_v57 = vrot.slane %v1930_v17, 4  ;;  %v4313_v9 = vperm.slane %v1930_v17, %v3505_v46  ;;  %v1926_v55 = vsel %vm4969_vm1, 0.0, %v1925_v8  ;;  %vm4973_vm1 = vmmov %vm4964_vm0  ;;  %v1919_v17 = vrot.slane %v1908_v50, 4 }
 0x394   :  { %v1934_v45 = vperm.slane %v1926_v55, %v3500_v36 }
 0x395   :  { %v1936_v27 = vsel %vm4968_vm2, 0.0, %v1935_v57  ;;  %v1955_v20 = vrot.slane %v4313_v9, 4  ;;  %vm4972_vm2 = vmmov %vm4964_vm0  ;;  %v1920_v57 = vsel %vm4979_vm15, 0.0, %v1919_v17 }
 0x396   :  { %v1944_v63 = vperm.slane %v1936_v27, %v3505_v46  ;;  %v1950_v60 = vperm.slane %v1934_v45, %v3505_v46  ;;  %v1945_v7 = vrot.slane %v1934_v45, 4  ;;  %v1896_v3 = vsel %vm4972_vm2, 0.0, %v1895_v31  ;;  %vm4976_vm2 = vmmov %vm4964_vm0 }
 0x397   :  { %v1956_v35 = vsel %vm4964_vm0, 0.0, %v1955_v20  ;;  %v1904_v54 = vsel %vm4976_vm2, 0.0, %v1903_v16  ;;  %v1913_v27 = vrot.slane %v1858_v51, 4  ;;  %v1977_v20 = vrot.slane %v1860_v23, 4  ;;  %vm4980_vm2 = vmmov %vm4964_vm0 }
 0x398   :  { %1993 = vrot.lane.b32.xlu1 %v1956_v35, %s3337_s14  ;;  %2001 = vrot.lane.b32.xlu0 %v1944_v63, %s3338_s15  ;;  %v1957_v25 = vrot.slane %v1944_v63, 4  ;;  %v1959_v41 = vrot.slane %v1950_v60, 4  ;;  %v1946_v24 = vsel %vm4973_vm1, 0.0, %v1945_v7  ;;  %vm4977_vm1 = vmmov %vm4964_vm0  ;;  %v1912_v42 = vperm.slane %v1904_v54, %v3505_v46 }
 0x399   :  { %v1954_v33 = vperm.slane %v1946_v24, %v3505_v46  ;;  %v1984_v12 = vsel %vm4977_vm1, 0.0, %v1983_v40  ;;  %v1914_v6 = vsel %vm4964_vm0, 0.0, %v1913_v27  ;;  %vm4981_vm1 = vmmov %vm4964_vm0  ;;  %v2150_v31 = vmul.f32 %v4304_v19, %v2148_v5 }
 0x39a   :  { %v1958_v43 = vsel %vm4970_vm4, 0.0, %v1957_v25  ;;  %vm4974_vm4 = vmmov %vm4964_vm0  ;;  %v1921_v28 = vrot.slane %v1912_v42, 4  ;;  %v1978_v35 = vsel %vm4981_vm1, 0.0, %v1977_v20  ;;  %v1918_v55 = vperm.slane %v1914_v6, %v3505_v46 }
 0x39b   :  { %2009 = vrot.lane.b32.xlu2 %v1958_v43, %s3341_s18  ;;  %v1960_v37 = vsel %vm4974_vm4, 0.0, %v1959_v41  ;;  %v1961_v61 = vrot.slane %v1954_v33, 4  ;;  %vm4978_vm4 = vmmov %vm4964_vm0  ;;  %v1982_v43 = vperm.slane %v1978_v35, %v3505_v46  ;;  %v2256_v24 = vstv %s3221_s6  ;;  %s3236_s6 = sld [smem:[#allocation6 + $0x35]] }
 0x39c   :  { %v1968_v29 = vsel %vm4978_vm4, 0.0, %v1967_v14  ;;  %v1922_v30 = vsel %vm4980_vm2, 0.0, %v1921_v28  ;;  %vm4982_vm4 = vmmov %vm4964_vm0  ;;  %v2258_v51 = vmul.f32 %v4304_v19, %v2256_v24  ;;  %v2260_v16 = vmul.f32 %v4187_v62, %v2256_v24 }
 0x39d   :  { %v1962_v13 = vsel %vm4964_vm0, 0.0, %v1961_v61  ;;  %v1976_v8 = vperm.slane %v1968_v29, %v3505_v46  ;;  %vm4983_vm15 = vmmov %vm4964_vm0  ;;  %v1987_v26 = vrot.slane %v1982_v43, 4  ;;  %v2344_v6 = vstv %s3224_s8 }
 0x39e   :  { %vm4984_vm2 = vmmov %vm4964_vm0  ;;  %vm4985_vm0 = vcmask 1046528   ;;  %v2266_v47 = vrot.slane %v2258_v51, 1  ;;  %v2269_v14 = vrot.slane %v2260_v16, 1  ;;  %v2345_v35 = vmul.f32 %v4269_v15, %v2344_v6 }
 0x39f   :  { %v1985_v63 = vrot.slane %v1976_v8, 4  ;;  %v1988_v22 = vsel %vm4984_vm2, 0.0, %v1987_v26  ;;  %vm4986_vm1 = vmmov %vm4985_vm0  ;;  %vm4989_vm2 = vcmask 1045504  }
 0x3a0   :  { %2007 = vrot.lane.b32.xlu1 %v1894_v0, %s3341_s18  ;;  %2015 = vrot.lane.b32.xlu0 %v1886_v39, %s3339_s16  ;;  %v1923_v39 = vrot.slane %v1918_v55, 4  ;;  %v2152_v0 = vmul.f32 %v4187_v62, %v2148_v5  ;;  %v2353_v5 = vrot.slane %v2345_v35, 2 }
 0x3a1   :  { %v1986_v25 = vsel %vm4982_vm4, 0.0, %v1985_v63  ;;  %vm4987_vm4 = vmmov %vm4985_vm0 }
 0x3a2   :  { %v1924_v45 = vsel %vm4983_vm15, 0.0, %v1923_v39  ;;  %vm4988_vm15 = vmmov %vm4985_vm0 }
 0x3a3   :  { %2023 = vrot.lane.b32.xlu2 %v1896_v3, %s3343_s20  ;;  %v2224_v3 = vstv %s3220_s5  ;;  %s3235_s5 = sld [smem:[#allocation6 + $0x34]] }
 0x3a4   :  { %v2225_v49 = vmul.f32 %v4269_v15, %v2224_v3  ;;  %v2226_v44 = vmul.f32 %v4304_v19, %v2224_v3  ;;  %v2227_v59 = vmul.f32 %v4286_v52, %v2224_v3  ;;  %v2228_v10 = vmul.f32 %v4187_v62, %v2224_v3 }
 0x3a6   :  { %v2233_v1 = vrot.slane %v2225_v49, 1  ;;  %v2234_v4 = vrot.slane %v2226_v44, 1 }
 0x3a8   :  { %2017 = vrot.lane.b32.xlu1 %v1950_v60, %s3339_s16  ;;  %2025 = vrot.lane.b32.xlu0 %v1960_v37, %s3343_s20  ;;  %v2174_v60 = vstv %s3218_s4  ;;  %v2236_v37 = vrot.slane %v2227_v59, 1  ;;  %v2235_v18 = vsel %vm4985_vm0, %v2233_v1, %v2234_v4  ;;  %vm4990_vm0 = vmmov %vm4989_vm2  ;;  %s3233_s4 = sld [smem:[#allocation6 + $0x32]] }
 0x3a9   :  { %v2175_v32 = vmul.f32 %v4269_v15, %v2174_v60  ;;  %v2177_v7 = vmul.f32 %v4286_v52, %v2174_v60  ;;  %v2176_v21 = vmul.f32 %v4304_v19, %v2174_v60  ;;  %v2178_v41 = vmul.f32 %v4187_v62, %v2174_v60 }
 0x3ab   :  { %2033 = vrot.lane.b32.xlu2 %v1954_v33, %s3344_s21  ;;  %v2257_v33 = vmul.f32 %v4269_v15, %v2256_v24 }
 0x3ad   :  { %v2265_v23 = vrot.slane %v2257_v33, 1 }
 0x3b0   :  { %2031 = vrot.lane.b32.xlu1 %v1890_v53, %s3344_s21  ;;  %2039 = vrot.lane.b32.xlu0 %v1898_v38, %s3346_s24  ;;  %v2237_v53 = vrot.slane %v2228_v10, 1  ;;  %v2267_v38 = vsel %vm4987_vm4, %v2265_v23, %v2266_v47  ;;  %vm4992_vm4 = vmmov %vm4990_vm0 }
 0x3b2   :  { %v2238_v2 = vsel %vm4986_vm1, %v2236_v37, %v2237_v53  ;;  %vm4991_vm1 = vmmov %vm4990_vm0 }
 0x3b3   :  { %2047 = vrot.lane.b32.xlu2 %v1908_v50, %s3335_s12  ;;  %v2312_v50 = vstv %s3223_s7 }
 0x3b4   :  { %v2313_v61 = vmul.f32 %v4269_v15, %v2312_v50  ;;  %v2314_v40 = vmul.f32 %v4304_v19, %v2312_v50  ;;  %v2316_v17 = vmul.f32 %v4187_v62, %v2312_v50  ;;  %v2315_v29 = vmul.f32 %v4286_v52, %v2312_v50 }
 0x3b6   :  { %v2324_v28 = vrot.slane %v2315_v29, 2  ;;  %v2325_v27 = vrot.slane %v2316_v17, 2 }
 0x3b8   :  { %2049 = vrot.lane.b32.xlu0 %v1972_v34, %s3335_s12  ;;  %2041 = vrot.lane.b32.xlu1 %v1962_v13, %s3346_s24  ;;  %v2259_v34 = vmul.f32 %v4286_v52, %v2256_v24 }
 0x3ba   :  { %v2268_v13 = vrot.slane %v2259_v34, 1 }
 0x3bb   :  { %2057 = vrot.lane.b32.xlu2 %v1984_v12, %s3332_s28  ;;  %v2321_v12 = vrot.slane %v2313_v61, 2 }
 0x3c0   :  { %2055 = vrot.lane.b32.xlu1 %v1920_v57, %s3332_s28  ;;  %2063 = vrot.lane.b32.xlu0 %v1912_v42, %s3340_s17  ;;  %v2322_v42 = vrot.slane %v2314_v40, 2  ;;  %v2270_v57 = vsel %vm4988_vm15, %v2268_v13, %v2269_v14  ;;  %vm4993_vm15 = vcmask 228352  }
 0x3c3   :  { %2071 = vrot.lane.b32.xlu2 %v1922_v30, %s3345_s22  ;;  %v2326_v30 = vsel %vm4990_vm0, %v2324_v28, %v2325_v27  ;;  %vm4995_vm0 = vcmask 97280  }
 0x3c8   :  { %2065 = vrot.lane.b32.xlu1 %v1976_v8, %s3340_s17  ;;  %2073 = vrot.lane.b32.xlu0 %v1986_v25, %s3345_s22  ;;  %v2323_v8 = vsel %vm4989_vm2, %v2321_v12, %v2322_v42  ;;  %v2347_v25 = vmul.f32 %v4286_v52, %v2344_v6  ;;  %vm4994_vm2 = vmmov %vm4993_vm15 }
 0x3cb   :  { %2081 = vrot.lane.b32.xlu2 %v1982_v43, %s3336_s13  ;;  %v2348_v43 = vmul.f32 %v4187_v62, %v2344_v6 }
 0x3cd   :  { %v2357_v26 = vrot.slane %v2348_v43, 2 }
 0x3d0   :  { %2079 = vrot.lane.b32.xlu1 %v1918_v55, %s3336_s13  ;;  %2087 = vrot.lane.b32.xlu0 %v1924_v45, %s3342_s19  ;;  %v2346_v55 = vmul.f32 %v4304_v19, %v2344_v6 }
 0x3d2   :  { %v2354_v45 = vrot.slane %v2346_v55, 2 }
 0x3d3   :  { %2157 = vrot.lane.b32.xlu2 %v2149_v11, %s3331_s27  ;;  %v2356_v11 = vrot.slane %v2347_v25, 2 }
 0x3d5   :  { %v2358_v60 = vsel %vm4992_vm4, %v2356_v11, %v2357_v26  ;;  %vm4997_vm4 = vcmask 1031168  }
 0x3d8   :  { %2089 = vrot.lane.b32.xlu1 %v1988_v22, %s3342_s19  ;;  %2159 = vrot.lane.b32.xlu0 %v2150_v31, %s3331_s27 }
 0x3db   :  { %2163 = vrot.lane.b32.xlu2 %v2152_v0, %s3331_s27  ;;  %v2355_v0 = vsel %vm4991_vm1, %v2353_v5, %v2354_v45  ;;  %vm4996_vm1 = vmmov %vm4995_vm0 }
 0x3e0   :  { %2161 = vrot.lane.b32.xlu1 %v2151_v56, %s3331_s27  ;;  %2183 = vrot.lane.b32.xlu0 %v2175_v32, %s3332_s28 }
 0x3e3   :  { %2187 = vrot.lane.b32.xlu2 %v2177_v7, %s3332_s28 }
 0x3e4   :  { %v2000_v54 = vpop.permute.xlu2 %1999 }
 0x3e8   :  { %2185 = vrot.lane.b32.xlu1 %v2176_v21, %s3332_s28  ;;  %2189 = vrot.lane.b32.xlu0 %v2178_v41, %s3332_s28 }
 0x3eb   :  { %2241 = vrot.lane.b32.xlu2 %v2234_v4, %s3331_s27 }
 0x3f0   :  { %2239 = vrot.lane.b32.xlu1 %v2235_v18, %s3331_s27  ;;  %2243 = vrot.lane.b32.xlu0 %v2238_v2, %s3331_s27 }
 0x3f3   :  { %2271 = vrot.lane.b32.xlu2 %v2267_v38, %s3332_s28 }
 0x3f5   :  { %v2010_v20 = vpop.permute.xlu2 %2009 }
 0x3f8   :  { %2245 = vrot.lane.b32.xlu1 %v2237_v53, %s3331_s27  ;;  %2273 = vrot.lane.b32.xlu0 %v2266_v47, %s3332_s28 }
 0x3fb   :  { %2277 = vrot.lane.b32.xlu2 %v2269_v14, %s3332_s28 }
 0x3fc   :  { %v1992_v63 = vpop.permute.xlu0 %1991 }
 0x3fd   :  { %v2024_v39 = vpop.permute.xlu2 %2023  ;;  %v2093_v53 = vsel %vm534_vm3, %v4295_v58, %v1992_v63 }
 0x3fe   :  { %v2095_v51 = vsel %vm4993_vm15, %v2093_v53, %v2000_v54  ;;  %vm4998_vm15 = vcmask 1040384  }
 0x400   :  { %2275 = vrot.lane.b32.xlu1 %v2270_v57, %s3332_s28  ;;  %2327 = vrot.lane.b32.xlu0 %v2323_v8, %s3331_s27 }
 0x403   :  { %2331 = vrot.lane.b32.xlu2 %v2326_v30, %s3331_s27 }
 0x405   :  { %v2034_v7 = vpop.permute.xlu2 %2033 }
 0x408   :  { %2329 = vrot.lane.b32.xlu1 %v2322_v42, %s3331_s27  ;;  %2333 = vrot.lane.b32.xlu0 %v2325_v27, %s3331_s27 }
 0x40a   :  { %v1994_v31 = vpop.permute.xlu1 %1993  ;;  %v2002_v22 = vpop.permute.xlu0 %2001 }
 0x40b   :  { %2361 = vrot.lane.b32.xlu2 %v2354_v45, %s3332_s28  ;;  %v2094_v23 = vsel %vm534_vm3, %v4313_v9, %v1994_v31 }
 0x40c   :  { %v2096_v50 = vsel %vm4994_vm2, %v2094_v23, %v2002_v22  ;;  %vm4999_vm2 = vmmov %vm4997_vm4 }
 0x40d   :  { %v2048_v41 = vpop.permute.xlu2 %2047  ;;  %v2098_v16 = vsel %vm540_vm7, %v2096_v50, %v2010_v20 }
 0x410   :  { %2359 = vrot.lane.b32.xlu1 %v2355_v0, %s3332_s28  ;;  %2363 = vrot.lane.b32.xlu0 %v2358_v60, %s3332_s28  ;;  %v4487_v0 = vstv %s3215_s23  ;;  %s3231_s23 = sld [smem:[#allocation6 + $0x30]] }
 0x412   :  { %v2008_v56 = vpop.permute.xlu1 %2007  ;;  %v2016_v32 = vpop.permute.xlu0 %2015 }
 0x413   :  { %v2097_v33 = vsel %vm540_vm7, %v2095_v51, %v2008_v56 }
 0x414   :  { %v2099_v47 = vsel %vm543_vm9, %v2097_v33, %v2016_v32 }
 0x415   :  { %v2058_v59 = vpop.permute.xlu2 %2057  ;;  %v2101_v34 = vsel %vm546_vm11, %v2099_v47, %v2024_v39 }
 0x418   :  { %2365 = vrot.lane.b32.xlu1 %v2357_v26, %s3332_s28  ;;  %v4477_v26 = vstv %s3216_s9 }
 0x419   :  { %v2142_v22 = vmul.f32 %v4187_v62, %v4477_v26 }
 0x41a   :  { %v2018_v3 = vpop.permute.xlu1 %2017  ;;  %v2026_v21 = vpop.permute.xlu0 %2025 }
 0x41b   :  { %v2100_v40 = vsel %vm543_vm9, %v2098_v16, %v2018_v3  ;;  %v2146_v32 = vadd.f32 %v2142_v22, %v4487_v0 }
 0x41c   :  { %v2102_v12 = vsel %vm546_vm11, %v2100_v40, %v2026_v21 }
 0x41d   :  { %v2072_v1 = vpop.permute.xlu2 %2071  ;;  %v2104_v27 = vsel %vm549_vm12, %v2102_v12, %v2034_v7 }
 0x422   :  { %v2032_v49 = vpop.permute.xlu1 %2031  ;;  %v2040_v44 = vpop.permute.xlu0 %2039 }
 0x423   :  { %v2103_v58 = vsel %vm549_vm12, %v2101_v34, %v2032_v49 }
 0x424   :  { %v2105_v54 = vsel %vm552_vm13, %v2103_v58, %v2040_v44 }
 0x425   :  { %v2082_v38 = vpop.permute.xlu2 %2081  ;;  %v2107_v57 = vsel %vm555_vm14, %v2105_v54, %v2048_v41 }
 0x42a   :  { %v2042_v10 = vpop.permute.xlu1 %2041  ;;  %v2050_v24 = vpop.permute.xlu0 %2049 }
 0x42b   :  { %v2106_v30 = vsel %vm552_vm13, %v2104_v27, %v2042_v10 }
 0x42c   :  { %v2108_v35 = vsel %vm555_vm14, %v2106_v30, %v2050_v24  ;;  %v2139_v24 = vmul.f32 %v4269_v15, %v4477_v26 }
 0x42d   :  { %v2158_v17 = vpop.permute.xlu2 %2157  ;;  %v2110_v45 = vsel %vm4999_vm2, %v2108_v35, %v2058_v59 }
 0x432   :  { %v2056_v4 = vpop.permute.xlu1 %2055  ;;  %v2064_v37 = vpop.permute.xlu0 %2063 }
 0x433   :  { %v2111_v61 = vsel %vm4995_vm0, %v2056_v4, %v2064_v37  ;;  %v2109_v20 = vsel %vm4997_vm4, %v2107_v57, %v2056_v4  ;;  %vm5000_vm0 = vmmov %vm4998_vm15  ;;  %v2200_v4 = vstv %s3219_s1  ;;  %v2143_v37 = vadd.f32 %v2139_v24, %v4487_v0 }
 0x434   :  { %v2113_v13 = vsel %vm564_vm6, %v2111_v61, %v2072_v1  ;;  %v2141_v1 = vmul.f32 %v4286_v52, %v4477_v26  ;;  %v4503_v51 = vmul.f32 %v4304_v19, %v2200_v4  ;;  %v2201_v33 = vmul.f32 %v4269_v15, %v2200_v4 }
 0x435   :  { %v2164_v11 = vpop.permute.xlu2 %2163  ;;  %v2203_v23 = vmul.f32 %v4286_v52, %v2200_v4  ;;  %v2169_v50 = vadd.f32 %v2158_v17, %v2143_v37 }
 0x436   :  { %v2172_v7 = vadd.f32 %v2164_v11, %v2146_v32  ;;  %v2145_v53 = vadd.f32 %v2141_v1, %v4487_v0  ;;  %v2210_v16 = vrot.slane %v4503_v51, 1  ;;  %v2209_v58 = vrot.slane %v2201_v33, 1 }
 0x437   :  { %v2212_v61 = vrot.slane %v2203_v23, 1  ;;  %v2140_v1 = vmul.f32 %v4304_v19, %v4477_v26 }
 0x439   :  { %v2144_v23 = vadd.f32 %v2140_v1, %v4487_v0 }
 0x43a   :  { %v2066_v18 = vpop.permute.xlu1 %2065  ;;  %v2074_v2 = vpop.permute.xlu0 %2073 }
 0x43b   :  { %v2112_v29 = vsel %vm4996_vm1, %v2058_v59, %v2066_v18  ;;  %v4508_v18 = vmul.f32 %v4187_v62, %v2200_v4  ;;  %vm5001_vm1 = vcmask 1046528  }
 0x43c   :  { %v2114_v63 = vsel %vm564_vm6, %v2112_v29, %v2074_v2  ;;  %vm5002_vm4 = vmmov %vm5001_vm1 }
 0x43d   :  { %v2116_v25 = vsel %vm567_vm8, %v2114_v63, %v2082_v38  ;;  %v2188_v3 = vpop.permute.xlu2 %2187  ;;  %v2213_v40 = vrot.slane %v4508_v18, 1 }
 0x43f   :  { %v2214_v12 = vsel %vm5002_vm4, %v2212_v61, %v2213_v40 }
 0x442   :  { %v2080_v9 = vpop.permute.xlu1 %2079  ;;  %v2088_v14 = vpop.permute.xlu0 %2087 }
 0x443   :  { %v2115_v42 = vsel %vm567_vm8, %v2113_v13, %v2080_v9  ;;  %v2288_v13 = vstv %s3222_s26 }
 0x444   :  { %v2117_v28 = vsel %vm570_vm10, %v2115_v42, %v2088_v14  ;;  %v2211_v14 = vsel %vm5001_vm1, %v2209_v58, %v2210_v16  ;;  %v2291_v29 = vmul.f32 %v4286_v52, %v2288_v13  ;;  %v4525_v57 = vmul.f32 %v4304_v19, %v2288_v13 }
 0x445   :  { %v2123_v8 = vrot.slane %v2117_v28, 7  ;;  %v4494_v44 = vpop.permute.xlu2 %2241  ;;  %v2289_v28 = vmul.f32 %v4269_v15, %v2288_v13 }
 0x446   :  { %v2300_v63 = vrot.slane %v2291_v29, 2 }
 0x447   :  { %v2125_v6 = vsel %vm4998_vm15, %v2109_v20, %v2123_v8  ;;  %v4528_v8 = vmul.f32 %v4187_v62, %v2288_v13  ;;  %vm5003_vm15 = vcmask 1045504  }
 0x448   :  { %3213 = vst.msk [vmem:[%s4908_s3 + $0x3] ss:$8 sm:$0x3] %vm3672_vm5, %v2125_v6  ;;  %vm5004_vm2 = vmmov %vm5003_vm15 }
 0x44a   :  { %v2090_v55 = vpop.permute.xlu1 %2089  ;;  %v4473_v43 = vpop.permute.xlu0 %2159 }
 0x44b   :  { %v2118_v39 = vsel %vm570_vm10, %v2116_v25, %v2090_v55  ;;  %v2297_v55 = vrot.slane %v2289_v28, 2  ;;  %v2298_v25 = vrot.slane %v4525_v57, 2  ;;  %v2170_v0 = vadd.f32 %v4473_v43, %v2144_v23 }
 0x44c   :  { %v2124_v5 = vrot.slane %v2118_v39, 7  ;;  %v2301_v39 = vrot.slane %v4528_v8, 2 }
 0x44d   :  { %v2272_v38 = vpop.permute.xlu2 %2271  ;;  %v2299_v22 = vsel %vm5004_vm2, %v2297_v55, %v2298_v25 }
 0x44e   :  { %v2126_v31 = vsel %vm5000_vm0, %v2110_v45, %v2124_v5  ;;  %v2302_v45 = vsel %vm5003_vm15, %v2300_v63, %v2301_v39  ;;  %vm5005_vm0 = vcmask 1047556  }
 0x44f   :  { %3214 = vst.msk [vmem:[%s4908_s3 + $0x13] ss:$8 sm:$0x3] %vm3672_vm5, %v2126_v31  ;;  %vm5006_vm1 = vmmov %vm5005_vm0 }
 0x450   :  { %vm5007_vm4 = vmmov %vm5005_vm0 }
 0x451   :  { %vm5008_vm15 = vmmov %vm5005_vm0 }
 0x452   :  { %v2162_v60 = vpop.permute.xlu1 %2161  ;;  %v2184_v56 = vpop.permute.xlu0 %2183  ;;  %vm5009_vm2 = vmmov %vm5005_vm0 }
 0x453   :  { %v2171_v34 = vadd.f32 %v2162_v60, %v2145_v53  ;;  %v2195_v54 = vadd.f32 %v2184_v56, %v2169_v50 }
 0x455   :  { %v2197_v9 = vadd.f32 %v2188_v3, %v2171_v34  ;;  %v2219_v27 = vadd.f32 %v2211_v14, %v2195_v54  ;;  %v4530_v30 = vpop.permute.xlu2 %2277 }
 0x457   :  { %v2221_v20 = vadd.f32 %v2214_v12, %v2197_v9 }
 0x45a   :  { %v4490_v21 = vpop.permute.xlu1 %2185  ;;  %v2190_v41 = vpop.permute.xlu0 %2189 }
 0x45b   :  { %v4492_v49 = vadd.f32 %v2190_v41, %v2172_v7 }
 0x45d   :  { %v2332_v32 = vpop.permute.xlu2 %2331 }
 0x462   :  { %v2240_v59 = vpop.permute.xlu1 %2239  ;;  %v2244_v10 = vpop.permute.xlu0 %2243 }
 0x463   :  { %v2251_v6 = vadd.f32 %v2240_v59, %v2219_v27  ;;  %v2253_v35 = vadd.f32 %v2244_v10, %v2221_v20 }
 0x465   :  { %v2283_v31 = vadd.f32 %v2272_v38, %v2251_v6 }
 0x467   :  { %v2307_v56 = vadd.f32 %v2299_v22, %v2283_v31 }
 0x46a   :  { %v4510_v2 = vpop.permute.xlu1 %2245  ;;  %v4512_v47 = vpop.permute.xlu0 %2273 }
 0x472   :  { %v2276_v42 = vpop.permute.xlu1 %2275  ;;  %v2328_v17 = vpop.permute.xlu0 %2327 }
 0x473   :  { %v2285_v5 = vadd.f32 %v2276_v42, %v2253_v35  ;;  %v2339_v7 = vadd.f32 %v2328_v17, %v2307_v56  ;;  %v2196_v17 = vadd.f32 %v4490_v21, %v2170_v0  ;;  %v2222_v21 = vadd.f32 %v2213_v40, %v4492_v49 }
 0x475   :  { %v2309_v60 = vadd.f32 %v2302_v45, %v2285_v5  ;;  %v2220_v43 = vadd.f32 %v2210_v16, %v2196_v17  ;;  %v2254_v51 = vadd.f32 %v4510_v2, %v2222_v21 }
 0x477   :  { %v2341_v3 = vadd.f32 %v2332_v32, %v2309_v60  ;;  %v2252_v55 = vadd.f32 %v4494_v44, %v2220_v43  ;;  %v2286_v31 = vadd.f32 %v4530_v30, %v2254_v51 }
 0x479   :  { %v2284_v45 = vadd.f32 %v4512_v47, %v2252_v55  ;;  %v2310_v2 = vadd.f32 %v2301_v39, %v2286_v31  ;;  %v2362_v47 = vpop.permute.xlu2 %2361 }
 0x47a   :  { %v2330_v11 = vpop.permute.xlu1 %2329  ;;  %v4537_v62 = vpop.permute.xlu0 %2333 }
 0x47b   :  { %v2308_v18 = vadd.f32 %v2298_v25, %v2284_v45  ;;  %v2342_v25 = vadd.f32 %v4537_v62, %v2310_v2 }
 0x47d   :  { %v2340_v44 = vadd.f32 %v2330_v11, %v2308_v18 }
 0x482   :  { %v2360_v41 = vpop.permute.xlu1 %2359  ;;  %v2364_v59 = vpop.permute.xlu0 %2363 }
 0x483   :  { %v2371_v10 = vadd.f32 %v2360_v41, %v2339_v7  ;;  %v2373_v24 = vadd.f32 %v2364_v59, %v2341_v3  ;;  %v2372_v3 = vadd.f32 %v2362_v47, %v2340_v44  ;;  %v2770_v47 = vstv %s3233_s4 }
 0x485   :  { %v2380_v4 = vperm.slane %v2371_v10, %v3500_v36  ;;  %v2444_v37 = vperm.slane %v2373_v24, %v3500_v36  ;;  %v2375_v38 = vrot.slane %v2371_v10, 4  ;;  %v2439_v57 = vrot.slane %v2373_v24, 4 }
 0x486   :  { %v2416_v8 = vperm.slane %v2372_v3, %v3500_v36  ;;  %v2427_v17 = vrot.slane %v2372_v3, 4 }
 0x487   :  { %v2385_v53 = vrot.slane %v2380_v4, 4  ;;  %v4545_v33 = vperm.slane %v2380_v4, %v3505_v46  ;;  %v2449_v50 = vrot.slane %v2444_v37, 4  ;;  %v4549_v34 = vperm.slane %v2444_v37, %v3505_v46 }
 0x488   :  { %v2376_v12 = vsel %vm5008_vm15, 0.0, %v2375_v38  ;;  %vm5012_vm15 = vmmov %vm5005_vm0  ;;  %v2422_v1 = vperm.slane %v2416_v8, %v3505_v46 }
 0x489   :  { %v2386_v58 = vsel %vm5005_vm0, 0.0, %v2385_v53  ;;  %v2405_v61 = vrot.slane %v4545_v33, 4  ;;  %v2450_v26 = vsel %vm5006_vm1, 0.0, %v2449_v50  ;;  %v2469_v13 = vrot.slane %v4549_v34, 4  ;;  %vm5010_vm1 = vmmov %vm5005_vm0 }
 0x48a   :  { %v2394_v54 = vperm.slane %v2386_v58, %v3505_v46  ;;  %v2458_v14 = vperm.slane %v2450_v26, %v3505_v46  ;;  %v2384_v29 = vperm.slane %v2376_v12, %v3500_v36  ;;  %v2440_v6 = vsel %vm5010_vm1, 0.0, %v2439_v57  ;;  %v2366_v32 = vpop.permute.xlu1 %2365  ;;  %vm5014_vm1 = vmmov %vm5005_vm0 }
 0x48b   :  { %v2406_v9 = vsel %vm5007_vm4, 0.0, %v2405_v61  ;;  %v2470_v42 = vsel %vm5009_vm2, 0.0, %v2469_v13  ;;  %vm5011_vm4 = vmmov %vm5005_vm0  ;;  %v2448_v16 = vperm.slane %v2440_v6, %v3500_v36  ;;  %v2374_v59 = vadd.f32 %v2366_v32, %v2342_v25 }
 0x48c   :  { %2505 = vrot.lane.b32.xlu2 %v2406_v9, %s3337_s14  ;;  %2513 = vrot.lane.b32.xlu1 %v2394_v54, %s3338_s15  ;;  %v2471_v28 = vrot.slane %v2458_v14, 4  ;;  %v2407_v27 = vrot.slane %v2394_v54, 4  ;;  %v2400_v63 = vperm.slane %v2384_v29, %v3505_v46  ;;  %v2395_v40 = vrot.slane %v2384_v29, 4  ;;  %vm5013_vm2 = vmmov %vm5005_vm0 }
 0x48d   :  { %2507 = vrot.lane.b32.xlu0 %v2470_v42, %s3337_s14  ;;  %v2459_v22 = vrot.slane %v2448_v16, 4  ;;  %v2464_v49 = vperm.slane %v2448_v16, %v3505_v46  ;;  %v2480_v39 = vperm.slane %v2374_v59, %v3500_v36  ;;  %v2417_v53 = vrot.slane %v2416_v8, 4  ;;  %v4635_v16 = vld [vmem:[#allocation2 + $0x18] sm:$0xff] }
 0x48e   :  { %v2472_v20 = vsel %vm5005_vm0, 0.0, %v2471_v28  ;;  %v2408_v35 = vsel %vm5011_vm4, 0.0, %v2407_v27  ;;  %v2409_v5 = vrot.slane %v2400_v63, 4  ;;  %v2396_v7 = vsel %vm5005_vm0, 0.0, %v2395_v40  ;;  %vm5015_vm4 = vmmov %vm5005_vm0 }
 0x48f   :  { %v2473_v56 = vrot.slane %v2464_v49, 4  ;;  %v2460_v30 = vsel %vm5013_vm2, 0.0, %v2459_v22  ;;  %v2404_v11 = vperm.slane %v2396_v7, %v3505_v46  ;;  %v2486_v4 = vperm.slane %v2480_v39, %v3505_v46  ;;  %vm5017_vm2 = vmmov %vm5005_vm0 }
 0x490   :  { %v2410_v60 = vsel %vm5012_vm15, 0.0, %v2409_v5  ;;  %v2468_v41 = vperm.slane %v2460_v30, %v3505_v46  ;;  %vm5016_vm15 = vmmov %vm5005_vm0  ;;  %v2418_v50 = vsel %vm5017_vm2, 0.0, %v2417_v53  ;;  %v2433_v58 = vrot.slane %v2422_v1, 4 }
 0x491   :  { %v2474_v10 = vsel %vm5014_vm1, 0.0, %v2473_v56  ;;  %v2411_v24 = vrot.slane %v2404_v11, 4  ;;  %v2497_v38 = vrot.slane %v2486_v4, 4  ;;  %v2426_v26 = vperm.slane %v2418_v50, %v3505_v46  ;;  %vm5018_vm1 = vmmov %vm5005_vm0 }
 0x492   :  { %v2475_v62 = vrot.slane %v2468_v41, 4  ;;  %v2481_v54 = vrot.slane %v2480_v39, 4  ;;  %v2434_v9 = vsel %vm5018_vm1, 0.0, %v2433_v58  ;;  %v2491_v0 = vrot.slane %v2374_v59, 4  ;;  %vm5021_vm2 = vmmov %vm5005_vm0 }
 0x493   :  { %v2412_v37 = vsel %vm5015_vm4, 0.0, %v2411_v24  ;;  %v2498_v61 = vsel %vm5005_vm0, 0.0, %v2497_v38  ;;  %v2435_v13 = vrot.slane %v2426_v26, 4  ;;  %vm5019_vm4 = vmmov %vm5005_vm0  ;;  %v2428_v57 = vsel %vm5005_vm0, 0.0, %v2427_v17  ;;  %v4669_v38 = vld [vmem:[#allocation2] sm:$0xff]  ;;  %v4681_v17 = vld [vmem:[#allocation2 + $0x10] sm:$0xff] }
 0x494   :  { %2515 = vrot.lane.b32.xlu2 %v2458_v14, %s3338_s15  ;;  %2523 = vrot.lane.b32.xlu1 %v2472_v20, %s3341_s18  ;;  %v2476_v23 = vsel %vm5016_vm15, 0.0, %v2475_v62  ;;  %v2482_v14 = vsel %vm5019_vm4, 0.0, %v2481_v54  ;;  %vm5020_vm15 = vmmov %vm5005_vm0  ;;  %v2492_v29 = vsel %vm5021_vm2, 0.0, %v2491_v0  ;;  %v2432_v43 = vperm.slane %v2428_v57, %v3505_v46 }
 0x495   :  { %2521 = vrot.lane.b32.xlu0 %v2408_v35, %s3341_s18  ;;  %v2436_v12 = vsel %vm5020_vm15, 0.0, %v2435_v13  ;;  %v2490_v42 = vperm.slane %v2482_v14, %v3505_v46  ;;  %v2496_v27 = vperm.slane %v2492_v29, %v3505_v46  ;;  %vm5022_vm1 = vmmov %vm5005_vm0  ;;  %v2688_v22 = vstv %s3230_s29 }
 0x496   :  { %v2437_v6 = vrot.slane %v2432_v43, 4  ;;  %vm5023_vm4 = vmmov %vm5005_vm0  ;;  %v2689_v18 = vmul.f32 %v4269_v15, %v2688_v22  ;;  %v2690_v40 = vmul.f32 %v4304_v19, %v2688_v22  ;;  %v2692_v32 = vmul.f32 %v4635_v16, %v2688_v22 }
 0x497   :  { %v2499_v28 = vrot.slane %v2490_v42, 4  ;;  %v2501_v35 = vrot.slane %v2496_v27, 4  ;;  %vm5024_vm15 = vmmov %vm5005_vm0  ;;  %v2771_v7 = vmul.f32 %v4269_v15, %v2770_v47  ;;  %v2772_v25 = vmul.f32 %v4304_v19, %v2770_v47 }
 0x498   :  { %v2438_v55 = vsel %vm5023_vm4, 0.0, %v2437_v6  ;;  %vm5025_vm2 = vcmask 1046528   ;;  %v2858_v14 = vstv %s3236_s6 }
 0x499   :  { %v2500_v20 = vsel %vm5022_vm1, 0.0, %v2499_v28  ;;  %v2502_v51 = vsel %vm5024_vm15, 0.0, %v2501_v35  ;;  %vm5026_vm0 = vmmov %vm5025_vm2  ;;  %v2861_v29 = vmul.f32 %v4681_v17, %v2858_v14  ;;  %v2862_v28 = vmul.f32 %v4635_v16, %v2858_v14 }
 0x49a   :  { %vm5027_vm1 = vmmov %vm5026_vm0  ;;  %vm5029_vm15 = vcmask 1045504  }
 0x49b   :  { %vm5028_vm4 = vmmov %vm5026_vm0  ;;  %v2871_v6 = vrot.slane %v2862_v28, 2 }
 0x49c   :  { %2529 = vrot.lane.b32.xlu2 %v2400_v63, %s3339_s16  ;;  %2537 = vrot.lane.b32.xlu1 %v2410_v60, %s3343_s20  ;;  %v2662_v63 = vstv %s3229_s2  ;;  %v2691_v60 = vmul.f32 %v4286_v52, %v2688_v22 }
 0x49d   :  { %2531 = vrot.lane.b32.xlu0 %v2464_v49, %s3339_s16  ;;  %v2663_v21 = vmul.f32 %v4269_v15, %v2662_v63  ;;  %v2666_v5 = vmul.f32 %v4635_v16, %v2662_v63  ;;  %v2664_v45 = vmul.f32 %v4304_v19, %v2662_v63  ;;  %v2665_v31 = vmul.f32 %v4286_v52, %v2662_v63 }
 0x49e   :  { %v2738_v49 = vstv %s3232_s30  ;;  %v2870_v63 = vrot.slane %v2861_v29, 2 }
 0x49f   :  { %v2740_v44 = vmul.f32 %v4304_v19, %v2738_v49  ;;  %v2739_v2 = vmul.f32 %v4269_v15, %v2738_v49  ;;  %v2741_v3 = vmul.f32 %v4286_v52, %v2738_v49  ;;  %v2742_v59 = vmul.f32 %v4635_v16, %v2738_v49 }
 0x4a1   :  { %v2748_v56 = vrot.slane %v2740_v44, 1  ;;  %v2747_v30 = vrot.slane %v2739_v2, 1  ;;  %v2750_v8 = vrot.slane %v2741_v3, 1  ;;  %v2751_v39 = vrot.slane %v2742_v59, 1 }
 0x4a3   :  { %v2752_v62 = vsel %vm5027_vm1, %v2750_v8, %v2751_v39 }
 0x4a4   :  { %2539 = vrot.lane.b32.xlu2 %v2474_v10, %s3343_s20  ;;  %2547 = vrot.lane.b32.xlu1 %v2468_v41, %s3344_s21  ;;  %v2749_v41 = vsel %vm5025_vm2, %v2747_v30, %v2748_v56  ;;  %v2780_v10 = vrot.slane %v2772_v25, 1  ;;  %vm5030_vm2 = vmmov %vm5029_vm15 }
 0x4a5   :  { %2545 = vrot.lane.b32.xlu0 %v2404_v11, %s3344_s21  ;;  %v2779_v11 = vrot.slane %v2771_v7, 1 }
 0x4a7   :  { %v2781_v24 = vsel %vm5026_vm0, %v2779_v11, %v2780_v10  ;;  %vm5031_vm0 = vmmov %vm5030_vm2 }
 0x4a8   :  { %vm5032_vm1 = vmmov %vm5031_vm0 }
 0x4ac   :  { %2553 = vrot.lane.b32.xlu2 %v2412_v37, %s3346_s24  ;;  %2561 = vrot.lane.b32.xlu1 %v2422_v1, %s3335_s12  ;;  %v2774_v1 = vmul.f32 %v4635_v16, %v2770_v47 }
 0x4ad   :  { %2555 = vrot.lane.b32.xlu0 %v2476_v23, %s3346_s24  ;;  %v2826_v23 = vstv %s3235_s5 }
 0x4ae   :  { %v2783_v37 = vrot.slane %v2774_v1, 1  ;;  %v2827_v50 = vmul.f32 %v4669_v38, %v2826_v23  ;;  %v2829_v54 = vmul.f32 %v4286_v52, %v2826_v23 }
 0x4b0   :  { %v2835_v13 = vrot.slane %v2827_v50, 2 }
 0x4b4   :  { %2563 = vrot.lane.b32.xlu2 %v2486_v4, %s3335_s12  ;;  %2571 = vrot.lane.b32.xlu1 %v2498_v61, %s3332_s28  ;;  %v2773_v4 = vmul.f32 %v4286_v52, %v2770_v47 }
 0x4b5   :  { %2569 = vrot.lane.b32.xlu0 %v2434_v9, %s3332_s28  ;;  %v2830_v9 = vmul.f32 %v4635_v16, %v2826_v23 }
 0x4b6   :  { %v2782_v53 = vrot.slane %v2773_v4, 1 }
 0x4b8   :  { %v2784_v61 = vsel %vm5028_vm4, %v2782_v53, %v2783_v37  ;;  %vm5033_vm4 = vcmask 228352  }
 0x4bc   :  { %2577 = vrot.lane.b32.xlu2 %v2426_v26, %s3340_s17  ;;  %2585 = vrot.lane.b32.xlu1 %v2436_v12, %s3345_s22  ;;  %v2828_v26 = vmul.f32 %v4304_v19, %v2826_v23  ;;  %v2838_v12 = vrot.slane %v2829_v54, 2 }
 0x4bd   :  { %2579 = vrot.lane.b32.xlu0 %v2490_v42, %s3340_s17  ;;  %v2839_v42 = vrot.slane %v2830_v9, 2 }
 0x4be   :  { %v2836_v0 = vrot.slane %v2828_v26, 2 }
 0x4bf   :  { %v2840_v57 = vsel %vm5030_vm2, %v2838_v12, %v2839_v42  ;;  %vm5035_vm2 = vmmov %vm5033_vm4 }
 0x4c0   :  { %v2837_v52 = vsel %vm5029_vm15, %v2835_v13, %v2836_v0  ;;  %vm5034_vm15 = vcmask 97280  }
 0x4c4   :  { %2587 = vrot.lane.b32.xlu2 %v2500_v20, %s3345_s22  ;;  %2595 = vrot.lane.b32.xlu1 %v2496_v27, %s3336_s13  ;;  %v2859_v27 = vmul.f32 %v4669_v38, %v2858_v14 }
 0x4c5   :  { %2593 = vrot.lane.b32.xlu0 %v2432_v43, %s3336_s13  ;;  %v2860_v43 = vmul.f32 %v4304_v19, %v2858_v14 }
 0x4c6   :  { %v2867_v35 = vrot.slane %v2859_v27, 2 }
 0x4cc   :  { %2601 = vrot.lane.b32.xlu2 %v2438_v55, %s3342_s19  ;;  %2671 = vrot.lane.b32.xlu1 %v2663_v21, %s3331_s27  ;;  %v2868_v55 = vrot.slane %v2860_v43, 2 }
 0x4cd   :  { %2603 = vrot.lane.b32.xlu0 %v2502_v51, %s3342_s19 }
 0x4d4   :  { %2677 = vrot.lane.b32.xlu1 %v2666_v5, %s3331_s27  ;;  %2673 = vrot.lane.b32.xlu2 %v2664_v45, %s3331_s27  ;;  %v2872_v5 = vsel %vm5031_vm0, %v2870_v63, %v2871_v6  ;;  %v2869_v45 = vsel %vm5032_vm1, %v2867_v35, %v2868_v55  ;;  %vm5036_vm0 = vcmask 1031168   ;;  %vm5037_vm1 = vmmov %vm5034_vm15 }
 0x4d5   :  { %2675 = vrot.lane.b32.xlu0 %v2665_v31, %s3331_s27 }
 0x4dc   :  { %2701 = vrot.lane.b32.xlu1 %v2691_v60, %s3332_s28  ;;  %2697 = vrot.lane.b32.xlu2 %v2689_v18, %s3332_s28 }
 0x4dd   :  { %2699 = vrot.lane.b32.xlu0 %v2690_v40, %s3332_s28 }
 0x4e4   :  { %2755 = vrot.lane.b32.xlu1 %v2748_v56, %s3331_s27  ;;  %2703 = vrot.lane.b32.xlu2 %v2692_v32, %s3332_s28 }
 0x4e5   :  { %2753 = vrot.lane.b32.xlu0 %v2749_v41, %s3331_s27 }
 0x4e6   :  { %v4660_v15 = vpop.permute.xlu2 %2505 }
 0x4e7   :  { %v2607_v41 = vsel %vm534_vm3, %v4545_v33, %v4660_v15 }
 0x4ec   :  { %2785 = vrot.lane.b32.xlu1 %v2781_v24, %s3332_s28  ;;  %2757 = vrot.lane.b32.xlu2 %v2752_v62, %s3331_s27 }
 0x4ed   :  { %2759 = vrot.lane.b32.xlu0 %v2751_v39, %s3331_s27 }
 0x4ee   :  { %v4672_v58 = vpop.permute.xlu2 %2515 }
 0x4f4   :  { %2791 = vrot.lane.b32.xlu1 %v2783_v37, %s3332_s28  ;;  %2787 = vrot.lane.b32.xlu2 %v2780_v10, %s3332_s28 }
 0x4f5   :  { %2789 = vrot.lane.b32.xlu0 %v2784_v61, %s3332_s28 }
 0x4f6   :  { %v2530_v20 = vpop.permute.xlu2 %2529 }
 0x4fc   :  { %2843 = vrot.lane.b32.xlu1 %v2836_v0, %s3331_s27  ;;  %2841 = vrot.lane.b32.xlu2 %v2837_v52, %s3331_s27 }
 0x4fd   :  { %2845 = vrot.lane.b32.xlu0 %v2840_v57, %s3331_s27 }
 0x4fe   :  { %v2514_v21 = vpop.permute.xlu1 %2513  ;;  %v2540_v31 = vpop.permute.xlu2 %2539 }
 0x4ff   :  { %v2508_v51 = vpop.permute.xlu0 %2507  ;;  %v2609_v11 = vsel %vm5033_vm4, %v2607_v41, %v2514_v21  ;;  %vm5038_vm4 = vcmask 1040384  }
 0x500   :  { %v2608_v8 = vsel %vm534_vm3, %v4549_v34, %v2508_v51 }
 0x501   :  { %v2610_v33 = vsel %vm5035_vm2, %v2608_v8, %v4672_v58  ;;  %vm5040_vm2 = vmmov %vm5038_vm4 }
 0x504   :  { %2877 = vrot.lane.b32.xlu1 %v2872_v5, %s3332_s28  ;;  %2847 = vrot.lane.b32.xlu2 %v2839_v42, %s3331_s27 }
 0x505   :  { %2873 = vrot.lane.b32.xlu0 %v2869_v45, %s3332_s28 }
 0x506   :  { %v2524_v19 = vpop.permute.xlu1 %2523  ;;  %v2554_v18 = vpop.permute.xlu2 %2553 }
 0x507   :  { %v2522_v22 = vpop.permute.xlu0 %2521  ;;  %v2612_v53 = vsel %vm540_vm7, %v2610_v33, %v2524_v19 }
 0x508   :  { %v2611_v10 = vsel %vm540_vm7, %v2609_v11, %v2522_v22  ;;  %v2652_v22 = vstv %s3228_s10 }
 0x509   :  { %v2613_v39 = vsel %vm543_vm9, %v2611_v10, %v2530_v20 }
 0x50c   :  { %2875 = vrot.lane.b32.xlu2 %v2868_v55, %s3332_s28 }
 0x50d   :  { %2879 = vrot.lane.b32.xlu0 %v2871_v6, %s3332_s28 }
 0x50e   :  { %v2538_v60 = vpop.permute.xlu1 %2537  ;;  %v2564_v2 = vpop.permute.xlu2 %2563 }
 0x50f   :  { %v2532_v49 = vpop.permute.xlu0 %2531  ;;  %v2615_v24 = vsel %vm546_vm11, %v2613_v39, %v2538_v60 }
 0x510   :  { %v2614_v50 = vsel %vm543_vm9, %v2612_v53, %v2532_v49  ;;  %v2653_v49 = vmul.f32 %v4669_v38, %v2652_v22 }
 0x511   :  { %v2616_v14 = vsel %vm546_vm11, %v2614_v50, %v2540_v31 }
 0x516   :  { %v2548_v40 = vpop.permute.xlu1 %2547  ;;  %v2578_v30 = vpop.permute.xlu2 %2577 }
 0x517   :  { %v2546_v44 = vpop.permute.xlu0 %2545  ;;  %v2618_v12 = vsel %vm549_vm12, %v2616_v14, %v2548_v40  ;;  %v2650_v40 = vstv %s3227_s11 }
 0x518   :  { %v2617_v1 = vsel %vm549_vm12, %v2615_v24, %v2546_v44  ;;  %v2714_v44 = vstv %s3231_s23 }
 0x519   :  { %v2619_v61 = vsel %vm552_vm13, %v2617_v1, %v2554_v18  ;;  %v2655_v18 = vmul.f32 %v4681_v17, %v2652_v22  ;;  %v2715_v41 = vmul.f32 %v4669_v38, %v2714_v44 }
 0x51e   :  { %v2562_v47 = vpop.permute.xlu1 %2561  ;;  %v2588_v3 = vpop.permute.xlu2 %2587 }
 0x51f   :  { %v2556_v56 = vpop.permute.xlu0 %2555  ;;  %v2621_v54 = vsel %vm555_vm14, %v2619_v61, %v2562_v47  ;;  %v4755_v47 = vmul.f32 %v4635_v16, %v2714_v44 }
 0x520   :  { %v2620_v29 = vsel %vm552_vm13, %v2618_v12, %v2556_v56 }
 0x521   :  { %v2622_v20 = vsel %vm555_vm14, %v2620_v29, %v2564_v2  ;;  %v2717_v2 = vmul.f32 %v4681_v17, %v2714_v44  ;;  %v2727_v10 = vrot.slane %v4755_v47, 1 }
 0x523   :  { %v2726_v11 = vrot.slane %v2717_v2, 1 }
 0x526   :  { %v2572_v32 = vpop.permute.xlu1 %2571  ;;  %v2602_v23 = vpop.permute.xlu2 %2601 }
 0x527   :  { %v2570_v7 = vpop.permute.xlu0 %2569 }
 0x528   :  { %v2625_v4 = vsel %vm5034_vm15, %v2570_v7, %v2578_v30  ;;  %v2623_v13 = vsel %vm5036_vm0, %v2621_v54, %v2570_v7  ;;  %vm5039_vm15 = vmmov %vm5036_vm0  ;;  %v2657_v30 = vadd.f32 %v2653_v49, %v2650_v40  ;;  %vm5041_vm0 = vcmask 1046528  }
 0x529   :  { %v2624_v6 = vsel %vm5039_vm15, %v2622_v20, %v2572_v32 }
 0x52e   :  { %v2586_v25 = vpop.permute.xlu1 %2585  ;;  %v4732_v27 = vpop.permute.xlu2 %2673 }
 0x52f   :  { %v2580_v59 = vpop.permute.xlu0 %2579  ;;  %v2627_v15 = vsel %vm564_vm6, %v2625_v4, %v2586_v25  ;;  %v3271_v25 = vld [vmem:[#allocation2 + $0x8] sm:$0xff]  ;;  %v2728_v4 = vsel %vm5041_vm0, %v2726_v11, %v2727_v10 }
 0x530   :  { %v2626_v58 = vsel %vm5037_vm1, %v2572_v32, %v2580_v59  ;;  %v2659_v32 = vadd.f32 %v2655_v18, %v2650_v40  ;;  %vm5042_vm1 = vmmov %vm5041_vm0 }
 0x531   :  { %v2628_v28 = vsel %vm564_vm6, %v2626_v58, %v2588_v3  ;;  %v2716_v3 = vmul.f32 %v3271_v25, %v2714_v44 }
 0x533   :  { %v2724_v24 = vrot.slane %v2716_v3, 1 }
 0x536   :  { %v2596_v62 = vpop.permute.xlu1 %2595  ;;  %v2698_v51 = vpop.permute.xlu2 %2697 }
 0x537   :  { %v2594_v37 = vpop.permute.xlu0 %2593  ;;  %v2630_v52 = vsel %vm567_vm8, %v2628_v28, %v2596_v62  ;;  %v2723_v62 = vrot.slane %v2715_v41, 1 }
 0x538   :  { %v2629_v34 = vsel %vm567_vm8, %v2627_v15, %v2594_v37  ;;  %v2802_v37 = vstv %s3234_s25 }
 0x539   :  { %v2631_v26 = vsel %vm570_vm10, %v2629_v34, %v2602_v23  ;;  %v2725_v53 = vsel %vm5042_vm1, %v2723_v62, %v2724_v24  ;;  %v2803_v23 = vmul.f32 %v4669_v38, %v2802_v37  ;;  %v4769_v50 = vmul.f32 %v4635_v16, %v2802_v37 }
 0x53a   :  { %v2637_v9 = vrot.slane %v2631_v26, 7  ;;  %v2805_v61 = vmul.f32 %v4681_v17, %v2802_v37 }
 0x53b   :  { %v2811_v14 = vrot.slane %v2803_v23, 2 }
 0x53c   :  { %v2639_v0 = vsel %vm5038_vm4, %v2623_v13, %v2637_v9  ;;  %v2654_v9 = vmul.f32 %v3271_v25, %v2652_v22  ;;  %v2804_v13 = vmul.f32 %v3271_v25, %v2802_v37  ;;  %v2814_v12 = vrot.slane %v2805_v61, 2 }
 0x53d   :  { %3225 = vst.msk [vmem:[%s4908_s3 + $0x4] ss:$8 sm:$0x3] %vm3672_vm5, %v2639_v0  ;;  %v2815_v0 = vrot.slane %v4769_v50, 2  ;;  %vm5043_vm4 = vcmask 1045504  }
 0x53e   :  { %v2672_v42 = vpop.permute.xlu1 %2671  ;;  %v4747_v19 = vpop.permute.xlu2 %2703  ;;  %v2658_v28 = vadd.f32 %v2654_v9, %v2650_v40  ;;  %vm5044_vm15 = vmmov %vm5043_vm4 }
 0x53f   :  { %v2604_v57 = vpop.permute.xlu0 %2603  ;;  %v2683_v8 = vadd.f32 %v2672_v42, %v2657_v30  ;;  %v2816_v17 = vsel %vm5044_vm15, %v2814_v12, %v2815_v0 }
 0x540   :  { %v2632_v43 = vsel %vm570_vm10, %v2630_v52, %v2604_v57  ;;  %v2812_v52 = vrot.slane %v2804_v13, 2 }
 0x541   :  { %v2638_v63 = vrot.slane %v2632_v43, 7  ;;  %v2709_v15 = vadd.f32 %v2698_v51, %v2683_v8 }
 0x542   :  { %v2813_v20 = vsel %vm5043_vm4, %v2811_v14, %v2812_v52 }
 0x543   :  { %v2640_v21 = vsel %vm5040_vm2, %v2624_v6, %v2638_v63  ;;  %v2733_v58 = vadd.f32 %v2725_v53, %v2709_v15  ;;  %v2656_v6 = vmul.f32 %v4635_v16, %v2652_v22  ;;  %vm5045_vm2 = vcmask 1047556  }
 0x544   :  { %3226 = vst.msk [vmem:[%s4908_s3 + $0x14] ss:$8 sm:$0x3] %vm3672_vm5, %v2640_v21  ;;  %v2684_v21 = vadd.f32 %v4732_v27, %v2658_v28  ;;  %vm5046_vm0 = vmmov %vm5045_vm2 }
 0x545   :  { %vm5047_vm1 = vmmov %vm5046_vm0 }
 0x546   :  { %v4743_v35 = vpop.permute.xlu1 %2677  ;;  %v2758_v7 = vpop.permute.xlu2 %2757  ;;  %vm5048_vm4 = vmmov %vm5046_vm0 }
 0x547   :  { %v2676_v55 = vpop.permute.xlu0 %2675  ;;  %vm5049_vm15 = vmmov %vm5046_vm0 }
 0x548   :  { %v2685_v39 = vadd.f32 %v2676_v55, %v2659_v32 }
 0x54e   :  { %v2702_v5 = vpop.permute.xlu1 %2701  ;;  %v2788_v54 = vpop.permute.xlu2 %2787 }
 0x54f   :  { %v4745_v45 = vpop.permute.xlu0 %2699  ;;  %v2711_v1 = vadd.f32 %v2702_v5, %v2685_v39 }
 0x550   :  { %v2710_v18 = vadd.f32 %v4745_v45, %v2684_v21 }
 0x551   :  { %v2735_v26 = vadd.f32 %v2728_v4, %v2711_v1 }
 0x552   :  { %v2734_v3 = vadd.f32 %v2724_v24, %v2710_v18 }
 0x553   :  { %v2767_v42 = vadd.f32 %v2758_v7, %v2735_v26 }
 0x556   :  { %v4749_v31 = vpop.permute.xlu1 %2755  ;;  %v2842_v55 = vpop.permute.xlu2 %2841 }
 0x557   :  { %v2754_v60 = vpop.permute.xlu0 %2753  ;;  %v2766_v22 = vadd.f32 %v4749_v31, %v2734_v3 }
 0x558   :  { %v2765_v29 = vadd.f32 %v2754_v60, %v2733_v58  ;;  %v2660_v60 = vadd.f32 %v2656_v6, %v2650_v40 }
 0x559   :  { %v2798_v1 = vadd.f32 %v2788_v54, %v2766_v22 }
 0x55a   :  { %v2686_v32 = vadd.f32 %v4743_v35, %v2660_v60 }
 0x55b   :  { %v2822_v54 = vadd.f32 %v2812_v52, %v2798_v1 }
 0x55c   :  { %v2712_v45 = vadd.f32 %v4747_v19, %v2686_v32 }
 0x55e   :  { %v2786_v56 = vpop.permute.xlu1 %2785  ;;  %v2848_v41 = vpop.permute.xlu2 %2847  ;;  %v2736_v19 = vadd.f32 %v2727_v10, %v2712_v45 }
 0x55f   :  { %v4758_v59 = vpop.permute.xlu0 %2759  ;;  %v2797_v57 = vadd.f32 %v2786_v56, %v2765_v29 }
 0x560   :  { %v2768_v23 = vadd.f32 %v4758_v59, %v2736_v19 }
 0x561   :  { %v2821_v51 = vadd.f32 %v2813_v20, %v2797_v57 }
 0x563   :  { %v2853_v2 = vadd.f32 %v2842_v55, %v2821_v51 }
 0x566   :  { %v4764_v33 = vpop.permute.xlu1 %2791  ;;  %v2876_v58 = vpop.permute.xlu2 %2875 }
 0x567   :  { %v2790_v34 = vpop.permute.xlu0 %2789  ;;  %v2800_v47 = vadd.f32 %v4764_v33, %v2768_v23 }
 0x568   :  { %v2799_v43 = vadd.f32 %v2790_v34, %v2767_v42 }
 0x569   :  { %v2824_v12 = vadd.f32 %v2815_v0, %v2800_v47 }
 0x56a   :  { %v2823_v5 = vadd.f32 %v2816_v17, %v2799_v43 }
 0x56e   :  { %v2844_v38 = vpop.permute.xlu1 %2843 }
 0x56f   :  { %v2846_v63 = vpop.permute.xlu0 %2845  ;;  %v2854_v10 = vadd.f32 %v2844_v38, %v2822_v54  ;;  %v2856_v38 = vadd.f32 %v2848_v41, %v2824_v12 }
 0x570   :  { %v2855_v49 = vadd.f32 %v2846_v63, %v2823_v5 }
 0x571   :  { %v2886_v42 = vadd.f32 %v2876_v58, %v2854_v10 }
 0x573   :  { %v2930_v57 = vperm.slane %v2886_v42, %v3500_v36 }
 0x575   :  { %v2936_v17 = vperm.slane %v2930_v57, %v3505_v46  ;;  %v2931_v60 = vrot.slane %v2930_v57, 4 }
 0x576   :  { %v2878_v44 = vpop.permute.xlu1 %2877 }
 0x577   :  { %v2887_v56 = vadd.f32 %v2878_v44, %v2855_v49  ;;  %v2874_v30 = vpop.permute.xlu0 %2873  ;;  %v2947_v51 = vrot.slane %v2936_v17, 4 }
 0x578   :  { %v2885_v25 = vadd.f32 %v2874_v30, %v2853_v2 }
 0x579   :  { %v2958_v7 = vperm.slane %v2887_v56, %v3500_v36  ;;  %v2953_v34 = vrot.slane %v2887_v56, 4  ;;  %v2948_v2 = vsel %vm5046_vm0, 0.0, %v2947_v51 }
 0x57a   :  { %v2894_v40 = vperm.slane %v2885_v25, %v3500_v36  ;;  %v2889_v24 = vrot.slane %v2885_v25, 4 }
 0x57b   :  { %v2963_v16 = vrot.slane %v2958_v7, 4  ;;  %v4783_v27 = vperm.slane %v2958_v7, %v3505_v46 }
 0x57c   :  { %v2899_v8 = vrot.slane %v2894_v40, 4  ;;  %v4790_v35 = vperm.slane %v2894_v40, %v3505_v46  ;;  %v2890_v61 = vsel %vm5049_vm15, 0.0, %v2889_v24  ;;  %vm5053_vm15 = vmmov %vm5046_vm0 }
 0x57d   :  { %v2983_v11 = vrot.slane %v4783_v27, 4  ;;  %v2964_v39 = vsel %vm5045_vm2, 0.0, %v2963_v16  ;;  %v2898_v9 = vperm.slane %v2890_v61, %v3500_v36  ;;  %vm5050_vm2 = vmmov %vm5046_vm0 }
 0x57e   :  { %v2900_v4 = vsel %vm5047_vm1, 0.0, %v2899_v8  ;;  %v2919_v31 = vrot.slane %v4790_v35, 4  ;;  %v2972_v53 = vperm.slane %v2964_v39, %v3505_v46  ;;  %v2954_v14 = vsel %vm5050_vm2, 0.0, %v2953_v34  ;;  %vm5051_vm1 = vmmov %vm5046_vm0 }
 0x57f   :  { %v2984_v62 = vsel %vm5046_vm0, 0.0, %v2983_v11  ;;  %v2908_v15 = vperm.slane %v2900_v4, %v3505_v46  ;;  %v2962_v29 = vperm.slane %v2954_v14, %v3500_v36  ;;  %v2914_v33 = vperm.slane %v2898_v9, %v3505_v46  ;;  %v2880_v52 = vpop.permute.xlu0 %2879  ;;  %vm5054_vm2 = vmmov %vm5046_vm0 }
 0x580   :  { %3021 = vrot.lane.b32.xlu2 %v2984_v62, %s3337_s14  ;;  %v2920_v37 = vsel %vm5048_vm4, 0.0, %v2919_v31  ;;  %v2985_v13 = vrot.slane %v2972_v53, 4  ;;  %v2909_v50 = vrot.slane %v2898_v9, 4  ;;  %v2888_v0 = vadd.f32 %v2880_v52, %v2856_v38  ;;  %vm5052_vm4 = vmmov %vm5046_vm0 }
 0x581   :  { %3019 = vrot.lane.b32.xlu1 %v2920_v37, %s3337_s14  ;;  %3027 = vrot.lane.b32.xlu0 %v2908_v15, %s3338_s15  ;;  %v2921_v26 = vrot.slane %v2908_v15, 4  ;;  %v2978_v43 = vperm.slane %v2962_v29, %v3505_v46  ;;  %v2923_v20 = vrot.slane %v2914_v33, 4  ;;  %v2973_v25 = vrot.slane %v2962_v29, 4 }
 0x582   :  { %v2986_v28 = vsel %vm5051_vm1, 0.0, %v2985_v13  ;;  %v2910_v6 = vsel %vm5053_vm15, 0.0, %v2909_v50  ;;  %v2994_v21 = vperm.slane %v2888_v0, %v3500_v36  ;;  %vm5055_vm1 = vmmov %vm5046_vm0  ;;  %v3005_v45 = vrot.slane %v2888_v0, 4 }
 0x583   :  { %v2922_v59 = vsel %vm5046_vm0, 0.0, %v2921_v26  ;;  %v2924_v63 = vsel %vm5052_vm4, 0.0, %v2923_v20  ;;  %v2987_v55 = vrot.slane %v2978_v43, 4  ;;  %v2918_v5 = vperm.slane %v2910_v6, %v3505_v46  ;;  %vm5056_vm4 = vmmov %vm5046_vm0 }
 0x584   :  { %v2995_v49 = vrot.slane %v2994_v21, 4  ;;  %v3000_v18 = vperm.slane %v2994_v21, %v3505_v46  ;;  %v2932_v56 = vsel %vm5055_vm1, 0.0, %v2931_v60  ;;  %vm5057_vm15 = vmmov %vm5046_vm0  ;;  %v2941_v11 = vrot.slane %v2886_v42, 4 }
 0x585   :  { %v2988_v44 = vsel %vm5054_vm2, 0.0, %v2987_v55  ;;  %v2940_v30 = vperm.slane %v2932_v56, %v3505_v46  ;;  %vm5058_vm2 = vmmov %vm5046_vm0  ;;  %v2925_v4 = vrot.slane %v2918_v5, 4 }
 0x586   :  { %v2996_v36 = vsel %vm5056_vm4, 0.0, %v2995_v49  ;;  %v3011_v32 = vrot.slane %v3000_v18, 4  ;;  %v2974_v40 = vsel %vm5058_vm2, 0.0, %v2973_v25  ;;  %vm5059_vm1 = vmmov %vm5046_vm0 }
 0x587   :  { %v3004_v7 = vperm.slane %v2996_v36, %v3505_v46  ;;  %v2949_v22 = vrot.slane %v2940_v30, 4  ;;  %v2982_v8 = vperm.slane %v2974_v40, %v3505_v46  ;;  %vm5060_vm4 = vmmov %vm5046_vm0 }
 0x588   :  { %3035 = vrot.lane.b32.xlu2 %v2922_v59, %s3341_s18  ;;  %v3012_v3 = vsel %vm5057_vm15, 0.0, %v3011_v32  ;;  %v3006_v24 = vsel %vm5060_vm4, 0.0, %v3005_v45  ;;  %vm5061_vm15 = vmmov %vm5046_vm0 }
 0x589   :  { %3029 = vrot.lane.b32.xlu1 %v2972_v53, %s3338_s15  ;;  %3037 = vrot.lane.b32.xlu0 %v2986_v28, %s3341_s18  ;;  %v3013_v16 = vrot.slane %v3004_v7, 4  ;;  %v2950_v39 = vsel %vm5059_vm1, 0.0, %v2949_v22  ;;  %v2942_v62 = vsel %vm5061_vm15, 0.0, %v2941_v11  ;;  %v3010_v1 = vperm.slane %v3006_v24, %v3505_v46  ;;  %vm5062_vm2 = vmmov %vm5046_vm0 }
 0x58a   :  { %v2946_v31 = vperm.slane %v2942_v62, %v3505_v46  ;;  %v2926_v19 = vsel %vm5062_vm2, 0.0, %v2925_v4  ;;  %v2989_v37 = vrot.slane %v2982_v8, 4  ;;  %vm5063_vm1 = vmmov %vm5046_vm0  ;;  %vm5065_vm15 = vcmask 228352  }
 0x58b   :  { %v3014_v41 = vsel %vm5046_vm0, 0.0, %v3013_v16  ;;  %v3015_v53 = vrot.slane %v3010_v1, 4  ;;  %vm5064_vm4 = vmmov %vm5046_vm0  ;;  %vm5066_vm2 = vcmask 97280  }
 0x58c   :  { %v2951_v15 = vrot.slane %v2946_v31, 4  ;;  %v2990_v34 = vsel %vm5063_vm1, 0.0, %v2989_v37  ;;  %vm5070_vm1 = vcmask 1040384  }
 0x58d   :  { %v3016_v61 = vsel %vm5064_vm4, 0.0, %v3015_v53 }
 0x58e   :  { %v2952_v23 = vsel %vm5046_vm0, 0.0, %v2951_v15  ;;  %vm5067_vm0 = vmmov %vm5065_vm15 }
 0x590   :  { %3045 = vrot.lane.b32.xlu2 %v2978_v43, %s3339_s16 }
 0x591   :  { %3043 = vrot.lane.b32.xlu1 %v2914_v33, %s3339_s16  ;;  %3051 = vrot.lane.b32.xlu0 %v2924_v63, %s3343_s20 }
 0x598   :  { %3059 = vrot.lane.b32.xlu2 %v2918_v5, %s3344_s21 }
 0x599   :  { %3053 = vrot.lane.b32.xlu1 %v2988_v44, %s3343_s20  ;;  %3083 = vrot.lane.b32.xlu0 %v2948_v2, %s3332_s28 }
 0x5a0   :  { %3091 = vrot.lane.b32.xlu2 %v2940_v30, %s3340_s17 }
 0x5a1   :  { %3085 = vrot.lane.b32.xlu1 %v3012_v3, %s3332_s28  ;;  %3093 = vrot.lane.b32.xlu0 %v3004_v7, %s3340_s17 }
 0x5a8   :  { %3101 = vrot.lane.b32.xlu2 %v3014_v41, %s3345_s22 }
 0x5a9   :  { %3099 = vrot.lane.b32.xlu1 %v2950_v39, %s3345_s22  ;;  %3061 = vrot.lane.b32.xlu0 %v2982_v8, %s3344_s21 }
 0x5b0   :  { %3109 = vrot.lane.b32.xlu2 %v3010_v1, %s3336_s13 }
 0x5b1   :  { %3107 = vrot.lane.b32.xlu1 %v2946_v31, %s3336_s13  ;;  %3067 = vrot.lane.b32.xlu0 %v2926_v19, %s3346_s24 }
 0x5b8   :  { %3115 = vrot.lane.b32.xlu2 %v2952_v23, %s3342_s19 }
 0x5b9   :  { %3069 = vrot.lane.b32.xlu1 %v2990_v34, %s3346_s24  ;;  %3117 = vrot.lane.b32.xlu0 %v3016_v61, %s3342_s19 }
 0x5c0   :  { %3077 = vrot.lane.b32.xlu2 %v3000_v18, %s3335_s12 }
 0x5c1   :  { %3075 = vrot.lane.b32.xlu1 %v2936_v17, %s3335_s12 }
 0x5da   :  { %v3022_v46 = vpop.permute.xlu2 %3021 }
 0x5db   :  { %v3122_v20 = vsel %vm534_vm3, %v4783_v27, %v3022_v46 }
 0x5e2   :  { %v3036_v26 = vpop.permute.xlu2 %3035 }
 0x5ea   :  { %v3046_v54 = vpop.permute.xlu2 %3045 }
 0x5f2   :  { %v3060_v9 = vpop.permute.xlu2 %3059 }
 0x5f3   :  { %v3020_v47 = vpop.permute.xlu1 %3019  ;;  %v3028_v10 = vpop.permute.xlu0 %3027 }
 0x5f4   :  { %v3121_v6 = vsel %vm534_vm3, %v4790_v35, %v3020_v47  ;;  %vm5068_vm3 = vmmov %vm5066_vm2 }
 0x5f5   :  { %v3123_v51 = vsel %vm5067_vm0, %v3121_v6, %v3028_v10 }
 0x5f6   :  { %v3125_v49 = vsel %vm540_vm7, %v3123_v51, %v3036_v26 }
 0x5fa   :  { %v3092_v12 = vpop.permute.xlu2 %3091 }
 0x5fb   :  { %v3030_v13 = vpop.permute.xlu1 %3029  ;;  %v3038_v58 = vpop.permute.xlu0 %3037 }
 0x5fc   :  { %v3124_v0 = vsel %vm5065_vm15, %v3122_v20, %v3030_v13 }
 0x5fd   :  { %v3126_v55 = vsel %vm540_vm7, %v3124_v0, %v3038_v58  ;;  %vm5069_vm7 = vcmask 1031168  }
 0x5fe   :  { %v3128_v60 = vsel %vm543_vm9, %v3126_v55, %v3046_v54 }
 0x602   :  { %v3102_v28 = vpop.permute.xlu2 %3101 }
 0x603   :  { %v3044_v14 = vpop.permute.xlu1 %3043  ;;  %v3052_v59 = vpop.permute.xlu0 %3051 }
 0x604   :  { %v3127_v56 = vsel %vm543_vm9, %v3125_v49, %v3044_v14 }
 0x605   :  { %v3129_v45 = vsel %vm546_vm11, %v3127_v56, %v3052_v59 }
 0x606   :  { %v3131_v8 = vsel %vm549_vm12, %v3129_v45, %v3060_v9 }
 0x60a   :  { %v3110_v38 = vpop.permute.xlu2 %3109 }
 0x60b   :  { %v3054_v42 = vpop.permute.xlu1 %3053  ;;  %v3084_v29 = vpop.permute.xlu0 %3083 }
 0x60c   :  { %v3130_v27 = vsel %vm546_vm11, %v3128_v60, %v3054_v42  ;;  %v3139_v36 = vsel %vm5068_vm3, %v3084_v29, %v3092_v12 }
 0x612   :  { %v3116_v50 = vpop.permute.xlu2 %3115 }
 0x613   :  { %v3086_v33 = vpop.permute.xlu1 %3085  ;;  %v3094_v52 = vpop.permute.xlu0 %3093 }
 0x614   :  { %v3140_v21 = vsel %vm5066_vm2, %v3086_v33, %v3094_v52 }
 0x615   :  { %v3142_v5 = vsel %vm564_vm6, %v3140_v21, %v3102_v28 }
 0x616   :  { %v3144_v2 = vsel %vm567_vm8, %v3142_v5, %v3110_v38 }
 0x61a   :  { %v3078_v30 = vpop.permute.xlu2 %3077 }
 0x61b   :  { %v3100_v57 = vpop.permute.xlu1 %3099  ;;  %v3062_v43 = vpop.permute.xlu0 %3061 }
 0x61c   :  { %v3132_v18 = vsel %vm549_vm12, %v3130_v27, %v3062_v43  ;;  %v3141_v25 = vsel %vm564_vm6, %v3139_v36, %v3100_v57  ;;  %vm5071_vm6 = vmmov %vm5069_vm7 }
 0x623   :  { %v3108_v17 = vpop.permute.xlu1 %3107  ;;  %v3068_v63 = vpop.permute.xlu0 %3067 }
 0x624   :  { %v3143_v22 = vsel %vm567_vm8, %v3141_v25, %v3108_v17  ;;  %v3133_v39 = vsel %vm552_vm13, %v3131_v8, %v3068_v63  ;;  %vm5072_vm8 = vmmov %vm5070_vm1 }
 0x625   :  { %v3145_v11 = vsel %vm570_vm10, %v3143_v22, %v3116_v50 }
 0x626   :  { %v3151_v62 = vrot.slane %v3145_v11, 7 }
 0x62b   :  { %v3070_v44 = vpop.permute.xlu1 %3069  ;;  %v3118_v35 = vpop.permute.xlu0 %3117 }
 0x62c   :  { %v3134_v32 = vsel %vm552_vm13, %v3132_v18, %v3070_v44  ;;  %v3146_v7 = vsel %vm570_vm10, %v3144_v2, %v3118_v35 }
 0x62d   :  { %v3136_v3 = vsel %vm555_vm14, %v3134_v32, %v3078_v30  ;;  %v3152_v16 = vrot.slane %v3146_v7, 7 }
 0x62e   :  { %v3138_v40 = vsel %vm5069_vm7, %v3136_v3, %v3086_v33 }
 0x62f   :  { %v3154_v41 = vsel %vm5070_vm1, %v3138_v40, %v3152_v16 }
 0x630   :  { %3238 = vst.msk [vmem:[%s4908_s3 + $0x15] ss:$8 sm:$0x3] %vm3672_vm5, %v3154_v41 }
 0x633   :  { %v3076_v24 = vpop.permute.xlu1 %3075 }
 0x634   :  { %v3135_v1 = vsel %vm555_vm14, %v3133_v39, %v3076_v24 }
 0x635   :  { %v3137_v4 = vsel %vm5071_vm6, %v3135_v1, %v3084_v29 }
 0x636   :  { %v3153_v31 = vsel %vm5072_vm8, %v3137_v4, %v3151_v62 }
 0x637   :  { %3237 = vst.msk [vmem:[%s4908_s3 + $0x5] ss:$8 sm:$0x3] %vm3672_vm5, %v3153_v31 }
 0x638   :  { %3167 = vsyncpa [#allocation3], 1 }
 0x639   :  { %3168 = vsyncpa [#allocation4], 1 }
 0x63a   :  { %3169 = vsyncpa [#allocation5], 1 }

</bundles_post_ra>
